<compile_context>
chip_gen: v7x
topology: tpu7x:2x2x1
jax: 0.10.0
libtpu: 0.0.40
codegen_flags: <defaults>
</compile_context>

<pallas_src>
import functools

import jax
import jax.numpy as jnp
import numpy as np
from jax import lax
from jax.experimental import pallas as pl
from jax.experimental.pallas import tpu as pltpu


def _cross_attention_kernel(x_ref, y_ref, wq_ref, wk_ref, wv_ref, wp_ref,
                            bp_ref, o_ref,
                            q_scr, k_scr, v_scr, ctx_scr,
                            *, head_dim, heads_per_step, approx_recip):
    """Grid step = (batch b, query tile qi, head group g)."""
    qi = pl.program_id(1)
    g = pl.program_id(2)

    # ---- K / V projection: full-width (N, C), once per batch element. -----
    @pl.when((qi == 0) & (g == 0))
    def _project_kv():
        yb = y_ref[0]                                              # (N, C)
        k_scr[...] = jnp.dot(yb, wk_ref[...],
                             preferred_element_type=jnp.float32
                             ).astype(k_scr.dtype)
        v_scr[...] = jnp.dot(yb, wv_ref[...],
                             preferred_element_type=jnp.float32
                             ).astype(v_scr.dtype)

    # ---- Q projection: full-width (Tq, C), once per (batch, query tile). --
    @pl.when(g == 0)
    def _project_q():
        xb = x_ref[0]                                              # (Tq, C)
        q_scr[...] = jnp.dot(xb, wq_ref[...],                      # scale folded in Wq
                             preferred_element_type=jnp.float32
                             ).astype(q_scr.dtype)

    # ---- Attention for the heads of this head group. ----------------------
    gw = heads_per_step * head_dim                  # group width, mult. of 128
    base = pl.multiple_of(g * gw, gw)
    qg = q_scr[:, pl.ds(base, gw)]                                 # (Tq, gw)
    kg = k_scr[:, pl.ds(base, gw)]                                 # (N,  gw)
    vg = v_scr[:, pl.ds(base, gw)]                                 # (N,  gw)

    for j in range(heads_per_step):                                # static unroll
        lo = j * head_dim
        q_h = qg[:, lo:lo + head_dim]                              # (Tq, hd)
        k_h = kg[:, lo:lo + head_dim]                              # (N,  hd)
        v_h = vg[:, lo:lo + head_dim]                              # (N,  hd)

        # Scores: contract head_dim -> lane-dense (Tq, N) f32.
        s = lax.dot_general(q_h, k_h,
                            dimension_numbers=(((1,), (1,)), ((), ())),
                            preferred_element_type=jnp.float32)

        # Softmax with normalization deferred past the PV matmul.
        m = jnp.max(s, axis=-1, keepdims=True)
        p = jnp.exp(s - m)                                         # (Tq, N)
        l = jnp.sum(p, axis=-1, keepdims=True)                     # (Tq, 1)

        pv = jnp.dot(p.astype(v_h.dtype), v_h,
                     preferred_element_type=jnp.float32)           # (Tq, hd)
        pv = pv * pl.reciprocal(l, approx=approx_recip)

        # Assemble this head's context at its lane offset.
        ctx_scr[:, pl.ds(base + lo, head_dim)] = pv.astype(ctx_scr.dtype)

    # ---- Output projection: one C-wide matmul on the last head group. -----
    @pl.when(g == pl.num_programs(2) - 1)
    def _project_out():
        out = jnp.dot(ctx_scr[...], wp_ref[...],
                      preferred_element_type=jnp.float32)          # (Tq, C)
        o_ref[0] = (out + bp_ref[...]).astype(o_ref.dtype)


def cross_attention(x, y, wq, wkv, wp, bp, *, num_heads, block_q=None,
                    compute_dtype=None, approx_recip=None,
                    vmem_limit_bytes=None):
    """x, y: (B, N, C); weights in PyTorch nn.Linear layout (out, in)."""
    B, N, C = x.shape
    assert y.shape == (B, N, C)
    assert C % num_heads == 0
    assert C % 128 == 0, "channel dim must be a multiple of 128 (lane tiling)"
    hd = C // num_heads
    scale = hd ** (-0.5)

    # Head grouping: keep every per-head lane slice of the scratches aligned.
    if hd % 128 == 0:
        heads_per_step = 1
    elif 128 % hd == 0:
        heads_per_step = 128 // hd
        assert num_heads % heads_per_step == 0, (
            "num_heads must be divisible by the head group size")
    else:
        raise ValueError(f"unsupported head_dim {hd}")
    num_groups = num_heads // heads_per_step

    if block_q is None:
        block_q = N
        for cand in (512, 256, 128):
            if N % cand == 0:
                block_q = cand
                break
    assert N % block_q == 0, "block_q must divide N"
    nq = N // block_q

    if compute_dtype is None:
        compute_dtype = x.dtype
    cd = jnp.dtype(compute_dtype)
    if approx_recip is None:
        # EUP-approximate reciprocal only for the low-precision path.
        approx_recip = cd != jnp.dtype(jnp.float32)

    # One-time XLA-side preprocessing: transpose to (in, out), split the
    # key_value weight, fold the softmax scale into Wq, pre-cast everything
    # (including x, y) to the compute dtype so kernel DMAs are already narrow.
    wq_t = (wq * scale).T.astype(cd)      # (C, C)
    wk_t = wkv[:C, :].T.astype(cd)        # (C, C)
    wv_t = wkv[C:, :].T.astype(cd)        # (C, C)
    wp_t = wp.T.astype(cd)                # (C, C)
    bp2 = bp.reshape(1, C).astype(jnp.float32)
    x_c = x.astype(cd)
    y_c = y.astype(cd)

    # VMEM budget: double-buffered inputs/outputs + persistent scratch.
    if vmem_limit_bytes is None:
        isz = cd.itemsize
        est = (2 * block_q * C * isz                  # x (double-buffered)
               + 2 * N * C * isz                      # y
               + 2 * 4 * C * C * isz                  # resident weights
               + 2 * C * 4                            # bias
               + 2 * block_q * C * x.dtype.itemsize   # out
               + 2 * block_q * C * isz                # Q + context scratch
               + 2 * N * C * isz)                     # K + V scratch
        vmem_limit_bytes = int(min(max(2 * est, 32 << 20), 128 << 20))

    kernel = functools.partial(_cross_attention_kernel,
                               head_dim=hd,
                               heads_per_step=heads_per_step,
                               approx_recip=approx_recip)

    return pl.pallas_call(
        kernel,
        out_shape=jax.ShapeDtypeStruct((B, N, C), x.dtype),
        grid_spec=pltpu.PrefetchScalarGridSpec(
            num_scalar_prefetch=0,
            grid=(B, nq, num_groups),                 # head groups innermost
            in_specs=[
                pl.BlockSpec((1, block_q, C), lambda b, qi, g: (b, qi, 0)),  # x
                pl.BlockSpec((1, N, C), lambda b, qi, g: (b, 0, 0)),         # y
                pl.BlockSpec((C, C), lambda b, qi, g: (0, 0)),   # Wq.T * scale
                pl.BlockSpec((C, C), lambda b, qi, g: (0, 0)),   # Wk.T
                pl.BlockSpec((C, C), lambda b, qi, g: (0, 0)),   # Wv.T
                pl.BlockSpec((C, C), lambda b, qi, g: (0, 0)),   # Wp.T
                pl.BlockSpec((1, C), lambda b, qi, g: (0, 0)),   # proj bias
            ],
            out_specs=pl.BlockSpec((1, block_q, C), lambda b, qi, g: (b, qi, 0)),
            scratch_shapes=[
                pltpu.VMEM((block_q, C), cd),   # Q (per query tile)
                pltpu.VMEM((N, C), cd),         # K (persistent per batch elem)
                pltpu.VMEM((N, C), cd),         # V (persistent per batch elem)
                pltpu.VMEM((block_q, C), cd),   # per-head context assembly
            ],
        ),
        compiler_params=pltpu.CompilerParams(
            # qi carries a cross-iteration dependence (K/V written at qi == 0,
            # reused for qi > 0), so only the batch axis may be split across
            # TensorCores.
            dimension_semantics=("parallel", "arbitrary", "arbitrary"),
            vmem_limit_bytes=vmem_limit_bytes),
    )(x_c, y_c, wq_t, wk_t, wv_t, wp_t, bp2)


def cross_attention_ref(x, y, wq, wkv, wp, bp, *, num_heads):
    """Pure-JAX reference matching the PyTorch module (f32, highest precision)."""
    B, N, C = x.shape
    hd = C // num_heads
    scale = hd ** (-0.5)
    with jax.default_matmul_precision("highest"):
        q = (x @ wq.T).reshape(B, N, num_heads, hd).transpose(0, 2, 1, 3) * scale
        kv = (y @ wkv.T).reshape(B, N, 2, num_heads, hd).transpose(2, 0, 3, 1, 4)
        k, v = kv[0], kv[1]
        attn = jax.nn.softmax(q @ k.transpose(0, 1, 3, 2), axis=-1)
        out = (attn @ v).transpose(0, 2, 1, 3).reshape(B, N, C)
        return out @ wp.T + bp


if __name__ == "__main__":
    # Small but TPU-tile-friendly config: head_dim = 128, C multiple of 128.
    # block_q = 128 -> nq = 2, so the K/V-reuse-across-query-tiles path and
    # the per-head context assembly across head groups are both exercised.
    B, N, C, H = 2, 256, 256, 2

    key = jax.random.PRNGKey(0)
    kx, ky, kq, kkv, kp, kb = jax.random.split(key, 6)

    x = jax.random.normal(kx, (B, N, C), dtype=jnp.float32)
    y = jax.random.normal(ky, (B, N, C), dtype=jnp.float32)

    # Deterministic synthetic parameters (nn.Linear layout: (out, in)).
    wq = jax.random.normal(kq, (C, C), dtype=jnp.float32) * 0.02      # query, no bias
    wkv = jax.random.normal(kkv, (2 * C, C), dtype=jnp.float32) * 0.02  # key_value, no bias
    wp = jax.random.normal(kp, (C, C), dtype=jnp.float32) * 0.02      # proj weight
    bp = jax.random.normal(kb, (C,), dtype=jnp.float32) * 0.02        # proj bias

    ref = cross_attention_ref(x, y, wq, wkv, wp, bp, num_heads=H)

    # f32 compute path (tight check).
    out_f32 = jax.block_until_ready(
        cross_attention(x, y, wq, wkv, wp, bp, num_heads=H, block_q=128,
                        compute_dtype=jnp.float32))
    np.testing.assert_allclose(np.asarray(out_f32), np.asarray(ref),
                               rtol=1e-4, atol=1e-4)

    # bf16 MXU inputs with f32 accumulation (v5e/v6e/v7x throughput path).
    out_bf16 = jax.block_until_ready(
        cross_attention(x, y, wq, wkv, wp, bp, num_heads=H, block_q=128,
                        compute_dtype=jnp.bfloat16))
    np.testing.assert_allclose(np.asarray(out_bf16), np.asarray(ref),
                               rtol=2e-2, atol=2e-2)

    print("KERNEL_OK")
</pallas_src>

<mosaic_0001>
module attributes {stable_mosaic.version = 11 : i64} {
  func.func @_cross_attention_kernel(%arg0: i32, %arg1: i32, %arg2: i32, %arg3: memref<1x128x256xf32, #tpu.memory_space<vmem>>, %arg4: memref<1x256x256xf32, #tpu.memory_space<vmem>>, %arg5: memref<256x256xf32, #tpu.memory_space<vmem>>, %arg6: memref<256x256xf32, #tpu.memory_space<vmem>>, %arg7: memref<256x256xf32, #tpu.memory_space<vmem>>, %arg8: memref<256x256xf32, #tpu.memory_space<vmem>>, %arg9: memref<1x256xf32, #tpu.memory_space<vmem>>, %arg10: memref<1x128x256xf32, #tpu.memory_space<vmem>>, %arg11: memref<128x256xf32, #tpu.memory_space<vmem>>, %arg12: memref<256x256xf32, #tpu.memory_space<vmem>>, %arg13: memref<256x256xf32, #tpu.memory_space<vmem>>, %arg14: memref<128x256xf32, #tpu.memory_space<vmem>>) attributes {dimension_semantics = [#tpu.dimension_semantics<parallel>, #tpu.dimension_semantics<arbitrary>, #tpu.dimension_semantics<arbitrary>], iteration_bounds = array<i64: 2, 2, 2>, scalar_prefetch = 0 : i64, scratch_operands = 4 : i64, tpu.core_type = #tpu.core_type<tc>, window_params = [{transform_indices = @transform_0, window_bounds = array<i64: 1, 128, 256>}, {transform_indices = @transform_1, window_bounds = array<i64: 1, 256, 256>}, {pipeline_mode = #tpu.pipeline_mode<synchronous>, transform_indices = @transform_2, window_bounds = array<i64: 256, 256>}, {pipeline_mode = #tpu.pipeline_mode<synchronous>, transform_indices = @transform_3, window_bounds = array<i64: 256, 256>}, {pipeline_mode = #tpu.pipeline_mode<synchronous>, transform_indices = @transform_4, window_bounds = array<i64: 256, 256>}, {pipeline_mode = #tpu.pipeline_mode<synchronous>, transform_indices = @transform_5, window_bounds = array<i64: 256, 256>}, {pipeline_mode = #tpu.pipeline_mode<synchronous>, transform_indices = @transform_6, window_bounds = array<i64: 1, 256>}, {transform_indices = @transform_7, window_bounds = array<i64: 1, 128, 256>}]} {
    %c0_i32 = arith.constant 0 : i32
    %0 = arith.cmpi eq, %arg1, %c0_i32 : i32
    %c0_i32_0 = arith.constant 0 : i32
    %1 = arith.cmpi eq, %arg2, %c0_i32_0 : i32
    %2 = arith.andi %0, %1 : i1
    %3 = arith.extui %2 : i1 to i32
    %c0_i32_1 = arith.constant 0 : i32
    %4 = arith.cmpi ne, %3, %c0_i32_1 : i32
    scf.if %4 {
      %c0_12 = arith.constant 0 : index
      %c0_13 = arith.constant 0 : index
      %c0_14 = arith.constant 0 : index
      %34 = vector.load %arg4[%c0_12, %c0_13, %c0_14] : memref<1x256x256xf32, #tpu.memory_space<vmem>>, vector<1x256x256xf32>
      %35 = vector.shape_cast %34 : vector<1x256x256xf32> to vector<256x256xf32>
      %c0_15 = arith.constant 0 : index
      %c0_16 = arith.constant 0 : index
      %36 = vector.load %arg6[%c0_15, %c0_16] : memref<256x256xf32, #tpu.memory_space<vmem>>, vector<256x256xf32>
      %cst_17 = arith.constant dense<0.000000e+00> : vector<256x256xf32>
      %37 = tpu.matmul %35, %36, %cst_17 {dimension_numbers = #tpu.dot_dimension_numbers<[1], [0], [0], [1], [0, 0, 1, 1], [], []>} : vector<256x256xf32>, vector<256x256xf32>, vector<256x256xf32> -> vector<256x256xf32>
      %c0_18 = arith.constant 0 : index
      %c0_19 = arith.constant 0 : index
      %38 = vector.load %arg12[%c0_18, %c0_19] : memref<256x256xf32, #tpu.memory_space<vmem>>, vector<256x256xf32>
      tpu.vector_store %arg12[%c0_18, %c0_19], %37 {strides = array<i32>} : memref<256x256xf32, #tpu.memory_space<vmem>>, vector<256x256xf32>,
      %c0_20 = arith.constant 0 : index
      %c0_21 = arith.constant 0 : index
      %39 = vector.load %arg7[%c0_20, %c0_21] : memref<256x256xf32, #tpu.memory_space<vmem>>, vector<256x256xf32>
      %cst_22 = arith.constant dense<0.000000e+00> : vector<256x256xf32>
      %40 = tpu.matmul %35, %39, %cst_22 {dimension_numbers = #tpu.dot_dimension_numbers<[1], [0], [0], [1], [0, 0, 1, 1], [], []>} : vector<256x256xf32>, vector<256x256xf32>, vector<256x256xf32> -> vector<256x256xf32>
      %c0_23 = arith.constant 0 : index
      %c0_24 = arith.constant 0 : index
      %41 = vector.load %arg13[%c0_23, %c0_24] : memref<256x256xf32, #tpu.memory_space<vmem>>, vector<256x256xf32>
      tpu.vector_store %arg13[%c0_23, %c0_24], %40 {strides = array<i32>} : memref<256x256xf32, #tpu.memory_space<vmem>>, vector<256x256xf32>,
    } else {
    }
    %c0_i32_2 = arith.constant 0 : i32
    %5 = arith.cmpi eq, %arg2, %c0_i32_2 : i32
    %6 = arith.extui %5 : i1 to i32
    %c0_i32_3 = arith.constant 0 : i32
    %7 = arith.cmpi ne, %6, %c0_i32_3 : i32
    scf.if %7 {
      %c0_12 = arith.constant 0 : index
      %c0_13 = arith.constant 0 : index
      %c0_14 = arith.constant 0 : index
      %34 = vector.load %arg3[%c0_12, %c0_13, %c0_14] : memref<1x128x256xf32, #tpu.memory_space<vmem>>, vector<1x128x256xf32>
      %35 = vector.shape_cast %34 : vector<1x128x256xf32> to vector<128x256xf32>
      %c0_15 = arith.constant 0 : index
      %c0_16 = arith.constant 0 : index
      %36 = vector.load %arg5[%c0_15, %c0_16] : memref<256x256xf32, #tpu.memory_space<vmem>>, vector<256x256xf32>
      %cst_17 = arith.constant dense<0.000000e+00> : vector<128x256xf32>
      %37 = tpu.matmul %35, %36, %cst_17 {dimension_numbers = #tpu.dot_dimension_numbers<[1], [0], [0], [1], [0, 0, 1, 1], [], []>} : vector<128x256xf32>, vector<256x256xf32>, vector<128x256xf32> -> vector<128x256xf32>
      %c0_18 = arith.constant 0 : index
      %c0_19 = arith.constant 0 : index
      %38 = vector.load %arg11[%c0_18, %c0_19] : memref<128x256xf32, #tpu.memory_space<vmem>>, vector<128x256xf32>
      tpu.vector_store %arg11[%c0_18, %c0_19], %37 {strides = array<i32>} : memref<128x256xf32, #tpu.memory_space<vmem>>, vector<128x256xf32>,
    } else {
    }
    %c128_i32 = arith.constant 128 : i32
    %8 = arith.muli %arg2, %c128_i32 : i32
    %9 = tpu.assume_multiple %8, 128 : i32
    %c0 = arith.constant 0 : index
    %10 = arith.index_cast %9 : i32 to index
    %11 = vector.load %arg11[%c0, %10] : memref<128x256xf32, #tpu.memory_space<vmem>>, vector<128x128xf32>
    %c0_4 = arith.constant 0 : index
    %12 = arith.index_cast %9 : i32 to index
    %13 = vector.load %arg12[%c0_4, %12] : memref<256x256xf32, #tpu.memory_space<vmem>>, vector<256x128xf32>
    %c0_5 = arith.constant 0 : index
    %14 = arith.index_cast %9 : i32 to index
    %15 = vector.load %arg13[%c0_5, %14] : memref<256x256xf32, #tpu.memory_space<vmem>>, vector<256x128xf32>
    %cst = arith.constant dense<0.000000e+00> : vector<128x256xf32>
    %16 = tpu.matmul %11, %13, %cst {dimension_numbers = #tpu.dot_dimension_numbers<[1], [1], [0], [0], [0, 0, 1, 0], [], []>} : vector<128x128xf32>, vector<256x128xf32>, vector<128x256xf32> -> vector<128x256xf32>
    %cst_6 = arith.constant dense<0xFF800000> : vector<128xf32>
    %17 = vector.multi_reduction <maximumf>, %16, %cst_6 [1] : vector<128x256xf32> to vector<128xf32>
    %18 = vector.shape_cast %17 : vector<128xf32> to vector<128x1xf32>
    %19 = vector.broadcast %18 : vector<128x1xf32> to vector<128x256xf32>
    %20 = arith.subf %16, %19 : vector<128x256xf32>
    %21 = math.exp %20 : vector<128x256xf32>
    %cst_7 = arith.constant dense<0.000000e+00> : vector<128xf32>
    %22 = vector.multi_reduction <add>, %21, %cst_7 [1] : vector<128x256xf32> to vector<128xf32>
    %23 = vector.shape_cast %22 : vector<128xf32> to vector<128x1xf32>
    %cst_8 = arith.constant dense<0.000000e+00> : vector<128x128xf32>
    %24 = tpu.matmul %21, %15, %cst_8 {dimension_numbers = #tpu.dot_dimension_numbers<[1], [0], [0], [1], [0, 0, 1, 1], [], []>} : vector<128x256xf32>, vector<256x128xf32>, vector<128x128xf32> -> vector<128x128xf32>
    %25 = tpu.reciprocal %23 : vector<128x1xf32> -> vector<128x1xf32>
    %26 = vector.broadcast %25 : vector<128x1xf32> to vector<128x128xf32>
    %27 = arith.mulf %24, %26 : vector<128x128xf32>
    %c0_i32_9 = arith.constant 0 : i32
    %28 = arith.addi %9, %c0_i32_9 : i32
    %c0_10 = arith.constant 0 : index
    %29 = arith.index_cast %28 : i32 to index
    %30 = vector.load %arg14[%c0_10, %29] : memref<128x256xf32, #tpu.memory_space<vmem>>, vector<128x128xf32>
    tpu.vector_store %arg14[%c0_10, %29], %27 {strides = array<i32>} : memref<128x256xf32, #tpu.memory_space<vmem>>, vector<128x128xf32>,
    %c1_i32 = arith.constant 1 : i32
    %31 = arith.cmpi eq, %arg2, %c1_i32 : i32
    %32 = arith.extui %31 : i1 to i32
    %c0_i32_11 = arith.constant 0 : i32
    %33 = arith.cmpi ne, %32, %c0_i32_11 : i32
    scf.if %33 {
      %c0_12 = arith.constant 0 : index
      %c0_13 = arith.constant 0 : index
      %34 = vector.load %arg14[%c0_12, %c0_13] : memref<128x256xf32, #tpu.memory_space<vmem>>, vector<128x256xf32>
      %c0_14 = arith.constant 0 : index
      %c0_15 = arith.constant 0 : index
      %35 = vector.load %arg8[%c0_14, %c0_15] : memref<256x256xf32, #tpu.memory_space<vmem>>, vector<256x256xf32>
      %cst_16 = arith.constant dense<0.000000e+00> : vector<128x256xf32>
      %36 = tpu.matmul %34, %35, %cst_16 {dimension_numbers = #tpu.dot_dimension_numbers<[1], [0], [0], [1], [0, 0, 1, 1], [], []>} : vector<128x256xf32>, vector<256x256xf32>, vector<128x256xf32> -> vector<128x256xf32>
      %c0_17 = arith.constant 0 : index
      %c0_18 = arith.constant 0 : index
      %37 = vector.load %arg9[%c0_17, %c0_18] : memref<1x256xf32, #tpu.memory_space<vmem>>, vector<1x256xf32>
      %38 = vector.broadcast %37 : vector<1x256xf32> to vector<128x256xf32>
      %39 = arith.addf %36, %38 : vector<128x256xf32>
      %c0_19 = arith.constant 0 : index
      %c0_20 = arith.constant 0 : index
      %c0_21 = arith.constant 0 : index
      %40 = vector.load %arg10[%c0_19, %c0_20, %c0_21] : memref<1x128x256xf32, #tpu.memory_space<vmem>>, vector<1x128x256xf32>
      %41 = vector.shape_cast %40 : vector<1x128x256xf32> to vector<128x256xf32>
      %42 = vector.shape_cast %39 : vector<128x256xf32> to vector<1x128x256xf32>
      tpu.vector_store %arg10[%c0_19, %c0_20, %c0_21], %42 {strides = array<i32>} : memref<1x128x256xf32, #tpu.memory_space<vmem>>, vector<1x128x256xf32>,
    } else {
    }
    return
  }
  func.func @transform_0(%arg0: i32, %arg1: i32, %arg2: i32) -> (i32, i32, i32) {
    %c0_i32 = arith.constant 0 : i32
    %c0_i32_0 = arith.constant 0 : i32
    return %arg0, %arg1, %c0_i32 : i32, i32, i32
  }
  func.func @transform_1(%arg0: i32, %arg1: i32, %arg2: i32) -> (i32, i32, i32) {
    %c0_i32 = arith.constant 0 : i32
    %c0_i32_0 = arith.constant 0 : i32
    %c0_i32_1 = arith.constant 0 : i32
    return %arg0, %c0_i32, %c0_i32_0 : i32, i32, i32
  }
  func.func @transform_2(%arg0: i32, %arg1: i32, %arg2: i32) -> (i32, i32) {
    %c0_i32 = arith.constant 0 : i32
    %c0_i32_0 = arith.constant 0 : i32
    %c0_i32_1 = arith.constant 0 : i32
    return %c0_i32, %c0_i32_0 : i32, i32
  }
  func.func @transform_3(%arg0: i32, %arg1: i32, %arg2: i32) -> (i32, i32) {
    %c0_i32 = arith.constant 0 : i32
    %c0_i32_0 = arith.constant 0 : i32
    %c0_i32_1 = arith.constant 0 : i32
    return %c0_i32, %c0_i32_0 : i32, i32
  }
  func.func @transform_4(%arg0: i32, %arg1: i32, %arg2: i32) -> (i32, i32) {
    %c0_i32 = arith.constant 0 : i32
    %c0_i32_0 = arith.constant 0 : i32
    %c0_i32_1 = arith.constant 0 : i32
    return %c0_i32, %c0_i32_0 : i32, i32
  }
  func.func @transform_5(%arg0: i32, %arg1: i32, %arg2: i32) -> (i32, i32) {
    %c0_i32 = arith.constant 0 : i32
    %c0_i32_0 = arith.constant 0 : i32
    %c0_i32_1 = arith.constant 0 : i32
    return %c0_i32, %c0_i32_0 : i32, i32
  }
  func.func @transform_6(%arg0: i32, %arg1: i32, %arg2: i32) -> (i32, i32) {
    %c0_i32 = arith.constant 0 : i32
    %c0_i32_0 = arith.constant 0 : i32
    %c0_i32_1 = arith.constant 0 : i32
    return %c0_i32, %c0_i32_0 : i32, i32
  }
  func.func @transform_7(%arg0: i32, %arg1: i32, %arg2: i32) -> (i32, i32, i32) {
    %c0_i32 = arith.constant 0 : i32
    %c0_i32_0 = arith.constant 0 : i32
    return %arg0, %arg1, %c0_i32 : i32, i32, i32
  }
}

</mosaic_0001>

<bundles_post_ra>
// kernel: tpu_custom_call.1
= control target key start
LH: loop header
LB: loop body
LE: loop exit
PB: predicated region body
PF: predicated region fallthrough
CT: control target
= control target key end

     0   :  { %s4763_s0 = inlined_call_operand.hbm [shape: f32[2,256,256], index: 0, kind: input, shape index: {}]   ;;  %s4764_s1 = inlined_call_operand.hbm [shape: f32[2,256,256], index: 1, kind: input, shape index: {}]   ;;  %s4765_s2 = inlined_call_operand.hbm [shape: f32[256,256], index: 2, kind: input, shape index: {}]   ;;  %s4766_s3 = inlined_call_operand.hbm [shape: f32[256,256], index: 3, kind: input, shape index: {}]   ;;  %s4767_s4 = inlined_call_operand.hbm [shape: f32[256,256], index: 4, kind: input, shape index: {}]   ;;  %s4768_s5 = inlined_call_operand.hbm [shape: f32[256,256], index: 5, kind: input, shape index: {}]   ;;  %s4769_s6 = inlined_call_operand.vmem [shape: f32[1,256], index: 6, kind: input, shape index: {}]   ;;  %s4770_s7 = inlined_call_operand.hbm [shape: f32[2,256,256], index: 7, kind: output, shape index: {}]  }
   0x1   :  { %4789 = sst [smem:[#allocation32_spill]] %s4763_s0 }
   0x2   :  { %4790 = sst [smem:[#allocation33_spill]] %s4764_s1 }
   0x3   :  { %4791 = sst [smem:[#allocation34_spill]] %s4765_s2 }
   0x4   :  { %4792 = sst [smem:[#allocation35_spill]] %s4766_s3 }
   0x5   :  { %4793 = sst [smem:[#allocation36_spill]] %s4767_s4 }
   0x6   :  { %4794 = sst [smem:[#allocation37_spill]] %s4768_s5 }
   0x7   :  { %4795 = sst [smem:[#allocation38_spill]] %s4769_s6 }
   0x8   :  { %4796 = sst [smem:[#allocation39_spill]] %s4770_s7 }
   0x9   :  { %12 = vsyncpa [#allocation7], 0 }
   0xa   :  { %14 = vsyncpa [#allocation7 + $0x1], 0 }
   0xb   :  { %15 = vsyncpa [#allocation10], 0 }
   0xc   :  { %17 = vsyncpa [#allocation10 + $0x1], 0 }
   0xd   :  { %18 = vsyncpa [#allocation13], 0 }
   0xe   :  { %19 = vsyncpa [#allocation16], 0 }
   0xf   :  { %20 = vsyncpa [#allocation8], 0 }
  0x10   :  { %22 = vsyncpa [#allocation8 + $0x1], 0  ;;  %s3891_s24 = smov 0   ;;  %s3893_s25 = smov 0  }
  0x11   :  { %s3895_s26 = smov 0   ;;  %s3897_s27 = smov 0  }
  0x12   :  { %s3899_s28 = smov 0   ;;  %s3901_s29 = smov 0  }
  0x13   :  { %s3903_s30 = smov 0   ;;  %s3905_s8 = smov 0  }
  0x14   :  { %s3907_s9 = smov 0   ;;  %s3909_s10 = smov 0  }
  0x15   :  { %s3911_s11 = smov 0   ;;  %s3913_s12 = smov 0  }
  0x16   :  { %s3915_s13 = smov 0  }
  0x17 LB: > { %4797 = sst [smem:[#allocation24_spill]] %s3814_s30  ;;  %s3955_s14 = sadd.s32 4294967295, %s3838_s13   ;;  %s3838_s13 = sphi %s3915_s13, %s28_s13   ;;  %s3834_s12 = sphi %s3913_s12, %s4865_s12   ;;  %s3830_s11 = sphi %s3911_s11, %s4864_s11   ;;  %s3826_s10 = sphi %s3909_s10, %s4863_s10   ;;  %s3822_s9 = sphi %s3907_s9, %s4862_s9   ;;  %s3818_s8 = sphi %s3905_s8, %s4861_s8   ;;  %s3814_s30 = sphi %s3903_s30, %s4860_s30   ;;  %s3810_s29 = sphi %s3901_s29, %s4859_s29   ;;  %s3806_s28 = sphi %s3899_s28, %s4858_s28   ;;  %s3802_s27 = sphi %s3897_s27, %s4857_s27   ;;  %s3798_s26 = sphi %s3895_s26, %s4856_s26   ;;  %s3794_s25 = sphi %s3893_s25, %s4855_s25   ;;  %s3790_s24 = sphi %s3891_s24, %s4854_s24  }
  0x18   : > { %4798 = sst [smem:[#allocation25_spill]] %s3818_s8  ;;  %p95_p0 = scmp.ne.s32.totalorder %s3794_s25, %s3790_s24 }
  0x19   : > { %4799 = sst [smem:[#allocation26_spill]] %s3822_s9  ;;  %p4772_p1 = scmp.eq.s32.totalorder %s3955_s14, 0 }
  0x1a   : > { %p2681_p3 = scmp.ge.s32.totalorder %s3838_s13, 1  ;;  %p239_p4 = scmp.lt.s32.totalorder %s3838_s13, 9 }
  0x1b   : > { %p3964_p5 = por %p95_p0, %p4772_p1  ;;  %s3840_s17 = smov [#allocation11]  }
  0x1c   : > { %p3968_p6 = pnand %p2681_p3, %p239_p4  ;;  %s251_s18 = sshll.u32 %s3840_s17, 4  ;;  %s252_s18 = int_to_ptr.vmem [resolvable:$true] %s251_s18 }
  0x1d   : > { %s4800_s15 = scalar_select %p3964_p5, 1, 0 }
  0x1e   : > { %s4802_s16 = scalar_select %p3968_p6, 1, 0 }
  0x1f   : > { %4801 = sst [smem:[#allocation27_spill]] %s4800_s15  ;;  %p3270_p7 = pneg %p3968_p6 }
  0x20   : > { %4803 = sst [smem:[#allocation28_spill]] %s4802_s16  ;;  %s3841_s20 = smov [#allocation12]  }
  0x21   : > { %p3976_p8 = pnand %p3270_p7, %p4772_p1  ;;  %s264_s21 = sshll.u32 %s3841_s20, 4  ;;  %s3980_s21 = int_to_ptr.vmem [resolvable:$true] %s264_s21 }
  0x22   : > { %s4805_s2 = sld [smem:[#allocation34_spill]] }
  0x23   : > { %p3990_p10 = pneg %p3976_p8 }
  0x28   : > { %s3512_s24 = scalar_lea.hbm %s4805_s2, 8192 }
  0x29   : > { %p3513_p9 = scmp.ne.s32.totalorder %s4805_s2, %s3512_s24  ;;  %p3519_p13 = scmp.lt.u32.totalorder %s3512_s24, %s4805_s2 }
  0x2b   : > { %p3515_p11 = pnand %p3990_p10, %p3513_p9 }
  0x2d   : > { %p3516_p12 = pneg %p3515_p11 }
  0x2f   : > { %p3521_p0 = pnand %p3519_p13, %p3516_p12 }
  0x31   : > { %3524 = shalt.err (!%p3521_p0)
}
  0x32   : > { %s3525_s22 = scalar_lea.vmem %s252_s18, 8192  ;;  %p3533_p1 = scmp.lt.s32.totalorder %s252_s18, %s252_s18 }
  0x33   : > { %p3526_p3 = scmp.ne.s32.totalorder %s252_s18, %s3525_s22  ;;  %p3534_p2 = scmp.lt.s32.totalorder %s3525_s22, %s3525_s22 }
  0x35   : > { %p3528_p4 = pnand %p3526_p3, %p3990_p10  ;;  %p3535_p5 = por %p3534_p2, %p3533_p1 }
  0x37   : > { %p3529_p7 = pneg %p3528_p4 }
  0x39   : > { %p3536_p6 = pnand %p3535_p5, %p3529_p7 }
  0x3b   : > { %3539 = shalt.err (!%p3536_p6)
}
  0x3c   : > { %s4780_s7 = smov 256   ;;  %s4782_s9 = smov 16  }
  0x3d   : > { %3273 = dma.hbm_to_vmem [thread:$0]  (!%p3976_p8), %s4805_s2, 8192, %s252_s18, [#allocation10], %s4780_s7, %s4780_s7, %s4782_s9  }
  0x3e   : > { %s4807_s3 = sld [smem:[#allocation35_spill]] }
  0x44   : > { %s3540_s30 = scalar_lea.hbm %s4807_s3, 8192 }
  0x45   : > { %p3541_p1 = scmp.ne.s32.totalorder %s4807_s3, %s3540_s30  ;;  %p3547_p6 = scmp.lt.u32.totalorder %s3540_s30, %s4807_s3 }
  0x47   : > { %p3543_p2 = pnand %p3541_p1, %p3990_p10 }
  0x49   : > { %p3544_p5 = pneg %p3543_p2 }
  0x4b   : > { %p3549_p9 = pnand %p3547_p6, %p3544_p5 }
  0x4d   : > { %3552 = shalt.err (!%p3549_p9)
}
  0x4e   : > { %s3553_s18 = scalar_lea.vmem %s3980_s21, 8192  ;;  %p3561_p0 = scmp.lt.s32.totalorder %s3980_s21, %s3980_s21 }
  0x4f   : > { %p3554_p11 = scmp.ne.s32.totalorder %s3980_s21, %s3553_s18  ;;  %p3562_p3 = scmp.lt.s32.totalorder %s3553_s18, %s3553_s18 }
  0x51   : > { %p3556_p12 = pnand %p3554_p11, %p3990_p10  ;;  %p3563_p4 = por %p3562_p3, %p3561_p0 }
  0x53   : > { %p3557_p13 = pneg %p3556_p12 }
  0x55   : > { %p3564_p7 = pnand %p3563_p4, %p3557_p13 }
  0x57   : > { %3567 = shalt.err (!%p3564_p7)
}
  0x58   : > { %3276 = dma.hbm_to_vmem [thread:$0]  (!%p3976_p8), %s4807_s3, 8192, %s3980_s21, [#allocation13], %s4780_s7, %s4780_s7, %s4782_s9  }
  0x59   : > { %s3844_s15 = smov [#allocation14]   ;;  %s3845_s6 = smov [#allocation15]  }
  0x5a   : > { %s277_s16 = sshll.u32 %s3844_s15, 4  ;;  %s290_s23 = sshll.u32 %s3845_s6, 4  ;;  %s278_s16 = int_to_ptr.vmem [resolvable:$true] %s277_s16  ;;  %s291_s23 = int_to_ptr.vmem [resolvable:$true] %s290_s23 }
  0x5b   : > { %s4808_s4 = sld [smem:[#allocation36_spill]] }
  0x61   : > { %s3568_s22 = scalar_lea.hbm %s4808_s4, 8192 }
  0x62   : > { %p3569_p1 = scmp.ne.s32.totalorder %s4808_s4, %s3568_s22  ;;  %p3575_p6 = scmp.lt.u32.totalorder %s3568_s22, %s4808_s4 }
  0x64   : > { %p3571_p2 = pnand %p3569_p1, %p3990_p10 }
  0x66   : > { %p3572_p5 = pneg %p3571_p2 }
  0x68   : > { %p3577_p9 = pnand %p3575_p6, %p3572_p5 }
  0x6a   : > { %3580 = shalt.err (!%p3577_p9)
}
  0x6b   : > { %s3581_s21 = scalar_lea.vmem %s278_s16, 8192  ;;  %p3589_p0 = scmp.lt.s32.totalorder %s278_s16, %s278_s16 }
  0x6c   : > { %p3582_p11 = scmp.ne.s32.totalorder %s278_s16, %s3581_s21  ;;  %p3590_p3 = scmp.lt.s32.totalorder %s3581_s21, %s3581_s21 }
  0x6e   : > { %p3584_p12 = pnand %p3582_p11, %p3990_p10  ;;  %p3591_p4 = por %p3590_p3, %p3589_p0 }
  0x70   : > { %p3585_p13 = pneg %p3584_p12 }
  0x72   : > { %p3592_p7 = pnand %p3591_p4, %p3585_p13 }
  0x74   : > { %3595 = shalt.err (!%p3592_p7)
}
  0x75   : > { %3279 = dma.hbm_to_vmem [thread:$0]  (!%p3976_p8), %s4808_s4, 8192, %s278_s16, [#allocation13], %s4780_s7, %s4780_s7, %s4782_s9  }
  0x76   : > { %s4809_s5 = sld [smem:[#allocation37_spill]] }
  0x7c   : > { %s3596_s6 = scalar_lea.hbm %s4809_s5, 8192 }
  0x7d   : > { %p3597_p1 = scmp.ne.s32.totalorder %s4809_s5, %s3596_s6  ;;  %p3603_p6 = scmp.lt.u32.totalorder %s3596_s6, %s4809_s5 }
  0x7f   : > { %p3599_p2 = pnand %p3597_p1, %p3990_p10 }
  0x81   : > { %p3600_p5 = pneg %p3599_p2 }
  0x83   : > { %p3605_p9 = pnand %p3603_p6, %p3600_p5 }
  0x85   : > { %3608 = shalt.err (!%p3605_p9)
}
  0x86   : > { %s3609_s30 = scalar_lea.vmem %s291_s23, 8192  ;;  %p3617_p0 = scmp.lt.s32.totalorder %s291_s23, %s291_s23 }
  0x87   : > { %p3610_p11 = scmp.ne.s32.totalorder %s291_s23, %s3609_s30  ;;  %p3618_p3 = scmp.lt.s32.totalorder %s3609_s30, %s3609_s30 }
  0x89   : > { %p3612_p12 = pnand %p3610_p11, %p3990_p10  ;;  %p3619_p4 = por %p3618_p3, %p3617_p0 }
  0x8b   : > { %p3613_p13 = pneg %p3612_p12 }
  0x8d   : > { %p3620_p7 = pnand %p3619_p4, %p3613_p13 }
  0x8f   : > { %3623 = shalt.err (!%p3620_p7)
}
  0x90   : > { %3282 = dma.hbm_to_vmem [thread:$0]  (!%p3976_p8), %s4809_s5, 8192, %s291_s23, [#allocation16], %s4780_s7, %s4780_s7, %s4782_s9  }
  0x91   : > { %s2680_s19 = sadd.s32 4294967294, %s3838_s13   ;;  %s40_s17 = sadd.s32 1, %s3826_s10 }
  0x92   : > { %s43_s1 = sadd.s32 1, %s3830_s11  ;;  %p41_p10 = scmp.ge.s32.totalorder %s40_s17, 2 }
  0x93   : > { %s47_s2 = sadd.s32 1, %s3834_s12  ;;  %s56_s8 = sadd.s32 1, %s3810_s29 }
  0x94   : > { %p63_p1 = scmp.ne.s32.totalorder %s3810_s29, %s3806_s28  ;;  %s4867_s17 = smov (%p41_p10, %s40_s17), 0 }
  0x95   : > { %4810 = sst [smem:[#allocation29_spill]] %s4867_s17  ;;  %s4869_s1 = smov (!%p41_p10, %s43_s1), %s3830_s11 }
  0x96   : > { %p4787_p2 = scmp.eq.s32.totalorder %s3838_s13, 0  ;;  %p69_p5 = scmp.ne.s32.totalorder %s3806_s28, %s3802_s27 }
  0x97   : > { %p45_p6 = scmp.ge.s32.totalorder %s4869_s1, 2  ;;  %p4811_p9 = scmp.eq.s32.totalorder %s3955_s14, 7 }
  0x98   : > { %p4098_p11 = por %p4787_p2, %p63_p1  ;;  %p4814_p12 = scmp.eq.s32.totalorder %s3955_s14, 0 }
  0x99   : > { %p4092_p8 = por %p4811_p9, %p63_p1  ;;  %s4871_s1 = smov (%p45_p6, %s4869_s1), 0 }
  0x9a   : > { %p4104_p13 = por %p4814_p12, %p69_p5  ;;  %4816 = sst [smem:[#allocation30_spill]] %s4871_s1 }
  0x9b   : > { %s4812_s23 = scalar_select %p4092_p8, 1, 0 }
  0x9c   : > { %s4873_s2 = smov (!%p45_p6, %s47_s2), %s3834_s12  ;;  %s52_s24 = ssub.s32 %s3830_s11, %s4871_s1 }
  0x9d   : > { %p232_p0 = scmp.eq.s32.totalorder %s2680_s19, 7  ;;  %p49_p3 = scmp.ge.s32.totalorder %s4873_s2, 2 }
  0x9e   : > { %p4786_p4 = scmp.lt.s32.totalorder %s3838_s13, 8  ;;  %s307_s22 = sand.u32 1, %s3810_s29  }
  0x9f   : > { %p4114_p7 = por %p232_p0, %p69_p5  ;;  %s4875_s2 = smov (%p49_p3, %s4873_s2), 0 }
  0xa0   : > { %4818 = sst [smem:[#allocation31_spill]] %s4875_s2  ;;  %s2687_s18 = sshll.u32 %s307_s22, 8 }
  0xa1   : > { %s4817_s20 = scalar_select %p4114_p7, 1, 0 }
  0xa2   : > { %s4123_s30 = ssub.s32 %s3834_s12, %s4875_s2  ;;  %s2717_s21 = sshll.u32 %s3830_s11, 5 }
  0xa3   : > { %s53_s16 = sor.u32 %s52_s24, %s4123_s30  ;;  %s2690_s19 = sshll.u32 %s3834_s12, 6 }
  0xa4   : > { %p54_p1 = scmp.eq.s32.totalorder %s53_s16, 0  ;;  %s311_s7 = scalar_lea.vmem [#allocation6], %s2687_s18 }
  0xa5   : > { %s321_s9 = sshll.u32 %s311_s7, 4  ;;  %s318_s4 = sadd.s32 %s2717_s21, %s2690_s19  ;;  %s4132_s9 = int_to_ptr.vmem [resolvable:$true] %s321_s9 }
  0xa6   : > { %s4130_s3 = scalar_select %p54_p1, %s3810_s29, %s56_s8  }
  0xa7   : > { %s2691_s5 = sshll.u32 %s318_s4, 7  ;;  %p4138_p5 = pnand %p4786_p4, %p4098_p11 }
  0xa8   : > { %s4820_s0 = sld [smem:[#allocation32_spill]]  ;;  %s4147_s7 = scalar_lea.sflag [#allocation7], %s307_s22 }
  0xa9   : > { %p3626_p9 = pneg %p4138_p5 }
  0xae   : > { %s4145_s16 = scalar_lea.hbm %s4820_s0, %s2691_s5  ;;  %s3629_s15 = scalar_lea.hbm %s4820_s0, 16384 }
  0xaf   : > { %s3624_s4 = scalar_lea.hbm %s4145_s16, 4096  ;;  %p3630_p0 = scmp.lt.u32.totalorder %s4145_s16, %s4820_s0 }
  0xb0   : > { %p3625_p6 = scmp.ne.s32.totalorder %s4145_s16, %s3624_s4  ;;  %p3631_p3 = scmp.lt.u32.totalorder %s3629_s15, %s3624_s4 }
  0xb1   : > { %p3633_p4 = scmp.lt.u32.totalorder %s3624_s4, %s4145_s16 }
  0xb2   : > { %p3627_p11 = pnand %p3626_p9, %p3625_p6  ;;  %p3632_p1 = por %p3631_p3, %p3630_p0 }
  0xb4   : > { %p3628_p12 = pneg %p3627_p11  ;;  %p3634_p2 = por %p3633_p4, %p3632_p1 }
  0xb6   : > { %p3635_p10 = pnand %p3634_p2, %p3628_p12 }
  0xb8   : > { %3638 = shalt.err (!%p3635_p10)
}
  0xb9   : > { %s3639_s22 = scalar_lea.vmem %s4132_s9, 4096  ;;  %s3846_s21 = smov [#allocation6]  }
  0xba   : > { %p3640_p6 = scmp.ne.s32.totalorder %s4132_s9, %s3639_s22  ;;  %s3644_s19 = sshll.u32 %s3846_s21, 4  ;;  %s3645_s19 = int_to_ptr.vmem [resolvable:$false] %s3644_s19 }
  0xbb   : > { %s3646_s24 = scalar_lea.vmem %s3645_s19, 8192  ;;  %p3647_p8 = scmp.lt.s32.totalorder %s4132_s9, %s3645_s19 }
  0xbc   : > { %p3642_p11 = pnand %p3640_p6, %p3626_p9  ;;  %p3648_p0 = scmp.lt.s32.totalorder %s3646_s24, %s3639_s22 }
  0xbe   : > { %p3643_p7 = pneg %p3642_p11  ;;  %p3649_p3 = por %p3648_p0, %p3647_p8 }
  0xc0   : > { %p3650_p4 = pnand %p3649_p3, %p3643_p7 }
  0xc2   : > { %3653 = shalt.err (!%p3650_p4)
}
  0xc3   : > { %s4821_s4 = smov 16   ;;  %s4822_s8 = smov 256  }
  0xc4   : > { %3286 = dma.hbm_to_vmem [thread:$0]  (!%p4138_p5), %s4145_s16, 4096, %s4132_s9, %s4147_s7, %s4822_s8, %s4822_s8, %s4821_s4  }
  0xc5   : > { %s82_s1 = sadd.s32 1, %s3798_s26  ;;  %p89_p2 = scmp.ne.s32.totalorder %s3798_s26, %s3794_s25 }
  0xc6   : > { %p4823_p8 = scmp.eq.s32.totalorder %s4123_s30, 0  ;;  %p4824_p7 = scmp.eq.s32.totalorder %s3838_s13, 0 }
  0xc7   : > { %s331_s15 = sand.u32 1, %s3838_s13   ;;  %s333_s5 = sand.u32 1, %s3798_s26  }
  0xc8   : > { %s4184_s2 = scalar_select %p4823_p8, %s3798_s26, %s82_s1  }
  0xc9   : > { %p91_p10 = por %p89_p2, %p4824_p7  ;;  %s2692_s18 = sshll.u32 %s333_s5, 9 }
  0xca   : > { %s2718_s22 = sshll.u32 %s3834_s12, 13  ;;  %s4825_s24 = sld [smem:[#allocation33_spill]] }
  0xcb   : > { %s335_s9 = scalar_lea.vmem [#allocation9], %s2692_s18  ;;  %p4827_p5 = scmp.lt.s32.totalorder %s3838_s13, 8 }
  0xcc   : > { %s342_s16 = sshll.u32 %s335_s9, 4  ;;  %s4204_s7 = scalar_lea.sflag [#allocation10], %s331_s15  ;;  %s4202_s16 = int_to_ptr.vmem [resolvable:$true] %s342_s16 }
  0xcd   : > { %p4198_p9 = pnand %p4827_p5, %p91_p10 }
  0xcf   : > { %p3656_p1 = pneg %p4198_p9 }
  0xd0   : > { %s4826_s0 = smov %s4825_s24  ;;  %s4194_s17 = scalar_lea.hbm %s4825_s24, %s2718_s22 }
  0xd1   : > { %s3654_s1 = scalar_lea.hbm %s4194_s17, 8192  ;;  %s3659_s22 = scalar_lea.hbm %s4826_s0, 16384 }
  0xd2   : > { %p3655_p12 = scmp.ne.s32.totalorder %s4194_s17, %s3654_s1  ;;  %p3660_p0 = scmp.lt.u32.totalorder %s4194_s17, %s4826_s0 }
  0xd3   : > { %p3661_p3 = scmp.lt.u32.totalorder %s3659_s22, %s3654_s1  ;;  %p3663_p2 = scmp.lt.u32.totalorder %s3654_s1, %s4194_s17 }
  0xd4   : > { %p3657_p6 = pnand %p3656_p1, %p3655_p12 }
  0xd5   : > { %p3662_p4 = por %p3661_p3, %p3660_p0 }
  0xd6   : > { %p3658_p11 = pneg %p3657_p6 }
  0xd7   : > { %p3664_p8 = por %p3663_p2, %p3662_p4 }
  0xd9   : > { %p3665_p7 = pnand %p3664_p8, %p3658_p11 }
  0xdb   : > { %3668 = shalt.err (!%p3665_p7)
}
  0xdc   : > { %s3669_s15 = scalar_lea.vmem %s4202_s16, 8192  ;;  %s3847_s24 = smov [#allocation9]  }
  0xdd   : > { %p3670_p10 = scmp.ne.s32.totalorder %s4202_s16, %s3669_s15  ;;  %s3674_s9 = sshll.u32 %s3847_s24, 4  ;;  %s3675_s9 = int_to_ptr.vmem [resolvable:$false] %s3674_s9 }
  0xde   : > { %s3676_s5 = scalar_lea.vmem %s3675_s9, 16384  ;;  %p3677_p6 = scmp.lt.s32.totalorder %s4202_s16, %s3675_s9 }
  0xdf   : > { %p3672_p5 = pnand %p3670_p10, %p3656_p1  ;;  %p3678_p0 = scmp.lt.s32.totalorder %s3676_s5, %s3669_s15 }
  0xe1   : > { %p3673_p12 = pneg %p3672_p5  ;;  %p3679_p3 = por %p3678_p0, %p3677_p6 }
  0xe3   : > { %p3680_p4 = pnand %p3679_p3, %p3673_p12 }
  0xe5   : > { %3683 = shalt.err (!%p3680_p4)
}
  0xe6   : > { %3289 = dma.hbm_to_vmem [thread:$0]  (!%p4198_p9), %s4194_s17, 8192, %s4202_s16, %s4204_s7, %s4822_s8, %s4822_s8, %s4821_s4  }
  0xe7   : > { %s4829_s1 = sld [smem:[#allocation28_spill]] }
  0xed   : > { %p4830_p1 = scmp.ne.s32.totalorder %s4829_s1, 0 }
  0xee   : > { %s4238_s18 = sand.u32 (!%p4830_p1), 1, %s3806_s28  }
  0xef   : > { %354 = sbr.rel (%p4830_p1) target bundleno = 2028 (0x7ec), region = 48  ;;  %s2696_s22 = sshll.u32 (!%p4830_p1), %s4238_s18, 8 }
  0xf0   : > { %s357_s21 = scalar_lea.sflag (!%p4830_p1), [#allocation7], %s4238_s18  ;;  %s4242_s19 = scalar_lea.vmem (!%p4830_p1), [#allocation6], %s2696_s22 }
  0xf6   : > { %3765 = dma.done.wait (%p4104_p13), %s357_s21, 4096  }
  0xf7   : > { %3767 = vsyncadd (%p4104_p13), %s357_s21, 4294963200  ;;  %s4831_s17 = sld [smem:[#allocation27_spill]]  ;;  %s365_s4 = sand.u32 1, %s3955_s14  }
  0xf8   : > { %s367_s8 = sand.u32 1, %s3794_s25   ;;  %s366_s30 = scalar_lea.sflag [#allocation10], %s365_s4 }
  0xf9   : > { %s2697_s16 = sshll.u32 %s367_s8, 9 }
  0xfa   : > { %s4250_s7 = scalar_lea.vmem [#allocation9], %s2697_s16 }
  0xfd   : > { %p4832_p9 = scmp.ne.s32.totalorder %s4831_s17, 0 }
  0xff   : > { %3769 = dma.done.wait (%p4832_p9), %s366_s30, 8192  }
 0x100   : > { %3771 = vsyncadd (%p4832_p9), %s366_s30, 4294959104  ;;  %p4833_p11 = scmp.eq.s32.totalorder %s3955_s14, 0 }
 0x102   : > { %3773 = dma.done.wait (%p4833_p11), [#allocation10], 8192   ;;  %p4834_p2 = pmov %p4833_p11 }
 0x104   : > { %3775 = vsyncadd (%p4834_p2), [#allocation10], 4294959104  ;;  %p4835_p13 = pmov %p4834_p2 }
 0x105   : > { %p4836_p8 = pmov %p4834_p2 }
 0x106   : > { %3777 = dma.done.wait (%p4835_p13), [#allocation13], 16384  }
 0x107   : > { %3779 = vsyncadd (%p4836_p8), [#allocation13], 4294950912  ;;  %p4837_p7 = pmov %p4834_p2 }
 0x108   : > { %p4838_p10 = pmov %p4834_p2 }
 0x109   : > { %3781 = dma.done.wait (%p4837_p7), [#allocation16], 8192  }
 0x10a   : > { %3783 = vsyncadd (%p4838_p10), [#allocation16], 4294959104  ;;  %s4839_s6 = sld [smem:[#allocation25_spill]]  ;;  %s4840_s15 = sld [smem:[#allocation24_spill]] }
 0x10b   : > { %s4270_s24 = scalar_lea.vmem [#allocation17], %s2696_s22 }
 0x110   : > { %p423_p5 = scmp.eq.s32.totalorder %s4839_s6, 0  ;;  %p424_p12 = scmp.eq.s32.totalorder %s4840_s15, 0 }
 0x112   : > { %p425_p6 = pnand %p424_p12, %p423_p5 }
 0x113   : > { %v494_v0 = vld [vmem:[#allocation12 + $0x8] sm:$0xff] (!%p425_p6)  ;;  %v496_v1 = vld [vmem:[#allocation12 + $0x18] sm:$0xff] (!%p425_p6)  ;;  %v493_v5 = vld [vmem:[#allocation12] sm:$0xff] (!%p425_p6) }
 0x114   : > { %428 = sbr.rel (%p425_p6) target bundleno = 681 (0x2a9), region = 76  ;;  %v879_v2 = vld [vmem:[#allocation14 + $0x8] sm:$0xff] (!%p425_p6)  ;;  %v2864_v3 = vpack.c.bf16 (!%p425_p6), %v496_v1, %v494_v0  ;;  %v881_v4 = vld [vmem:[#allocation14 + $0x18] sm:$0xff] (!%p425_p6)  ;;  %v495_v6 = vld [vmem:[#allocation12 + $0x10] sm:$0xff] (!%p425_p6) }
 0x115   : > { %v2928_v7 = vpack.c.bf16 (!%p425_p6), %v881_v4, %v879_v2  ;;  %v2866_v8 = vpack.c.bf16 (!%p425_p6), %v495_v6, %v493_v5  ;;  %v878_v9 = vld [vmem:[#allocation14] sm:$0xff] (!%p425_p6)  ;;  %v880_v10 = vld [vmem:[#allocation14 + $0x10] sm:$0xff] (!%p425_p6)  ;;  %v498_v11 = vld [vmem:[#allocation12 + $0x28] sm:$0xff] (!%p425_p6) }
 0x116   : > { %2865 = vmatprep.subr.bf16.mxu0 (!%p425_p6), %v2864_v3  ;;  %v2930_v12 = vpack.c.bf16 (!%p425_p6), %v880_v10, %v878_v9  ;;  %v500_v13 = vld [vmem:[#allocation12 + $0x38] sm:$0xff] (!%p425_p6)  ;;  %v883_v14 = vld [vmem:[#allocation14 + $0x28] sm:$0xff] (!%p425_p6)  ;;  %v497_v18 = vld [vmem:[#allocation12 + $0x20] sm:$0xff] (!%p425_p6) }
 0x117   : > { %v885_v15 = vld [vmem:[#allocation14 + $0x38] sm:$0xff] (!%p425_p6)  ;;  %2929 = vmatprep.subr.bf16.mxu1 (!%p425_p6), %v2928_v7  ;;  %2867 = vmatpush1.bf16.msra.mxu0 (!%p425_p6), %v2866_v8  ;;  %v2868_v16 = vpack.c.bf16 (!%p425_p6), %v500_v13, %v498_v11  ;;  %v499_v19 = vld [vmem:[#allocation12 + $0x30] sm:$0xff] (!%p425_p6)  ;;  %v882_v20 = vld [vmem:[#allocation14 + $0x20] sm:$0xff] (!%p425_p6) }
 0x118   : > { %v2932_v17 = vpack.c.bf16 (!%p425_p6), %v885_v15, %v883_v14  ;;  %2931 = vmatpush1.bf16.msra.mxu1 (!%p425_p6), %v2930_v12  ;;  %v2870_v21 = vpack.c.bf16 (!%p425_p6), %v499_v19, %v497_v18  ;;  %v884_v22 = vld [vmem:[#allocation14 + $0x30] sm:$0xff] (!%p425_p6)  ;;  %v502_v23 = vld [vmem:[#allocation12 + $0x48] sm:$0xff] (!%p425_p6)  ;;  %v504_v24 = vld [vmem:[#allocation12 + $0x58] sm:$0xff] (!%p425_p6) }
 0x119   : > { %2869 = vmatprep.subr.bf16.mxu0 (!%p425_p6), %v2868_v16  ;;  %v2934_v25 = vpack.c.bf16 (!%p425_p6), %v884_v22, %v882_v20  ;;  %v2872_v26 = vpack.c.bf16 (!%p425_p6), %v504_v24, %v502_v23  ;;  %v887_v27 = vld [vmem:[#allocation14 + $0x48] sm:$0xff] (!%p425_p6)  ;;  %v889_v28 = vld [vmem:[#allocation14 + $0x58] sm:$0xff] (!%p425_p6)  ;;  %v501_v29 = vld [vmem:[#allocation12 + $0x40] sm:$0xff] (!%p425_p6) }
 0x11a   : > { %2933 = vmatprep.subr.bf16.mxu1 (!%p425_p6), %v2932_v17  ;;  %v2936_v30 = vpack.c.bf16 (!%p425_p6), %v889_v28, %v887_v27  ;;  %v503_v31 = vld [vmem:[#allocation12 + $0x50] sm:$0xff] (!%p425_p6)  ;;  %v886_v32 = vld [vmem:[#allocation14 + $0x40] sm:$0xff] (!%p425_p6)  ;;  %v506_v35 = vld [vmem:[#allocation12 + $0x68] sm:$0xff] (!%p425_p6) }
 0x11b   : > { %v888_v33 = vld [vmem:[#allocation14 + $0x50] sm:$0xff]  ;;  %2871 = vmatpush1.bf16.msra.mxu0 %v2870_v21  ;;  %v2874_v34 = vpack.c.bf16 %v503_v31, %v501_v29  ;;  %v508_v36 = vld [vmem:[#allocation12 + $0x78] sm:$0xff]  ;;  %v891_v37 = vld [vmem:[#allocation14 + $0x68] sm:$0xff] }
 0x11c   : > { %2935 = vmatpush1.bf16.msra.mxu1 %v2934_v25  ;;  %2873 = vmatprep.subr.bf16.mxu0 %v2872_v26  ;;  %v2938_v38 = vpack.c.bf16 %v888_v33, %v886_v32  ;;  %v2876_v39 = vpack.c.bf16 %v508_v36, %v506_v35  ;;  %v893_v40 = vld [vmem:[#allocation14 + $0x78] sm:$0xff]  ;;  %v505_v41 = vld [vmem:[#allocation12 + $0x60] sm:$0xff]  ;;  %v507_v42 = vld [vmem:[#allocation12 + $0x70] sm:$0xff] }
 0x11d   : > { %2937 = vmatprep.subr.bf16.mxu1 %v2936_v30  ;;  %v2940_v43 = vpack.c.bf16 %v893_v40, %v891_v37  ;;  %v890_v44 = vld [vmem:[#allocation14 + $0x60] sm:$0xff]  ;;  %v892_v45 = vld [vmem:[#allocation14 + $0x70] sm:$0xff]  ;;  %v510_v46 = vld [vmem:[#allocation12 + $0x88] sm:$0xff]  ;;  %v2878_v50 = vpack.c.bf16 %v507_v42, %v505_v41 }
 0x11e   : > { %v512_v47 = vld [vmem:[#allocation12 + $0x98] sm:$0xff]  ;;  %v895_v48 = vld [vmem:[#allocation14 + $0x88] sm:$0xff]  ;;  %v2942_v51 = vpack.c.bf16 %v892_v45, %v890_v44  ;;  %v509_v53 = vld [vmem:[#allocation12 + $0x80] sm:$0xff] }
 0x11f   : > { %v897_v49 = vld [vmem:[#allocation14 + $0x98] sm:$0xff]  ;;  %2875 = vmatpush1.bf16.msra.mxu0 %v2874_v34  ;;  %v2880_v52 = vpack.c.bf16 %v512_v47, %v510_v46  ;;  %v511_v54 = vld [vmem:[#allocation12 + $0x90] sm:$0xff]  ;;  %v894_v55 = vld [vmem:[#allocation14 + $0x80] sm:$0xff] }
 0x120   : > { %2939 = vmatpush1.bf16.msra.mxu1 %v2938_v38  ;;  %2877 = vmatprep.subr.bf16.mxu0 %v2876_v39  ;;  %v2944_v56 = vpack.c.bf16 %v897_v49, %v895_v48  ;;  %v896_v57 = vld [vmem:[#allocation14 + $0x90] sm:$0xff]  ;;  %v514_v58 = vld [vmem:[#allocation12 + $0xa8] sm:$0xff]  ;;  %v516_v59 = vld [vmem:[#allocation12 + $0xb8] sm:$0xff]  ;;  %v2882_v62 = vpack.c.bf16 %v511_v54, %v509_v53 }
 0x121   : > { %2941 = vmatprep.subr.bf16.mxu1 %v2940_v43  ;;  %v899_v60 = vld [vmem:[#allocation14 + $0xa8] sm:$0xff]  ;;  %v901_v61 = vld [vmem:[#allocation14 + $0xb8] sm:$0xff]  ;;  %v2946_v63 = vpack.c.bf16 %v896_v57, %v894_v55  ;;  %v2884_v0 = vpack.c.bf16 %v516_v59, %v514_v58  ;;  %v513_v1 = vld [vmem:[#allocation12 + $0xa0] sm:$0xff] }
 0x122   : > { %v515_v2 = vld [vmem:[#allocation12 + $0xb0] sm:$0xff]  ;;  %v898_v3 = vld [vmem:[#allocation14 + $0xa0] sm:$0xff]  ;;  %v2948_v4 = vpack.c.bf16 %v901_v61, %v899_v60  ;;  %v518_v6 = vld [vmem:[#allocation12 + $0xc8] sm:$0xff] }
 0x123   : > { %2879 = vmatpush1.bf16.msra.mxu0 %v2878_v50  ;;  %v900_v5 = vld [vmem:[#allocation14 + $0xb0] sm:$0xff]  ;;  %v520_v7 = vld [vmem:[#allocation12 + $0xd8] sm:$0xff]  ;;  %v903_v8 = vld [vmem:[#allocation14 + $0xc8] sm:$0xff]  ;;  %v2886_v10 = vpack.c.bf16 %v515_v2, %v513_v1 }
 0x124   : > { %2943 = vmatpush1.bf16.msra.mxu1 %v2942_v51  ;;  %2881 = vmatprep.subr.bf16.mxu0 %v2880_v52  ;;  %v905_v9 = vld [vmem:[#allocation14 + $0xd8] sm:$0xff]  ;;  %v2950_v11 = vpack.c.bf16 %v900_v5, %v898_v3  ;;  %v2888_v12 = vpack.c.bf16 %v520_v7, %v518_v6  ;;  %v517_v13 = vld [vmem:[#allocation12 + $0xc0] sm:$0xff]  ;;  %v519_v14 = vld [vmem:[#allocation12 + $0xd0] sm:$0xff] }
 0x125   : > { %2945 = vmatprep.subr.bf16.mxu1 %v2944_v56  ;;  %v902_v15 = vld [vmem:[#allocation14 + $0xc0] sm:$0xff]  ;;  %v2952_v16 = vpack.c.bf16 %v905_v9, %v903_v8  ;;  %v904_v17 = vld [vmem:[#allocation14 + $0xd0] sm:$0xff]  ;;  %v522_v18 = vld [vmem:[#allocation12 + $0xe8] sm:$0xff]  ;;  %v2890_v22 = vpack.c.bf16 %v519_v14, %v517_v13 }
 0x126   : > { %v524_v19 = vld [vmem:[#allocation12 + $0xf8] sm:$0xff]  ;;  %v907_v20 = vld [vmem:[#allocation14 + $0xe8] sm:$0xff]  ;;  %v2954_v23 = vpack.c.bf16 %v904_v17, %v902_v15  ;;  %v521_v25 = vld [vmem:[#allocation12 + $0xe0] sm:$0xff] }
 0x127   : > { %2883 = vmatpush1.bf16.msra.mxu0 %v2882_v62  ;;  %v909_v21 = vld [vmem:[#allocation14 + $0xf8] sm:$0xff]  ;;  %v2892_v24 = vpack.c.bf16 %v524_v19, %v522_v18  ;;  %v523_v26 = vld [vmem:[#allocation12 + $0xf0] sm:$0xff]  ;;  %v906_v27 = vld [vmem:[#allocation14 + $0xe0] sm:$0xff] }
 0x128   : > { %2947 = vmatpush1.bf16.msra.mxu1 %v2946_v63  ;;  %2885 = vmatprep.subr.bf16.mxu0 %v2884_v0  ;;  %v2956_v28 = vpack.c.bf16 %v909_v21, %v907_v20  ;;  %v908_v29 = vld [vmem:[#allocation14 + $0xf0] sm:$0xff]  ;;  %v526_v30 = vld [vmem:[#allocation12 + $0x108] sm:$0xff]  ;;  %v528_v31 = vld [vmem:[#allocation12 + $0x118] sm:$0xff]  ;;  %v2894_v34 = vpack.c.bf16 %v523_v26, %v521_v25 }
 0x129   : > { %2949 = vmatprep.subr.bf16.mxu1 %v2948_v4  ;;  %v911_v32 = vld [vmem:[#allocation14 + $0x108] sm:$0xff]  ;;  %v913_v33 = vld [vmem:[#allocation14 + $0x118] sm:$0xff]  ;;  %v2958_v35 = vpack.c.bf16 %v908_v29, %v906_v27  ;;  %v2896_v36 = vpack.c.bf16 %v528_v31, %v526_v30  ;;  %v525_v37 = vld [vmem:[#allocation12 + $0x100] sm:$0xff] }
 0x12a   : > { %v527_v38 = vld [vmem:[#allocation12 + $0x110] sm:$0xff]  ;;  %v910_v39 = vld [vmem:[#allocation14 + $0x100] sm:$0xff]  ;;  %v2960_v40 = vpack.c.bf16 %v913_v33, %v911_v32  ;;  %v530_v42 = vld [vmem:[#allocation12 + $0x128] sm:$0xff] }
 0x12b   : > { %2887 = vmatpush1.bf16.msra.mxu0 %v2886_v10  ;;  %v912_v41 = vld [vmem:[#allocation14 + $0x110] sm:$0xff]  ;;  %v532_v43 = vld [vmem:[#allocation12 + $0x138] sm:$0xff]  ;;  %v915_v44 = vld [vmem:[#allocation14 + $0x128] sm:$0xff]  ;;  %v2898_v46 = vpack.c.bf16 %v527_v38, %v525_v37 }
 0x12c   : > { %2951 = vmatpush1.bf16.msra.mxu1 %v2950_v11  ;;  %2889 = vmatprep.subr.bf16.mxu0 %v2888_v12  ;;  %v917_v45 = vld [vmem:[#allocation14 + $0x138] sm:$0xff]  ;;  %v2962_v47 = vpack.c.bf16 %v912_v41, %v910_v39  ;;  %v2900_v48 = vpack.c.bf16 %v532_v43, %v530_v42  ;;  %v529_v49 = vld [vmem:[#allocation12 + $0x120] sm:$0xff]  ;;  %v531_v50 = vld [vmem:[#allocation12 + $0x130] sm:$0xff] }
 0x12d   : > { %2953 = vmatprep.subr.bf16.mxu1 %v2952_v16  ;;  %v914_v51 = vld [vmem:[#allocation14 + $0x120] sm:$0xff]  ;;  %v2964_v52 = vpack.c.bf16 %v917_v45, %v915_v44  ;;  %v916_v53 = vld [vmem:[#allocation14 + $0x130] sm:$0xff]  ;;  %v534_v54 = vld [vmem:[#allocation12 + $0x148] sm:$0xff]  ;;  %v2902_v58 = vpack.c.bf16 %v531_v50, %v529_v49 }
 0x12e   : > { %v536_v55 = vld [vmem:[#allocation12 + $0x158] sm:$0xff]  ;;  %v919_v56 = vld [vmem:[#allocation14 + $0x148] sm:$0xff]  ;;  %v2966_v59 = vpack.c.bf16 %v916_v53, %v914_v51  ;;  %v533_v61 = vld [vmem:[#allocation12 + $0x140] sm:$0xff] }
 0x12f   : > { %2891 = vmatpush1.bf16.msra.mxu0 %v2890_v22  ;;  %v921_v57 = vld [vmem:[#allocation14 + $0x158] sm:$0xff]  ;;  %v2904_v60 = vpack.c.bf16 %v536_v55, %v534_v54  ;;  %v535_v62 = vld [vmem:[#allocation12 + $0x150] sm:$0xff]  ;;  %v918_v63 = vld [vmem:[#allocation14 + $0x140] sm:$0xff] }
 0x130   : > { %2955 = vmatpush1.bf16.msra.mxu1 %v2954_v23  ;;  %2893 = vmatprep.subr.bf16.mxu0 %v2892_v24  ;;  %v2968_v0 = vpack.c.bf16 %v921_v57, %v919_v56  ;;  %v920_v1 = vld [vmem:[#allocation14 + $0x150] sm:$0xff]  ;;  %v538_v2 = vld [vmem:[#allocation12 + $0x168] sm:$0xff]  ;;  %v540_v3 = vld [vmem:[#allocation12 + $0x178] sm:$0xff]  ;;  %v2906_v6 = vpack.c.bf16 %v535_v62, %v533_v61 }
 0x131   : > { %2957 = vmatprep.subr.bf16.mxu1 %v2956_v28  ;;  %v923_v4 = vld [vmem:[#allocation14 + $0x168] sm:$0xff]  ;;  %v925_v5 = vld [vmem:[#allocation14 + $0x178] sm:$0xff]  ;;  %v537_v7 = vld [vmem:[#allocation12 + $0x160] sm:$0xff]  ;;  %v2970_v8 = vpack.c.bf16 %v920_v1, %v918_v63  ;;  %v2908_v9 = vpack.c.bf16 %v540_v3, %v538_v2 }
 0x132   : > { %v539_v10 = vld [vmem:[#allocation12 + $0x170] sm:$0xff]  ;;  %v922_v11 = vld [vmem:[#allocation14 + $0x160] sm:$0xff]  ;;  %v2972_v13 = vpack.c.bf16 %v925_v5, %v923_v4  ;;  %v542_v14 = vld [vmem:[#allocation12 + $0x188] sm:$0xff] }
 0x133   : > { %2895 = vmatpush1.bf16.msra.mxu0 %v2894_v34  ;;  %v924_v12 = vld [vmem:[#allocation14 + $0x170] sm:$0xff]  ;;  %v544_v15 = vld [vmem:[#allocation12 + $0x198] sm:$0xff]  ;;  %v430_v16 = vld [vmem:[%s4250_s7 + $0x8] sm:$0xff]  ;;  %v2910_v19 = vpack.c.bf16 %v539_v10, %v537_v7 }
 0x134   : > { %2959 = vmatpush1.bf16.msra.mxu1 %v2958_v35  ;;  %2897 = vmatprep.subr.bf16.mxu0 %v2896_v36  ;;  %v927_v17 = vld [vmem:[#allocation14 + $0x188] sm:$0xff]  ;;  %v929_v18 = vld [vmem:[#allocation14 + $0x198] sm:$0xff]  ;;  %v2974_v20 = vpack.c.bf16 %v924_v12, %v922_v11  ;;  %v2912_v21 = vpack.c.bf16 %v544_v15, %v542_v14  ;;  %v541_v22 = vld [vmem:[#allocation12 + $0x180] sm:$0xff] }
 0x135   : > { %2961 = vmatprep.subr.bf16.mxu1 %v2960_v40  ;;  %621 = vmatprep.mubr.f32.mxu0 %v430_v16  ;;  %v543_v23 = vld [vmem:[#allocation12 + $0x190] sm:$0xff]  ;;  %v926_v24 = vld [vmem:[#allocation14 + $0x180] sm:$0xff]  ;;  %v2976_v25 = vpack.c.bf16 %v929_v18, %v927_v17  ;;  %v546_v27 = vld [vmem:[#allocation12 + $0x1a8] sm:$0xff] }
 0x136   : > { %1006 = vmatprep.mubr.f32.mxu1 %v430_v16  ;;  %v928_v26 = vld [vmem:[#allocation14 + $0x190] sm:$0xff]  ;;  %v548_v28 = vld [vmem:[#allocation12 + $0x1b8] sm:$0xff]  ;;  %v931_v29 = vld [vmem:[#allocation14 + $0x1a8] sm:$0xff]  ;;  %v2914_v31 = vpack.c.bf16 %v543_v23, %v541_v22 }
 0x137   : > { %2899 = vmatpush1.bf16.msra.mxu0 %v2898_v46  ;;  %v933_v30 = vld [vmem:[#allocation14 + $0x1b8] sm:$0xff]  ;;  %v2978_v32 = vpack.c.bf16 %v928_v26, %v926_v24  ;;  %v2916_v33 = vpack.c.bf16 %v548_v28, %v546_v27  ;;  %v545_v34 = vld [vmem:[#allocation12 + $0x1a0] sm:$0xff]  ;;  %v547_v35 = vld [vmem:[#allocation12 + $0x1b0] sm:$0xff] }
 0x138   : > { %2963 = vmatpush1.bf16.msra.mxu1 %v2962_v47  ;;  %2901 = vmatprep.subr.bf16.mxu0 %v2900_v48  ;;  %v930_v36 = vld [vmem:[#allocation14 + $0x1a0] sm:$0xff]  ;;  %v2980_v37 = vpack.c.bf16 %v933_v30, %v931_v29  ;;  %v932_v38 = vld [vmem:[#allocation14 + $0x1b0] sm:$0xff]  ;;  %v550_v39 = vld [vmem:[#allocation12 + $0x1c8] sm:$0xff]  ;;  %v2918_v43 = vpack.c.bf16 %v547_v35, %v545_v34 }
 0x139   : > { %2965 = vmatprep.subr.bf16.mxu1 %v2964_v52  ;;  %v552_v40 = vld [vmem:[#allocation12 + $0x1d8] sm:$0xff]  ;;  %v935_v41 = vld [vmem:[#allocation14 + $0x1c8] sm:$0xff]  ;;  %v2982_v44 = vpack.c.bf16 %v932_v38, %v930_v36  ;;  %v549_v46 = vld [vmem:[#allocation12 + $0x1c0] sm:$0xff] }
 0x13a   : > { %v937_v42 = vld [vmem:[#allocation14 + $0x1d8] sm:$0xff]  ;;  %v2920_v45 = vpack.c.bf16 %v552_v40, %v550_v39  ;;  %v551_v47 = vld [vmem:[#allocation12 + $0x1d0] sm:$0xff]  ;;  %v934_v48 = vld [vmem:[#allocation14 + $0x1c0] sm:$0xff] }
 0x13b   : > { %2903 = vmatpush1.bf16.msra.mxu0 %v2902_v58  ;;  %v2984_v49 = vpack.c.bf16 %v937_v42, %v935_v41  ;;  %v936_v50 = vld [vmem:[#allocation14 + $0x1d0] sm:$0xff]  ;;  %v554_v51 = vld [vmem:[#allocation12 + $0x1e8] sm:$0xff]  ;;  %v556_v52 = vld [vmem:[#allocation12 + $0x1f8] sm:$0xff]  ;;  %v2922_v55 = vpack.c.bf16 %v551_v47, %v549_v46 }
 0x13c   : > { %2967 = vmatpush1.bf16.msra.mxu1 %v2966_v59  ;;  %2905 = vmatprep.subr.bf16.mxu0 %v2904_v60  ;;  %v939_v53 = vld [vmem:[#allocation14 + $0x1e8] sm:$0xff]  ;;  %v941_v54 = vld [vmem:[#allocation14 + $0x1f8] sm:$0xff]  ;;  %v2986_v56 = vpack.c.bf16 %v936_v50, %v934_v48  ;;  %v2924_v57 = vpack.c.bf16 %v556_v52, %v554_v51  ;;  %v553_v58 = vld [vmem:[#allocation12 + $0x1e0] sm:$0xff] }
 0x13d   : > { %2969 = vmatprep.subr.bf16.mxu1 %v2968_v0  ;;  %v555_v59 = vld [vmem:[#allocation12 + $0x1f0] sm:$0xff]  ;;  %v2988_v60 = vpack.c.bf16 %v941_v54, %v939_v53  ;;  %v938_v61 = vld [vmem:[#allocation14 + $0x1e0] sm:$0xff]  ;;  %v432_v2 = vld [vmem:[%s4250_s7 + $0x18] sm:$0xff] }
 0x13e   : > { %v940_v62 = vld [vmem:[#allocation14 + $0x1f0] sm:$0xff]  ;;  %v2926_v63 = vpack.c.bf16 %v555_v59, %v553_v58  ;;  %v429_v1 = vld [vmem:[%s4250_s7] sm:$0xff]  ;;  %v434_v4 = vld [vmem:[%s4250_s7 + $0x28] sm:$0xff] }
 0x13f   : > { %2907 = vmatpush1.bf16.msra.mxu0 %v2906_v6  ;;  %v2990_v0 = vpack.c.bf16 %v940_v62, %v938_v61  ;;  %v431_v3 = vld [vmem:[%s4250_s7 + $0x10] sm:$0xff]  ;;  %v433_v5 = vld [vmem:[%s4250_s7 + $0x20] sm:$0xff]  ;;  %v436_v6 = vld [vmem:[%s4250_s7 + $0x38] sm:$0xff] }
 0x140   : > { %2971 = vmatpush1.bf16.msra.mxu1 %v2970_v8  ;;  %2909 = vmatprep.subr.bf16.mxu0 %v2908_v9  ;;  %v435_v7 = vld [vmem:[%s4250_s7 + $0x30] sm:$0xff]  ;;  %v438_v8 = vld [vmem:[%s4250_s7 + $0x48] sm:$0xff]  ;;  %v437_v9 = vld [vmem:[%s4250_s7 + $0x40] sm:$0xff] }
 0x141   : > { %2973 = vmatprep.subr.bf16.mxu1 %v2972_v13  ;;  %v440_v10 = vld [vmem:[%s4250_s7 + $0x58] sm:$0xff]  ;;  %v439_v11 = vld [vmem:[%s4250_s7 + $0x50] sm:$0xff]  ;;  %v442_v12 = vld [vmem:[%s4250_s7 + $0x68] sm:$0xff] }
 0x142   : > { %v441_v13 = vld [vmem:[%s4250_s7 + $0x60] sm:$0xff]  ;;  %v444_v14 = vld [vmem:[%s4250_s7 + $0x78] sm:$0xff]  ;;  %v443_v15 = vld [vmem:[%s4250_s7 + $0x70] sm:$0xff] }
 0x143   : > { %2911 = vmatpush1.bf16.msra.mxu0 %v2910_v19  ;;  %v446_v16 = vld [vmem:[%s4250_s7 + $0x88] sm:$0xff]  ;;  %v445_v17 = vld [vmem:[%s4250_s7 + $0x80] sm:$0xff]  ;;  %v448_v18 = vld [vmem:[%s4250_s7 + $0x98] sm:$0xff] }
 0x144   : > { %2975 = vmatpush1.bf16.msra.mxu1 %v2974_v20  ;;  %2913 = vmatprep.subr.bf16.mxu0 %v2912_v21  ;;  %v447_v19 = vld [vmem:[%s4250_s7 + $0x90] sm:$0xff]  ;;  %v450_v20 = vld [vmem:[%s4250_s7 + $0xa8] sm:$0xff]  ;;  %v449_v21 = vld [vmem:[%s4250_s7 + $0xa0] sm:$0xff] }
 0x145   : > { %2977 = vmatprep.subr.bf16.mxu1 %v2976_v25  ;;  %v452_v22 = vld [vmem:[%s4250_s7 + $0xb8] sm:$0xff]  ;;  %v451_v23 = vld [vmem:[%s4250_s7 + $0xb0] sm:$0xff]  ;;  %v454_v24 = vld [vmem:[%s4250_s7 + $0xc8] sm:$0xff] }
 0x146   : > { %v453_v25 = vld [vmem:[%s4250_s7 + $0xc0] sm:$0xff]  ;;  %v456_v26 = vld [vmem:[%s4250_s7 + $0xd8] sm:$0xff]  ;;  %v455_v27 = vld [vmem:[%s4250_s7 + $0xd0] sm:$0xff] }
 0x147   : > { %2915 = vmatpush1.bf16.msra.mxu0 %v2914_v31  ;;  %v458_v28 = vld [vmem:[%s4250_s7 + $0xe8] sm:$0xff]  ;;  %v457_v29 = vld [vmem:[%s4250_s7 + $0xe0] sm:$0xff]  ;;  %v460_v30 = vld [vmem:[%s4250_s7 + $0xf8] sm:$0xff] }
 0x148   : > { %2979 = vmatpush1.bf16.msra.mxu1 %v2978_v32  ;;  %2917 = vmatprep.subr.bf16.mxu0 %v2916_v33  ;;  %v459_v31 = vld [vmem:[%s4250_s7 + $0xf0] sm:$0xff]  ;;  %v462_v32 = vld [vmem:[%s4250_s7 + $0x108] sm:$0xff]  ;;  %v461_v33 = vld [vmem:[%s4250_s7 + $0x100] sm:$0xff] }
 0x149   : > { %2981 = vmatprep.subr.bf16.mxu1 %v2980_v37  ;;  %v464_v34 = vld [vmem:[%s4250_s7 + $0x118] sm:$0xff]  ;;  %v463_v35 = vld [vmem:[%s4250_s7 + $0x110] sm:$0xff]  ;;  %v466_v36 = vld [vmem:[%s4250_s7 + $0x128] sm:$0xff] }
 0x14a   : > { %v465_v37 = vld [vmem:[%s4250_s7 + $0x120] sm:$0xff]  ;;  %v468_v38 = vld [vmem:[%s4250_s7 + $0x138] sm:$0xff]  ;;  %v467_v39 = vld [vmem:[%s4250_s7 + $0x130] sm:$0xff] }
 0x14b   : > { %2919 = vmatpush1.bf16.msra.mxu0 %v2918_v43  ;;  %v470_v40 = vld [vmem:[%s4250_s7 + $0x148] sm:$0xff]  ;;  %v469_v41 = vld [vmem:[%s4250_s7 + $0x140] sm:$0xff]  ;;  %v472_v42 = vld [vmem:[%s4250_s7 + $0x158] sm:$0xff] }
 0x14c   : > { %2983 = vmatpush1.bf16.msra.mxu1 %v2982_v44  ;;  %2921 = vmatprep.subr.bf16.mxu0 %v2920_v45  ;;  %v471_v43 = vld [vmem:[%s4250_s7 + $0x150] sm:$0xff]  ;;  %v474_v44 = vld [vmem:[%s4250_s7 + $0x168] sm:$0xff]  ;;  %v473_v45 = vld [vmem:[%s4250_s7 + $0x160] sm:$0xff] }
 0x14d   : > { %2985 = vmatprep.subr.bf16.mxu1 %v2984_v49  ;;  %v476_v46 = vld [vmem:[%s4250_s7 + $0x178] sm:$0xff]  ;;  %v475_v47 = vld [vmem:[%s4250_s7 + $0x170] sm:$0xff]  ;;  %v478_v48 = vld [vmem:[%s4250_s7 + $0x188] sm:$0xff] }
 0x14e   : > { %v477_v49 = vld [vmem:[%s4250_s7 + $0x180] sm:$0xff]  ;;  %v480_v50 = vld [vmem:[%s4250_s7 + $0x198] sm:$0xff]  ;;  %v479_v51 = vld [vmem:[%s4250_s7 + $0x190] sm:$0xff] }
 0x14f   : > { %2923 = vmatpush1.bf16.msra.mxu0 %v2922_v55  ;;  %v482_v52 = vld [vmem:[%s4250_s7 + $0x1a8] sm:$0xff]  ;;  %v481_v53 = vld [vmem:[%s4250_s7 + $0x1a0] sm:$0xff]  ;;  %v484_v54 = vld [vmem:[%s4250_s7 + $0x1b8] sm:$0xff] }
 0x150   : > { %2987 = vmatpush1.bf16.msra.mxu1 %v2986_v56  ;;  %2925 = vmatprep.subr.bf16.mxu0 %v2924_v57  ;;  %v483_v55 = vld [vmem:[%s4250_s7 + $0x1b0] sm:$0xff]  ;;  %v486_v56 = vld [vmem:[%s4250_s7 + $0x1c8] sm:$0xff]  ;;  %v485_v57 = vld [vmem:[%s4250_s7 + $0x1c0] sm:$0xff] }
 0x151   : > { %2989 = vmatprep.subr.bf16.mxu1 %v2988_v60  ;;  %v488_v58 = vld [vmem:[%s4250_s7 + $0x1d8] sm:$0xff]  ;;  %v487_v59 = vld [vmem:[%s4250_s7 + $0x1d0] sm:$0xff]  ;;  %v490_v60 = vld [vmem:[%s4250_s7 + $0x1e8] sm:$0xff] }
 0x152   : > { %v489_v61 = vld [vmem:[%s4250_s7 + $0x1e0] sm:$0xff]  ;;  %v492_v62 = vld [vmem:[%s4250_s7 + $0x1f8] sm:$0xff] }
 0x153   : > { %2927 = vmatpush1.bf16.msra.mxu0 %v2926_v63  ;;  %v491_v63 = vld [vmem:[%s4250_s7 + $0x1f0] sm:$0xff] }
 0x154   : > { %2991 = vmatpush1.bf16.msra.mxu1 %v2990_v0 }
 0x156   : > { %622 = vmatmul.mubr.f32.vlgmr.msra.gmra.mrb[0].mxu0 %v429_v1 }
 0x157   : > { %1007 = vmatmul.mubr.f32.vlgmr.msra.gmra.mrb[0].mxu1 %v429_v1  ;;  %627 = vmatprep.mubr.f32.mxu0 %v432_v2 }
 0x158   : > { %1012 = vmatprep.mubr.f32.mxu1 %v432_v2 }
 0x15a   : > { %628 = vmatmul.mubr.f32.gmra.mrb[2].mxu0 %v431_v3 }
 0x15b   : > { %1013 = vmatmul.mubr.f32.gmra.mrb[2].mxu1 %v431_v3  ;;  %633 = vmatprep.mubr.f32.mxu0 %v434_v4 }
 0x15c   : > { %1018 = vmatprep.mubr.f32.mxu1 %v434_v4 }
 0x15e   : > { %634 = vmatmul.mubr.f32.gmra.mrb[4].mxu0 %v433_v5 }
 0x15f   : > { %1019 = vmatmul.mubr.f32.gmra.mrb[4].mxu1 %v433_v5  ;;  %639 = vmatprep.mubr.f32.mxu0 %v436_v6 }
 0x160   : > { %1024 = vmatprep.mubr.f32.mxu1 %v436_v6 }
 0x162   : > { %640 = vmatmul.mubr.f32.gmra.mrb[6].mxu0 %v435_v7 }
 0x163   : > { %1025 = vmatmul.mubr.f32.gmra.mrb[6].mxu1 %v435_v7  ;;  %645 = vmatprep.mubr.f32.mxu0 %v438_v8 }
 0x164   : > { %1030 = vmatprep.mubr.f32.mxu1 %v438_v8 }
 0x166   : > { %646 = vmatmul.mubr.f32.gmra.mrb[8].mxu0 %v437_v9 }
 0x167   : > { %1031 = vmatmul.mubr.f32.gmra.mrb[8].mxu1 %v437_v9  ;;  %651 = vmatprep.mubr.f32.mxu0 %v440_v10 }
 0x168   : > { %1036 = vmatprep.mubr.f32.mxu1 %v440_v10 }
 0x16a   : > { %652 = vmatmul.mubr.f32.gmra.mrb[10].mxu0 %v439_v11 }
 0x16b   : > { %1037 = vmatmul.mubr.f32.gmra.mrb[10].mxu1 %v439_v11  ;;  %657 = vmatprep.mubr.f32.mxu0 %v442_v12 }
 0x16c   : > { %1042 = vmatprep.mubr.f32.mxu1 %v442_v12 }
 0x16e   : > { %658 = vmatmul.mubr.f32.gmra.mrb[12].mxu0 %v441_v13 }
 0x16f   : > { %1043 = vmatmul.mubr.f32.gmra.mrb[12].mxu1 %v441_v13  ;;  %663 = vmatprep.mubr.f32.mxu0 %v444_v14 }
 0x170   : > { %1048 = vmatprep.mubr.f32.mxu1 %v444_v14 }
 0x172   : > { %664 = vmatmul.mubr.f32.gmra.mrb[14].mxu0 %v443_v15 }
 0x173   : > { %1049 = vmatmul.mubr.f32.gmra.mrb[14].mxu1 %v443_v15  ;;  %669 = vmatprep.mubr.f32.mxu0 %v446_v16 }
 0x174   : > { %1054 = vmatprep.mubr.f32.mxu1 %v446_v16 }
 0x176   : > { %670 = vmatmul.mubr.f32.gmra.mrb[16].mxu0 %v445_v17 }
 0x177   : > { %1055 = vmatmul.mubr.f32.gmra.mrb[16].mxu1 %v445_v17  ;;  %675 = vmatprep.mubr.f32.mxu0 %v448_v18 }
 0x178   : > { %1060 = vmatprep.mubr.f32.mxu1 %v448_v18 }
 0x17a   : > { %676 = vmatmul.mubr.f32.gmra.mrb[18].mxu0 %v447_v19 }
 0x17b   : > { %1061 = vmatmul.mubr.f32.gmra.mrb[18].mxu1 %v447_v19  ;;  %681 = vmatprep.mubr.f32.mxu0 %v450_v20 }
 0x17c   : > { %1066 = vmatprep.mubr.f32.mxu1 %v450_v20 }
 0x17e   : > { %682 = vmatmul.mubr.f32.gmra.mrb[20].mxu0 %v449_v21 }
 0x17f   : > { %1067 = vmatmul.mubr.f32.gmra.mrb[20].mxu1 %v449_v21  ;;  %687 = vmatprep.mubr.f32.mxu0 %v452_v22 }
 0x180   : > { %1072 = vmatprep.mubr.f32.mxu1 %v452_v22 }
 0x182   : > { %688 = vmatmul.mubr.f32.gmra.mrb[22].mxu0 %v451_v23 }
 0x183   : > { %1073 = vmatmul.mubr.f32.gmra.mrb[22].mxu1 %v451_v23  ;;  %693 = vmatprep.mubr.f32.mxu0 %v454_v24 }
 0x184   : > { %1078 = vmatprep.mubr.f32.mxu1 %v454_v24 }
 0x186   : > { %694 = vmatmul.mubr.f32.gmra.mrb[24].mxu0 %v453_v25 }
 0x187   : > { %1079 = vmatmul.mubr.f32.gmra.mrb[24].mxu1 %v453_v25  ;;  %699 = vmatprep.mubr.f32.mxu0 %v456_v26 }
 0x188   : > { %1084 = vmatprep.mubr.f32.mxu1 %v456_v26 }
 0x18a   : > { %700 = vmatmul.mubr.f32.gmra.mrb[26].mxu0 %v455_v27 }
 0x18b   : > { %1085 = vmatmul.mubr.f32.gmra.mrb[26].mxu1 %v455_v27  ;;  %705 = vmatprep.mubr.f32.mxu0 %v458_v28 }
 0x18c   : > { %1090 = vmatprep.mubr.f32.mxu1 %v458_v28 }
 0x18e   : > { %706 = vmatmul.mubr.f32.gmra.mrb[28].mxu0 %v457_v29 }
 0x18f   : > { %1091 = vmatmul.mubr.f32.gmra.mrb[28].mxu1 %v457_v29  ;;  %711 = vmatprep.mubr.f32.mxu0 %v460_v30 }
 0x190   : > { %1096 = vmatprep.mubr.f32.mxu1 %v460_v30 }
 0x192   : > { %712 = vmatmul.mubr.f32.gmra.mrb[30].mxu0 %v459_v31 }
 0x193   : > { %1097 = vmatmul.mubr.f32.gmra.mrb[30].mxu1 %v459_v31  ;;  %717 = vmatprep.mubr.f32.mxu0 %v462_v32 }
 0x194   : > { %1102 = vmatprep.mubr.f32.mxu1 %v462_v32 }
 0x196   : > { %718 = vmatmul.mubr.f32.gmra.mrb[32].mxu0 %v461_v33 }
 0x197   : > { %1103 = vmatmul.mubr.f32.gmra.mrb[32].mxu1 %v461_v33  ;;  %723 = vmatprep.mubr.f32.mxu0 %v464_v34 }
 0x198   : > { %1108 = vmatprep.mubr.f32.mxu1 %v464_v34 }
 0x19a   : > { %724 = vmatmul.mubr.f32.gmra.mrb[34].mxu0 %v463_v35 }
 0x19b   : > { %1109 = vmatmul.mubr.f32.gmra.mrb[34].mxu1 %v463_v35  ;;  %729 = vmatprep.mubr.f32.mxu0 %v466_v36 }
 0x19c   : > { %1114 = vmatprep.mubr.f32.mxu1 %v466_v36 }
 0x19e   : > { %730 = vmatmul.mubr.f32.gmra.mrb[36].mxu0 %v465_v37 }
 0x19f   : > { %1115 = vmatmul.mubr.f32.gmra.mrb[36].mxu1 %v465_v37  ;;  %735 = vmatprep.mubr.f32.mxu0 %v468_v38 }
 0x1a0   : > { %1120 = vmatprep.mubr.f32.mxu1 %v468_v38 }
 0x1a2   : > { %736 = vmatmul.mubr.f32.gmra.mrb[38].mxu0 %v467_v39 }
 0x1a3   : > { %1121 = vmatmul.mubr.f32.gmra.mrb[38].mxu1 %v467_v39  ;;  %741 = vmatprep.mubr.f32.mxu0 %v470_v40 }
 0x1a4   : > { %1126 = vmatprep.mubr.f32.mxu1 %v470_v40 }
 0x1a6   : > { %742 = vmatmul.mubr.f32.gmra.mrb[40].mxu0 %v469_v41 }
 0x1a7   : > { %1127 = vmatmul.mubr.f32.gmra.mrb[40].mxu1 %v469_v41  ;;  %747 = vmatprep.mubr.f32.mxu0 %v472_v42 }
 0x1a8   : > { %1132 = vmatprep.mubr.f32.mxu1 %v472_v42 }
 0x1aa   : > { %748 = vmatmul.mubr.f32.gmra.mrb[42].mxu0 %v471_v43 }
 0x1ab   : > { %1133 = vmatmul.mubr.f32.gmra.mrb[42].mxu1 %v471_v43  ;;  %753 = vmatprep.mubr.f32.mxu0 %v474_v44 }
 0x1ac   : > { %1138 = vmatprep.mubr.f32.mxu1 %v474_v44 }
 0x1ae   : > { %754 = vmatmul.mubr.f32.gmra.mrb[44].mxu0 %v473_v45 }
 0x1af   : > { %1139 = vmatmul.mubr.f32.gmra.mrb[44].mxu1 %v473_v45  ;;  %759 = vmatprep.mubr.f32.mxu0 %v476_v46 }
 0x1b0   : > { %1144 = vmatprep.mubr.f32.mxu1 %v476_v46 }
 0x1b2   : > { %760 = vmatmul.mubr.f32.gmra.mrb[46].mxu0 %v475_v47 }
 0x1b3   : > { %1145 = vmatmul.mubr.f32.gmra.mrb[46].mxu1 %v475_v47  ;;  %765 = vmatprep.mubr.f32.mxu0 %v478_v48 }
 0x1b4   : > { %1150 = vmatprep.mubr.f32.mxu1 %v478_v48 }
 0x1b6   : > { %766 = vmatmul.mubr.f32.gmra.mrb[48].mxu0 %v477_v49 }
 0x1b7   : > { %1151 = vmatmul.mubr.f32.gmra.mrb[48].mxu1 %v477_v49  ;;  %771 = vmatprep.mubr.f32.mxu0 %v480_v50 }
 0x1b8   : > { %1156 = vmatprep.mubr.f32.mxu1 %v480_v50 }
 0x1ba   : > { %772 = vmatmul.mubr.f32.gmra.mrb[50].mxu0 %v479_v51 }
 0x1bb   : > { %1157 = vmatmul.mubr.f32.gmra.mrb[50].mxu1 %v479_v51  ;;  %777 = vmatprep.mubr.f32.mxu0 %v482_v52 }
 0x1bc   : > { %1162 = vmatprep.mubr.f32.mxu1 %v482_v52 }
 0x1be   : > { %778 = vmatmul.mubr.f32.gmra.mrb[52].mxu0 %v481_v53 }
 0x1bf   : > { %1163 = vmatmul.mubr.f32.gmra.mrb[52].mxu1 %v481_v53  ;;  %783 = vmatprep.mubr.f32.mxu0 %v484_v54 }
 0x1c0   : > { %1168 = vmatprep.mubr.f32.mxu1 %v484_v54 }
 0x1c2   : > { %784 = vmatmul.mubr.f32.gmra.mrb[54].mxu0 %v483_v55 }
 0x1c3   : > { %1169 = vmatmul.mubr.f32.gmra.mrb[54].mxu1 %v483_v55  ;;  %789 = vmatprep.mubr.f32.mxu0 %v486_v56 }
 0x1c4   : > { %1174 = vmatprep.mubr.f32.mxu1 %v486_v56 }
 0x1c6   : > { %790 = vmatmul.mubr.f32.gmra.mrb[56].mxu0 %v485_v57 }
 0x1c7   : > { %1175 = vmatmul.mubr.f32.gmra.mrb[56].mxu1 %v485_v57  ;;  %795 = vmatprep.mubr.f32.mxu0 %v488_v58 }
 0x1c8   : > { %1180 = vmatprep.mubr.f32.mxu1 %v488_v58 }
 0x1ca   : > { %796 = vmatmul.mubr.f32.gmra.mrb[58].mxu0 %v487_v59 }
 0x1cb   : > { %1181 = vmatmul.mubr.f32.gmra.mrb[58].mxu1 %v487_v59  ;;  %801 = vmatprep.mubr.f32.mxu0 %v490_v60 }
 0x1cc   : > { %1186 = vmatprep.mubr.f32.mxu1 %v490_v60 }
 0x1ce   : > { %802 = vmatmul.mubr.f32.gmra.mrb[60].mxu0 %v489_v61 }
 0x1cf   : > { %1187 = vmatmul.mubr.f32.gmra.mrb[60].mxu1 %v489_v61  ;;  %807 = vmatprep.mubr.f32.mxu0 %v492_v62 }
 0x1d0   : > { %1192 = vmatprep.mubr.f32.mxu1 %v492_v62 }
 0x1d2   : > { %808 = vmatmul.mubr.f32.gmra.mrb[62].mxu0 %v491_v63 }
 0x1d3   : > { %1193 = vmatmul.mubr.f32.gmra.mrb[62].mxu1 %v491_v63 }
 0x229   : > { %v623_v0 = vpop.f32.mrb[0].mxu0 }
 0x22a   : > { %814 = vst [vmem:[#allocation3] sm:$0xff] %v623_v0  ;;  %v1008_v1 = vpop.f32.mrb[0].mxu1  ;;  %v625_v2 = vpop.f32.mrb[1].mxu0 }
 0x22b   : > { %1199 = vst [vmem:[#allocation4] sm:$0xff] %v1008_v1  ;;  %815 = vst [vmem:[#allocation3 + $0x8] sm:$0xff] %v625_v2  ;;  %v1010_v3 = vpop.f32.mrb[1].mxu1 }
 0x22c   : > { %1200 = vst [vmem:[#allocation4 + $0x8] sm:$0xff] %v1010_v3 }
 0x22d   : > { %v629_v4 = vpop.f32.mrb[2].mxu0 }
 0x22e   : > { %816 = vst [vmem:[#allocation3 + $0x10] sm:$0xff] %v629_v4  ;;  %v1014_v5 = vpop.f32.mrb[2].mxu1  ;;  %v631_v6 = vpop.f32.mrb[3].mxu0 }
 0x22f   : > { %1201 = vst [vmem:[#allocation4 + $0x10] sm:$0xff] %v1014_v5  ;;  %817 = vst [vmem:[#allocation3 + $0x18] sm:$0xff] %v631_v6  ;;  %v1016_v7 = vpop.f32.mrb[3].mxu1 }
 0x230   : > { %1202 = vst [vmem:[#allocation4 + $0x18] sm:$0xff] %v1016_v7 }
 0x231   : > { %v635_v8 = vpop.f32.mrb[4].mxu0 }
 0x232   : > { %818 = vst [vmem:[#allocation3 + $0x20] sm:$0xff] %v635_v8  ;;  %v1020_v9 = vpop.f32.mrb[4].mxu1  ;;  %v637_v10 = vpop.f32.mrb[5].mxu0 }
 0x233   : > { %1203 = vst [vmem:[#allocation4 + $0x20] sm:$0xff] %v1020_v9  ;;  %819 = vst [vmem:[#allocation3 + $0x28] sm:$0xff] %v637_v10  ;;  %v1022_v11 = vpop.f32.mrb[5].mxu1 }
 0x234   : > { %1204 = vst [vmem:[#allocation4 + $0x28] sm:$0xff] %v1022_v11 }
 0x235   : > { %v641_v12 = vpop.f32.mrb[6].mxu0 }
 0x236   : > { %820 = vst [vmem:[#allocation3 + $0x30] sm:$0xff] %v641_v12  ;;  %v1026_v13 = vpop.f32.mrb[6].mxu1  ;;  %v643_v14 = vpop.f32.mrb[7].mxu0 }
 0x237   : > { %1205 = vst [vmem:[#allocation4 + $0x30] sm:$0xff] %v1026_v13  ;;  %821 = vst [vmem:[#allocation3 + $0x38] sm:$0xff] %v643_v14  ;;  %v1028_v15 = vpop.f32.mrb[7].mxu1 }
 0x238   : > { %1206 = vst [vmem:[#allocation4 + $0x38] sm:$0xff] %v1028_v15 }
 0x239   : > { %v647_v16 = vpop.f32.mrb[8].mxu0 }
 0x23a   : > { %822 = vst [vmem:[#allocation3 + $0x40] sm:$0xff] %v647_v16  ;;  %v1032_v17 = vpop.f32.mrb[8].mxu1  ;;  %v649_v18 = vpop.f32.mrb[9].mxu0 }
 0x23b   : > { %1207 = vst [vmem:[#allocation4 + $0x40] sm:$0xff] %v1032_v17  ;;  %823 = vst [vmem:[#allocation3 + $0x48] sm:$0xff] %v649_v18  ;;  %v1034_v19 = vpop.f32.mrb[9].mxu1 }
 0x23c   : > { %1208 = vst [vmem:[#allocation4 + $0x48] sm:$0xff] %v1034_v19 }
 0x23d   : > { %v653_v20 = vpop.f32.mrb[10].mxu0 }
 0x23e   : > { %824 = vst [vmem:[#allocation3 + $0x50] sm:$0xff] %v653_v20  ;;  %v1038_v21 = vpop.f32.mrb[10].mxu1  ;;  %v655_v22 = vpop.f32.mrb[11].mxu0 }
 0x23f   : > { %1209 = vst [vmem:[#allocation4 + $0x50] sm:$0xff] %v1038_v21  ;;  %825 = vst [vmem:[#allocation3 + $0x58] sm:$0xff] %v655_v22  ;;  %v1040_v23 = vpop.f32.mrb[11].mxu1 }
 0x240   : > { %1210 = vst [vmem:[#allocation4 + $0x58] sm:$0xff] %v1040_v23 }
 0x241   : > { %v659_v24 = vpop.f32.mrb[12].mxu0 }
 0x242   : > { %826 = vst [vmem:[#allocation3 + $0x60] sm:$0xff] %v659_v24  ;;  %v1044_v25 = vpop.f32.mrb[12].mxu1  ;;  %v661_v26 = vpop.f32.mrb[13].mxu0 }
 0x243   : > { %1211 = vst [vmem:[#allocation4 + $0x60] sm:$0xff] %v1044_v25  ;;  %827 = vst [vmem:[#allocation3 + $0x68] sm:$0xff] %v661_v26  ;;  %v1046_v27 = vpop.f32.mrb[13].mxu1 }
 0x244   : > { %1212 = vst [vmem:[#allocation4 + $0x68] sm:$0xff] %v1046_v27 }
 0x245   : > { %v665_v28 = vpop.f32.mrb[14].mxu0 }
 0x246   : > { %828 = vst [vmem:[#allocation3 + $0x70] sm:$0xff] %v665_v28  ;;  %v1050_v29 = vpop.f32.mrb[14].mxu1  ;;  %v667_v30 = vpop.f32.mrb[15].mxu0 }
 0x247   : > { %1213 = vst [vmem:[#allocation4 + $0x70] sm:$0xff] %v1050_v29  ;;  %829 = vst [vmem:[#allocation3 + $0x78] sm:$0xff] %v667_v30  ;;  %v1052_v31 = vpop.f32.mrb[15].mxu1 }
 0x248   : > { %1214 = vst [vmem:[#allocation4 + $0x78] sm:$0xff] %v1052_v31 }
 0x249   : > { %v671_v32 = vpop.f32.mrb[16].mxu0 }
 0x24a   : > { %830 = vst [vmem:[#allocation3 + $0x80] sm:$0xff] %v671_v32  ;;  %v1056_v33 = vpop.f32.mrb[16].mxu1  ;;  %v673_v34 = vpop.f32.mrb[17].mxu0 }
 0x24b   : > { %1215 = vst [vmem:[#allocation4 + $0x80] sm:$0xff] %v1056_v33  ;;  %831 = vst [vmem:[#allocation3 + $0x88] sm:$0xff] %v673_v34  ;;  %v1058_v35 = vpop.f32.mrb[17].mxu1 }
 0x24c   : > { %1216 = vst [vmem:[#allocation4 + $0x88] sm:$0xff] %v1058_v35 }
 0x24d   : > { %v677_v36 = vpop.f32.mrb[18].mxu0 }
 0x24e   : > { %832 = vst [vmem:[#allocation3 + $0x90] sm:$0xff] %v677_v36  ;;  %v1062_v37 = vpop.f32.mrb[18].mxu1  ;;  %v679_v38 = vpop.f32.mrb[19].mxu0 }
 0x24f   : > { %1217 = vst [vmem:[#allocation4 + $0x90] sm:$0xff] %v1062_v37  ;;  %833 = vst [vmem:[#allocation3 + $0x98] sm:$0xff] %v679_v38  ;;  %v1064_v39 = vpop.f32.mrb[19].mxu1 }
 0x250   : > { %1218 = vst [vmem:[#allocation4 + $0x98] sm:$0xff] %v1064_v39 }
 0x251   : > { %v683_v40 = vpop.f32.mrb[20].mxu0 }
 0x252   : > { %834 = vst [vmem:[#allocation3 + $0xa0] sm:$0xff] %v683_v40  ;;  %v1068_v41 = vpop.f32.mrb[20].mxu1  ;;  %v685_v42 = vpop.f32.mrb[21].mxu0 }
 0x253   : > { %1219 = vst [vmem:[#allocation4 + $0xa0] sm:$0xff] %v1068_v41  ;;  %835 = vst [vmem:[#allocation3 + $0xa8] sm:$0xff] %v685_v42  ;;  %v1070_v43 = vpop.f32.mrb[21].mxu1 }
 0x254   : > { %1220 = vst [vmem:[#allocation4 + $0xa8] sm:$0xff] %v1070_v43 }
 0x255   : > { %v689_v44 = vpop.f32.mrb[22].mxu0 }
 0x256   : > { %836 = vst [vmem:[#allocation3 + $0xb0] sm:$0xff] %v689_v44  ;;  %v1074_v45 = vpop.f32.mrb[22].mxu1  ;;  %v691_v46 = vpop.f32.mrb[23].mxu0 }
 0x257   : > { %1221 = vst [vmem:[#allocation4 + $0xb0] sm:$0xff] %v1074_v45  ;;  %837 = vst [vmem:[#allocation3 + $0xb8] sm:$0xff] %v691_v46  ;;  %v1076_v47 = vpop.f32.mrb[23].mxu1 }
 0x258   : > { %1222 = vst [vmem:[#allocation4 + $0xb8] sm:$0xff] %v1076_v47 }
 0x259   : > { %v695_v48 = vpop.f32.mrb[24].mxu0 }
 0x25a   : > { %838 = vst [vmem:[#allocation3 + $0xc0] sm:$0xff] %v695_v48  ;;  %v1080_v49 = vpop.f32.mrb[24].mxu1  ;;  %v697_v50 = vpop.f32.mrb[25].mxu0 }
 0x25b   : > { %1223 = vst [vmem:[#allocation4 + $0xc0] sm:$0xff] %v1080_v49  ;;  %839 = vst [vmem:[#allocation3 + $0xc8] sm:$0xff] %v697_v50  ;;  %v1082_v51 = vpop.f32.mrb[25].mxu1 }
 0x25c   : > { %1224 = vst [vmem:[#allocation4 + $0xc8] sm:$0xff] %v1082_v51 }
 0x25d   : > { %v701_v52 = vpop.f32.mrb[26].mxu0 }
 0x25e   : > { %840 = vst [vmem:[#allocation3 + $0xd0] sm:$0xff] %v701_v52  ;;  %v1086_v53 = vpop.f32.mrb[26].mxu1  ;;  %v703_v54 = vpop.f32.mrb[27].mxu0 }
 0x25f   : > { %1225 = vst [vmem:[#allocation4 + $0xd0] sm:$0xff] %v1086_v53  ;;  %841 = vst [vmem:[#allocation3 + $0xd8] sm:$0xff] %v703_v54  ;;  %v1088_v55 = vpop.f32.mrb[27].mxu1 }
 0x260   : > { %1226 = vst [vmem:[#allocation4 + $0xd8] sm:$0xff] %v1088_v55 }
 0x261   : > { %v707_v56 = vpop.f32.mrb[28].mxu0 }
 0x262   : > { %842 = vst [vmem:[#allocation3 + $0xe0] sm:$0xff] %v707_v56  ;;  %v1092_v57 = vpop.f32.mrb[28].mxu1  ;;  %v709_v58 = vpop.f32.mrb[29].mxu0 }
 0x263   : > { %1227 = vst [vmem:[#allocation4 + $0xe0] sm:$0xff] %v1092_v57  ;;  %843 = vst [vmem:[#allocation3 + $0xe8] sm:$0xff] %v709_v58  ;;  %v1094_v59 = vpop.f32.mrb[29].mxu1 }
 0x264   : > { %1228 = vst [vmem:[#allocation4 + $0xe8] sm:$0xff] %v1094_v59 }
 0x265   : > { %v713_v60 = vpop.f32.mrb[30].mxu0 }
 0x266   : > { %844 = vst [vmem:[#allocation3 + $0xf0] sm:$0xff] %v713_v60  ;;  %v1098_v61 = vpop.f32.mrb[30].mxu1  ;;  %v715_v62 = vpop.f32.mrb[31].mxu0 }
 0x267   : > { %1229 = vst [vmem:[#allocation4 + $0xf0] sm:$0xff] %v1098_v61  ;;  %845 = vst [vmem:[#allocation3 + $0xf8] sm:$0xff] %v715_v62  ;;  %v1100_v63 = vpop.f32.mrb[31].mxu1 }
 0x268   : > { %1230 = vst [vmem:[#allocation4 + $0xf8] sm:$0xff] %v1100_v63 }
 0x269   : > { %v719_v0 = vpop.f32.mrb[32].mxu0 }
 0x26a   : > { %846 = vst [vmem:[#allocation3 + $0x100] sm:$0xff] %v719_v0  ;;  %v1104_v1 = vpop.f32.mrb[32].mxu1  ;;  %v721_v2 = vpop.f32.mrb[33].mxu0 }
 0x26b   : > { %1231 = vst [vmem:[#allocation4 + $0x100] sm:$0xff] %v1104_v1  ;;  %847 = vst [vmem:[#allocation3 + $0x108] sm:$0xff] %v721_v2  ;;  %v1106_v3 = vpop.f32.mrb[33].mxu1 }
 0x26c   : > { %1232 = vst [vmem:[#allocation4 + $0x108] sm:$0xff] %v1106_v3 }
 0x26d   : > { %v725_v4 = vpop.f32.mrb[34].mxu0 }
 0x26e   : > { %848 = vst [vmem:[#allocation3 + $0x110] sm:$0xff] %v725_v4  ;;  %v1110_v5 = vpop.f32.mrb[34].mxu1  ;;  %v727_v6 = vpop.f32.mrb[35].mxu0 }
 0x26f   : > { %1233 = vst [vmem:[#allocation4 + $0x110] sm:$0xff] %v1110_v5  ;;  %849 = vst [vmem:[#allocation3 + $0x118] sm:$0xff] %v727_v6  ;;  %v1112_v7 = vpop.f32.mrb[35].mxu1 }
 0x270   : > { %1234 = vst [vmem:[#allocation4 + $0x118] sm:$0xff] %v1112_v7 }
 0x271   : > { %v731_v8 = vpop.f32.mrb[36].mxu0 }
 0x272   : > { %850 = vst [vmem:[#allocation3 + $0x120] sm:$0xff] %v731_v8  ;;  %v1116_v9 = vpop.f32.mrb[36].mxu1  ;;  %v733_v10 = vpop.f32.mrb[37].mxu0 }
 0x273   : > { %1235 = vst [vmem:[#allocation4 + $0x120] sm:$0xff] %v1116_v9  ;;  %851 = vst [vmem:[#allocation3 + $0x128] sm:$0xff] %v733_v10  ;;  %v1118_v11 = vpop.f32.mrb[37].mxu1 }
 0x274   : > { %1236 = vst [vmem:[#allocation4 + $0x128] sm:$0xff] %v1118_v11 }
 0x275   : > { %v737_v12 = vpop.f32.mrb[38].mxu0 }
 0x276   : > { %852 = vst [vmem:[#allocation3 + $0x130] sm:$0xff] %v737_v12  ;;  %v1122_v13 = vpop.f32.mrb[38].mxu1  ;;  %v739_v14 = vpop.f32.mrb[39].mxu0 }
 0x277   : > { %1237 = vst [vmem:[#allocation4 + $0x130] sm:$0xff] %v1122_v13  ;;  %853 = vst [vmem:[#allocation3 + $0x138] sm:$0xff] %v739_v14  ;;  %v1124_v15 = vpop.f32.mrb[39].mxu1 }
 0x278   : > { %1238 = vst [vmem:[#allocation4 + $0x138] sm:$0xff] %v1124_v15 }
 0x279   : > { %v743_v16 = vpop.f32.mrb[40].mxu0 }
 0x27a   : > { %854 = vst [vmem:[#allocation3 + $0x140] sm:$0xff] %v743_v16  ;;  %v1128_v17 = vpop.f32.mrb[40].mxu1  ;;  %v745_v18 = vpop.f32.mrb[41].mxu0 }
 0x27b   : > { %1239 = vst [vmem:[#allocation4 + $0x140] sm:$0xff] %v1128_v17  ;;  %855 = vst [vmem:[#allocation3 + $0x148] sm:$0xff] %v745_v18  ;;  %v1130_v19 = vpop.f32.mrb[41].mxu1 }
 0x27c   : > { %1240 = vst [vmem:[#allocation4 + $0x148] sm:$0xff] %v1130_v19 }
 0x27d   : > { %v749_v20 = vpop.f32.mrb[42].mxu0 }
 0x27e   : > { %856 = vst [vmem:[#allocation3 + $0x150] sm:$0xff] %v749_v20  ;;  %v1134_v21 = vpop.f32.mrb[42].mxu1  ;;  %v751_v22 = vpop.f32.mrb[43].mxu0 }
 0x27f   : > { %1241 = vst [vmem:[#allocation4 + $0x150] sm:$0xff] %v1134_v21  ;;  %857 = vst [vmem:[#allocation3 + $0x158] sm:$0xff] %v751_v22  ;;  %v1136_v23 = vpop.f32.mrb[43].mxu1 }
 0x280   : > { %1242 = vst [vmem:[#allocation4 + $0x158] sm:$0xff] %v1136_v23 }
 0x281   : > { %v755_v24 = vpop.f32.mrb[44].mxu0 }
 0x282   : > { %858 = vst [vmem:[#allocation3 + $0x160] sm:$0xff] %v755_v24  ;;  %v1140_v25 = vpop.f32.mrb[44].mxu1  ;;  %v757_v26 = vpop.f32.mrb[45].mxu0 }
 0x283   : > { %1243 = vst [vmem:[#allocation4 + $0x160] sm:$0xff] %v1140_v25  ;;  %859 = vst [vmem:[#allocation3 + $0x168] sm:$0xff] %v757_v26  ;;  %v1142_v27 = vpop.f32.mrb[45].mxu1 }
 0x284   : > { %1244 = vst [vmem:[#allocation4 + $0x168] sm:$0xff] %v1142_v27 }
 0x285   : > { %v761_v28 = vpop.f32.mrb[46].mxu0 }
 0x286   : > { %860 = vst [vmem:[#allocation3 + $0x170] sm:$0xff] %v761_v28  ;;  %v1146_v29 = vpop.f32.mrb[46].mxu1  ;;  %v763_v30 = vpop.f32.mrb[47].mxu0 }
 0x287   : > { %1245 = vst [vmem:[#allocation4 + $0x170] sm:$0xff] %v1146_v29  ;;  %861 = vst [vmem:[#allocation3 + $0x178] sm:$0xff] %v763_v30  ;;  %v1148_v31 = vpop.f32.mrb[47].mxu1 }
 0x288   : > { %1246 = vst [vmem:[#allocation4 + $0x178] sm:$0xff] %v1148_v31 }
 0x289   : > { %v767_v32 = vpop.f32.mrb[48].mxu0 }
 0x28a   : > { %862 = vst [vmem:[#allocation3 + $0x180] sm:$0xff] %v767_v32  ;;  %v1152_v33 = vpop.f32.mrb[48].mxu1  ;;  %v769_v34 = vpop.f32.mrb[49].mxu0 }
 0x28b   : > { %1247 = vst [vmem:[#allocation4 + $0x180] sm:$0xff] %v1152_v33  ;;  %863 = vst [vmem:[#allocation3 + $0x188] sm:$0xff] %v769_v34  ;;  %v1154_v35 = vpop.f32.mrb[49].mxu1 }
 0x28c   : > { %1248 = vst [vmem:[#allocation4 + $0x188] sm:$0xff] %v1154_v35 }
 0x28d   : > { %v773_v36 = vpop.f32.mrb[50].mxu0 }
 0x28e   : > { %864 = vst [vmem:[#allocation3 + $0x190] sm:$0xff] %v773_v36  ;;  %v1158_v37 = vpop.f32.mrb[50].mxu1  ;;  %v775_v38 = vpop.f32.mrb[51].mxu0 }
 0x28f   : > { %1249 = vst [vmem:[#allocation4 + $0x190] sm:$0xff] %v1158_v37  ;;  %865 = vst [vmem:[#allocation3 + $0x198] sm:$0xff] %v775_v38  ;;  %v1160_v39 = vpop.f32.mrb[51].mxu1 }
 0x290   : > { %1250 = vst [vmem:[#allocation4 + $0x198] sm:$0xff] %v1160_v39 }
 0x291   : > { %v779_v40 = vpop.f32.mrb[52].mxu0 }
 0x292   : > { %866 = vst [vmem:[#allocation3 + $0x1a0] sm:$0xff] %v779_v40  ;;  %v1164_v41 = vpop.f32.mrb[52].mxu1  ;;  %v781_v42 = vpop.f32.mrb[53].mxu0 }
 0x293   : > { %1251 = vst [vmem:[#allocation4 + $0x1a0] sm:$0xff] %v1164_v41  ;;  %867 = vst [vmem:[#allocation3 + $0x1a8] sm:$0xff] %v781_v42  ;;  %v1166_v43 = vpop.f32.mrb[53].mxu1 }
 0x294   : > { %1252 = vst [vmem:[#allocation4 + $0x1a8] sm:$0xff] %v1166_v43 }
 0x295   : > { %v785_v44 = vpop.f32.mrb[54].mxu0 }
 0x296   : > { %868 = vst [vmem:[#allocation3 + $0x1b0] sm:$0xff] %v785_v44  ;;  %v1170_v45 = vpop.f32.mrb[54].mxu1  ;;  %v787_v46 = vpop.f32.mrb[55].mxu0 }
 0x297   : > { %1253 = vst [vmem:[#allocation4 + $0x1b0] sm:$0xff] %v1170_v45  ;;  %869 = vst [vmem:[#allocation3 + $0x1b8] sm:$0xff] %v787_v46  ;;  %v1172_v47 = vpop.f32.mrb[55].mxu1 }
 0x298   : > { %1254 = vst [vmem:[#allocation4 + $0x1b8] sm:$0xff] %v1172_v47 }
 0x299   : > { %v791_v48 = vpop.f32.mrb[56].mxu0 }
 0x29a   : > { %870 = vst [vmem:[#allocation3 + $0x1c0] sm:$0xff] %v791_v48  ;;  %v1176_v49 = vpop.f32.mrb[56].mxu1  ;;  %v793_v50 = vpop.f32.mrb[57].mxu0 }
 0x29b   : > { %1255 = vst [vmem:[#allocation4 + $0x1c0] sm:$0xff] %v1176_v49  ;;  %871 = vst [vmem:[#allocation3 + $0x1c8] sm:$0xff] %v793_v50  ;;  %v1178_v51 = vpop.f32.mrb[57].mxu1 }
 0x29c   : > { %1256 = vst [vmem:[#allocation4 + $0x1c8] sm:$0xff] %v1178_v51 }
 0x29d   : > { %v797_v52 = vpop.f32.mrb[58].mxu0 }
 0x29e   : > { %872 = vst [vmem:[#allocation3 + $0x1d0] sm:$0xff] %v797_v52  ;;  %v1182_v53 = vpop.f32.mrb[58].mxu1  ;;  %v799_v54 = vpop.f32.mrb[59].mxu0 }
 0x29f   : > { %1257 = vst [vmem:[#allocation4 + $0x1d0] sm:$0xff] %v1182_v53  ;;  %873 = vst [vmem:[#allocation3 + $0x1d8] sm:$0xff] %v799_v54  ;;  %v1184_v55 = vpop.f32.mrb[59].mxu1 }
 0x2a0   : > { %1258 = vst [vmem:[#allocation4 + $0x1d8] sm:$0xff] %v1184_v55 }
 0x2a1   : > { %v803_v56 = vpop.f32.mrb[60].mxu0 }
 0x2a2   : > { %874 = vst [vmem:[#allocation3 + $0x1e0] sm:$0xff] %v803_v56  ;;  %v1188_v57 = vpop.f32.mrb[60].mxu1  ;;  %v805_v58 = vpop.f32.mrb[61].mxu0 }
 0x2a3   : > { %1259 = vst [vmem:[#allocation4 + $0x1e0] sm:$0xff] %v1188_v57  ;;  %875 = vst [vmem:[#allocation3 + $0x1e8] sm:$0xff] %v805_v58  ;;  %v1190_v59 = vpop.f32.mrb[61].mxu1 }
 0x2a4   : > { %1260 = vst [vmem:[#allocation4 + $0x1e8] sm:$0xff] %v1190_v59 }
 0x2a5   : > { %v809_v60 = vpop.f32.mrb[62].mxu0 }
 0x2a6   : > { %876 = vst [vmem:[#allocation3 + $0x1f0] sm:$0xff] %v809_v60  ;;  %v1194_v61 = vpop.f32.mrb[62].mxu1  ;;  %v811_v62 = vpop.f32.mrb[63].mxu0 }
 0x2a7   : > { %1261 = vst [vmem:[#allocation4 + $0x1f0] sm:$0xff] %v1194_v61  ;;  %877 = vst [vmem:[#allocation3 + $0x1f8] sm:$0xff] %v811_v62  ;;  %v1196_v63 = vpop.f32.mrb[63].mxu1 }
 0x2a8   : > { %1262 = vst [vmem:[#allocation4 + $0x1f8] sm:$0xff] %v1196_v63 }
 0x2a9 PF: > { %s4841_s14 = sld [smem:[#allocation24_spill]] }
 0x2af   : > { %p2703_p0 = scmp.ne.s32.totalorder %s4841_s14, 0 }
 0x2b0   : > { %v1299_v0 = vld [vmem:[#allocation11 + $0x8] sm:$0xff] (!%p2703_p0)  ;;  %v1301_v1 = vld [vmem:[#allocation11 + $0x18] sm:$0xff] (!%p2703_p0)  ;;  %v1298_v2 = vld [vmem:[#allocation11] sm:$0xff] (!%p2703_p0) }
 0x2b1   : > { %1265 = sbr.rel (%p2703_p0) target bundleno = 997 (0x3e5), region = 80  ;;  %v2992_v3 = vpack.c.bf16 (!%p2703_p0), %v1301_v1, %v1299_v0  ;;  %v1300_v4 = vld [vmem:[#allocation11 + $0x10] sm:$0xff] (!%p2703_p0)  ;;  %v1303_v5 = vld [vmem:[#allocation11 + $0x28] sm:$0xff] (!%p2703_p0)  ;;  %v1305_v6 = vld [vmem:[#allocation11 + $0x38] sm:$0xff] (!%p2703_p0) }
 0x2b2   : > { %v2994_v7 = vpack.c.bf16 (!%p2703_p0), %v1300_v4, %v1298_v2  ;;  %v2996_v8 = vpack.c.bf16 (!%p2703_p0), %v1305_v6, %v1303_v5  ;;  %v1302_v9 = vld [vmem:[#allocation11 + $0x20] sm:$0xff] (!%p2703_p0)  ;;  %v1304_v10 = vld [vmem:[#allocation11 + $0x30] sm:$0xff] (!%p2703_p0)  ;;  %v1307_v11 = vld [vmem:[#allocation11 + $0x48] sm:$0xff] (!%p2703_p0) }
 0x2b3   : > { %2993 = vmatprep.subr.bf16.mxu0 (!%p2703_p0), %v2992_v3  ;;  %3184 = vmatprep.subr.bf16.mxu1 (!%p2703_p0), %v2992_v3  ;;  %v1309_v12 = vld [vmem:[#allocation11 + $0x58] sm:$0xff] (!%p2703_p0)  ;;  %v2998_v13 = vpack.c.bf16 (!%p2703_p0), %v1304_v10, %v1302_v9  ;;  %v1306_v15 = vld [vmem:[#allocation11 + $0x40] sm:$0xff] (!%p2703_p0)  ;;  %v1308_v16 = vld [vmem:[#allocation11 + $0x50] sm:$0xff] (!%p2703_p0) }
 0x2b4   : > { %2995 = vmatpush1.bf16.msra.mxu0 (!%p2703_p0), %v2994_v7  ;;  %3200 = vmatpush1.bf16.msra.mxu1 (!%p2703_p0), %v2994_v7  ;;  %v3000_v14 = vpack.c.bf16 (!%p2703_p0), %v1309_v12, %v1307_v11  ;;  %v1311_v17 = vld [vmem:[#allocation11 + $0x68] sm:$0xff] (!%p2703_p0)  ;;  %v1313_v18 = vld [vmem:[#allocation11 + $0x78] sm:$0xff] (!%p2703_p0)  ;;  %v3002_v19 = vpack.c.bf16 (!%p2703_p0), %v1308_v16, %v1306_v15  ;;  %v1310_v21 = vld [vmem:[#allocation11 + $0x60] sm:$0xff] (!%p2703_p0) }
 0x2b5   : > { %2997 = vmatprep.subr.bf16.mxu0 (!%p2703_p0), %v2996_v8  ;;  %3185 = vmatprep.subr.bf16.mxu1 (!%p2703_p0), %v2996_v8  ;;  %v3004_v20 = vpack.c.bf16 (!%p2703_p0), %v1313_v18, %v1311_v17  ;;  %v1312_v22 = vld [vmem:[#allocation11 + $0x70] sm:$0xff] (!%p2703_p0)  ;;  %v1315_v23 = vld [vmem:[#allocation11 + $0x88] sm:$0xff] (!%p2703_p0)  ;;  %v1317_v24 = vld [vmem:[#allocation11 + $0x98] sm:$0xff] (!%p2703_p0) }
 0x2b6   : > { %v3006_v25 = vpack.c.bf16 (!%p2703_p0), %v1312_v22, %v1310_v21  ;;  %v3008_v26 = vpack.c.bf16 (!%p2703_p0), %v1317_v24, %v1315_v23  ;;  %v1314_v27 = vld [vmem:[#allocation11 + $0x80] sm:$0xff] (!%p2703_p0)  ;;  %v1316_v28 = vld [vmem:[#allocation11 + $0x90] sm:$0xff] (!%p2703_p0)  ;;  %v1319_v29 = vld [vmem:[#allocation11 + $0xa8] sm:$0xff] (!%p2703_p0) }
 0x2b7   : > { %v1321_v30 = vld [vmem:[#allocation11 + $0xb8] sm:$0xff] (!%p2703_p0)  ;;  %v3010_v31 = vpack.c.bf16 (!%p2703_p0), %v1316_v28, %v1314_v27  ;;  %v1318_v33 = vld [vmem:[#allocation11 + $0xa0] sm:$0xff] (!%p2703_p0)  ;;  %v1320_v34 = vld [vmem:[#allocation11 + $0xb0] sm:$0xff] (!%p2703_p0) }
 0x2b8   : > { %2999 = vmatpush1.bf16.msra.mxu0 %v2998_v13  ;;  %3201 = vmatpush1.bf16.msra.mxu1 %v2998_v13  ;;  %v3012_v32 = vpack.c.bf16 %v1321_v30, %v1319_v29  ;;  %v1323_v35 = vld [vmem:[#allocation11 + $0xc8] sm:$0xff]  ;;  %v1325_v36 = vld [vmem:[#allocation11 + $0xd8] sm:$0xff]  ;;  %v3014_v37 = vpack.c.bf16 %v1320_v34, %v1318_v33  ;;  %v1322_v38 = vld [vmem:[#allocation11 + $0xc0] sm:$0xff] }
 0x2b9   : > { %3001 = vmatprep.subr.bf16.mxu0 %v3000_v14  ;;  %3186 = vmatprep.subr.bf16.mxu1 %v3000_v14  ;;  %v3016_v39 = vpack.c.bf16 %v1325_v36, %v1323_v35  ;;  %v1324_v40 = vld [vmem:[#allocation11 + $0xd0] sm:$0xff]  ;;  %v1267_v41 = vld [vmem:[%s4242_s19 + $0x8] sm:$0xff]  ;;  %v1329_v44 = vld [vmem:[#allocation11 + $0xf8] sm:$0xff] }
 0x2ba   : > { %v1283_v42 = vld [vmem:[%s4242_s19 + $0x88] sm:$0xff]  ;;  %1426 = vmatprep.mubr.f32.mxu0 %v1267_v41  ;;  %v3018_v45 = vpack.c.bf16 %v1324_v40, %v1322_v38  ;;  %v1326_v47 = vld [vmem:[#allocation11 + $0xe0] sm:$0xff]  ;;  %v1328_v48 = vld [vmem:[#allocation11 + $0xf0] sm:$0xff] }
 0x2bb   : > { %v1327_v43 = vld [vmem:[#allocation11 + $0xe8] sm:$0xff]  ;;  %1474 = vmatprep.mubr.f32.mxu1 %v1283_v42  ;;  %v1333_v50 = vld [vmem:[#allocation11 + $0x118] sm:$0xff]  ;;  %v3022_v51 = vpack.c.bf16 %v1328_v48, %v1326_v47  ;;  %v1330_v53 = vld [vmem:[#allocation11 + $0x100] sm:$0xff] }
 0x2bc   : > { %3003 = vmatpush1.bf16.msra.mxu0 %v3002_v19  ;;  %3202 = vmatpush1.bf16.msra.mxu1 %v3002_v19  ;;  %v3020_v46 = vpack.c.bf16 %v1329_v44, %v1327_v43  ;;  %v1331_v49 = vld [vmem:[#allocation11 + $0x108] sm:$0xff]  ;;  %v1332_v54 = vld [vmem:[#allocation11 + $0x110] sm:$0xff]  ;;  %v1337_v56 = vld [vmem:[#allocation11 + $0x138] sm:$0xff] }
 0x2bd   : > { %3005 = vmatprep.subr.bf16.mxu0 %v3004_v20  ;;  %3187 = vmatprep.subr.bf16.mxu1 %v3004_v20  ;;  %v3024_v52 = vpack.c.bf16 %v1333_v50, %v1331_v49  ;;  %v1335_v55 = vld [vmem:[#allocation11 + $0x128] sm:$0xff]  ;;  %v3026_v57 = vpack.c.bf16 %v1332_v54, %v1330_v53  ;;  %v1334_v59 = vld [vmem:[#allocation11 + $0x120] sm:$0xff]  ;;  %v1336_v60 = vld [vmem:[#allocation11 + $0x130] sm:$0xff] }
 0x2be   : > { %v3028_v58 = vpack.c.bf16 %v1337_v56, %v1335_v55  ;;  %v1339_v61 = vld [vmem:[#allocation11 + $0x148] sm:$0xff]  ;;  %v1341_v62 = vld [vmem:[#allocation11 + $0x158] sm:$0xff]  ;;  %v3030_v63 = vpack.c.bf16 %v1336_v60, %v1334_v59  ;;  %v1338_v1 = vld [vmem:[#allocation11 + $0x140] sm:$0xff] }
 0x2bf   : > { %v3032_v0 = vpack.c.bf16 %v1341_v62, %v1339_v61  ;;  %v1340_v2 = vld [vmem:[#allocation11 + $0x150] sm:$0xff]  ;;  %v1343_v3 = vld [vmem:[#allocation11 + $0x168] sm:$0xff]  ;;  %v1345_v4 = vld [vmem:[#allocation11 + $0x178] sm:$0xff] }
 0x2c0   : > { %3007 = vmatpush1.bf16.msra.mxu0 %v3006_v25  ;;  %3203 = vmatpush1.bf16.msra.mxu1 %v3006_v25  ;;  %v3034_v5 = vpack.c.bf16 %v1340_v2, %v1338_v1  ;;  %v3036_v6 = vpack.c.bf16 %v1345_v4, %v1343_v3  ;;  %v1342_v7 = vld [vmem:[#allocation11 + $0x160] sm:$0xff]  ;;  %v1344_v8 = vld [vmem:[#allocation11 + $0x170] sm:$0xff]  ;;  %v1347_v9 = vld [vmem:[#allocation11 + $0x188] sm:$0xff] }
 0x2c1   : > { %3009 = vmatprep.subr.bf16.mxu0 %v3008_v26  ;;  %3188 = vmatprep.subr.bf16.mxu1 %v3008_v26  ;;  %v1349_v10 = vld [vmem:[#allocation11 + $0x198] sm:$0xff]  ;;  %v3038_v11 = vpack.c.bf16 %v1344_v8, %v1342_v7  ;;  %v1346_v13 = vld [vmem:[#allocation11 + $0x180] sm:$0xff]  ;;  %v1348_v14 = vld [vmem:[#allocation11 + $0x190] sm:$0xff] }
 0x2c2   : > { %v3040_v12 = vpack.c.bf16 %v1349_v10, %v1347_v9  ;;  %v1351_v15 = vld [vmem:[#allocation11 + $0x1a8] sm:$0xff]  ;;  %v1353_v16 = vld [vmem:[#allocation11 + $0x1b8] sm:$0xff]  ;;  %v3042_v17 = vpack.c.bf16 %v1348_v14, %v1346_v13  ;;  %v1350_v19 = vld [vmem:[#allocation11 + $0x1a0] sm:$0xff] }
 0x2c3   : > { %v3044_v18 = vpack.c.bf16 %v1353_v16, %v1351_v15  ;;  %v1352_v20 = vld [vmem:[#allocation11 + $0x1b0] sm:$0xff]  ;;  %v1355_v21 = vld [vmem:[#allocation11 + $0x1c8] sm:$0xff]  ;;  %v1357_v22 = vld [vmem:[#allocation11 + $0x1d8] sm:$0xff] }
 0x2c4   : > { %3011 = vmatpush1.bf16.msra.mxu0 %v3010_v31  ;;  %3204 = vmatpush1.bf16.msra.mxu1 %v3010_v31  ;;  %v3046_v23 = vpack.c.bf16 %v1352_v20, %v1350_v19  ;;  %v3048_v24 = vpack.c.bf16 %v1357_v22, %v1355_v21  ;;  %v1354_v25 = vld [vmem:[#allocation11 + $0x1c0] sm:$0xff]  ;;  %v1356_v26 = vld [vmem:[#allocation11 + $0x1d0] sm:$0xff]  ;;  %v1359_v27 = vld [vmem:[#allocation11 + $0x1e8] sm:$0xff] }
 0x2c5   : > { %3013 = vmatprep.subr.bf16.mxu0 %v3012_v32  ;;  %3189 = vmatprep.subr.bf16.mxu1 %v3012_v32  ;;  %v1361_v28 = vld [vmem:[#allocation11 + $0x1f8] sm:$0xff]  ;;  %v3050_v29 = vpack.c.bf16 %v1356_v26, %v1354_v25  ;;  %v1358_v31 = vld [vmem:[#allocation11 + $0x1e0] sm:$0xff]  ;;  %v1360_v32 = vld [vmem:[#allocation11 + $0x1f0] sm:$0xff] }
 0x2c6   : > { %v3052_v30 = vpack.c.bf16 %v1361_v28, %v1359_v27  ;;  %v3054_v33 = vpack.c.bf16 %v1360_v32, %v1358_v31  ;;  %v1266_v34 = vld [vmem:[%s4242_s19] sm:$0xff]  ;;  %v1269_v36 = vld [vmem:[%s4242_s19 + $0x18] sm:$0xff]  ;;  %v1268_v38 = vld [vmem:[%s4242_s19 + $0x10] sm:$0xff] }
 0x2c7   : > { %v1282_v35 = vld [vmem:[%s4242_s19 + $0x80] sm:$0xff]  ;;  %v1271_v40 = vld [vmem:[%s4242_s19 + $0x28] sm:$0xff]  ;;  %v1273_v44 = vld [vmem:[%s4242_s19 + $0x38] sm:$0xff] }
 0x2c8   : > { %3015 = vmatpush1.bf16.msra.mxu0 %v3014_v37  ;;  %3205 = vmatpush1.bf16.msra.mxu1 %v3014_v37  ;;  %v1285_v37 = vld [vmem:[%s4242_s19 + $0x98] sm:$0xff]  ;;  %v1287_v41 = vld [vmem:[%s4242_s19 + $0xa8] sm:$0xff]  ;;  %v1270_v42 = vld [vmem:[%s4242_s19 + $0x20] sm:$0xff] }
 0x2c9   : > { %3017 = vmatprep.subr.bf16.mxu0 %v3016_v39  ;;  %3190 = vmatprep.subr.bf16.mxu1 %v3016_v39  ;;  %v1284_v39 = vld [vmem:[%s4242_s19 + $0x90] sm:$0xff]  ;;  %v1286_v43 = vld [vmem:[%s4242_s19 + $0xa0] sm:$0xff]  ;;  %v1275_v48 = vld [vmem:[%s4242_s19 + $0x48] sm:$0xff] }
 0x2ca   : > { %v1288_v47 = vld [vmem:[%s4242_s19 + $0xb0] sm:$0xff]  ;;  %v1291_v49 = vld [vmem:[%s4242_s19 + $0xc8] sm:$0xff]  ;;  %v1274_v50 = vld [vmem:[%s4242_s19 + $0x40] sm:$0xff] }
 0x2cb   : > { %v1293_v53 = vld [vmem:[%s4242_s19 + $0xd8] sm:$0xff]  ;;  %v1276_v54 = vld [vmem:[%s4242_s19 + $0x50] sm:$0xff]  ;;  %v1279_v56 = vld [vmem:[%s4242_s19 + $0x68] sm:$0xff] }
 0x2cc   : > { %3019 = vmatpush1.bf16.msra.mxu0 %v3018_v45  ;;  %3206 = vmatpush1.bf16.msra.mxu1 %v3018_v45  ;;  %v1289_v45 = vld [vmem:[%s4242_s19 + $0xb8] sm:$0xff]  ;;  %v1292_v55 = vld [vmem:[%s4242_s19 + $0xd0] sm:$0xff]  ;;  %v1294_v59 = vld [vmem:[%s4242_s19 + $0xe0] sm:$0xff] }
 0x2cd   : > { %3021 = vmatprep.subr.bf16.mxu0 %v3020_v46  ;;  %3191 = vmatprep.subr.bf16.mxu1 %v3020_v46  ;;  %v1272_v46 = vld [vmem:[%s4242_s19 + $0x30] sm:$0xff]  ;;  %v1281_v60 = vld [vmem:[%s4242_s19 + $0x78] sm:$0xff] }
 0x2ce   : > { %v1297_v61 = vld [vmem:[%s4242_s19 + $0xf8] sm:$0xff]  ;;  %v1280_v62 = vld [vmem:[%s4242_s19 + $0x70] sm:$0xff] }
 0x2d0   : > { %3023 = vmatpush1.bf16.msra.mxu0 %v3022_v51  ;;  %3207 = vmatpush1.bf16.msra.mxu1 %v3022_v51  ;;  %v1290_v51 = vld [vmem:[%s4242_s19 + $0xc0] sm:$0xff] }
 0x2d1   : > { %3025 = vmatprep.subr.bf16.mxu0 %v3024_v52  ;;  %3192 = vmatprep.subr.bf16.mxu1 %v3024_v52  ;;  %v1277_v52 = vld [vmem:[%s4242_s19 + $0x58] sm:$0xff] }
 0x2d4   : > { %3027 = vmatpush1.bf16.msra.mxu0 %v3026_v57  ;;  %3208 = vmatpush1.bf16.msra.mxu1 %v3026_v57  ;;  %v1295_v57 = vld [vmem:[%s4242_s19 + $0xe8] sm:$0xff] }
 0x2d5   : > { %3029 = vmatprep.subr.bf16.mxu0 %v3028_v58  ;;  %3193 = vmatprep.subr.bf16.mxu1 %v3028_v58  ;;  %v1278_v58 = vld [vmem:[%s4242_s19 + $0x60] sm:$0xff] }
 0x2d8   : > { %3031 = vmatpush1.bf16.msra.mxu0 %v3030_v63  ;;  %3209 = vmatpush1.bf16.msra.mxu1 %v3030_v63  ;;  %v1296_v63 = vld [vmem:[%s4242_s19 + $0xf0] sm:$0xff] }
 0x2d9   : > { %3033 = vmatprep.subr.bf16.mxu0 %v3032_v0  ;;  %3194 = vmatprep.subr.bf16.mxu1 %v3032_v0 }
 0x2dc   : > { %3035 = vmatpush1.bf16.msra.mxu0 %v3034_v5  ;;  %3210 = vmatpush1.bf16.msra.mxu1 %v3034_v5 }
 0x2dd   : > { %3037 = vmatprep.subr.bf16.mxu0 %v3036_v6  ;;  %3195 = vmatprep.subr.bf16.mxu1 %v3036_v6 }
 0x2e0   : > { %3039 = vmatpush1.bf16.msra.mxu0 %v3038_v11  ;;  %3211 = vmatpush1.bf16.msra.mxu1 %v3038_v11 }
 0x2e1   : > { %3041 = vmatprep.subr.bf16.mxu0 %v3040_v12  ;;  %3196 = vmatprep.subr.bf16.mxu1 %v3040_v12 }
 0x2e4   : > { %3043 = vmatpush1.bf16.msra.mxu0 %v3042_v17  ;;  %3212 = vmatpush1.bf16.msra.mxu1 %v3042_v17 }
 0x2e5   : > { %3045 = vmatprep.subr.bf16.mxu0 %v3044_v18  ;;  %3197 = vmatprep.subr.bf16.mxu1 %v3044_v18 }
 0x2e8   : > { %3047 = vmatpush1.bf16.msra.mxu0 %v3046_v23  ;;  %3213 = vmatpush1.bf16.msra.mxu1 %v3046_v23 }
 0x2e9   : > { %3049 = vmatprep.subr.bf16.mxu0 %v3048_v24  ;;  %3198 = vmatprep.subr.bf16.mxu1 %v3048_v24 }
 0x2ec   : > { %3051 = vmatpush1.bf16.msra.mxu0 %v3050_v29  ;;  %3214 = vmatpush1.bf16.msra.mxu1 %v3050_v29 }
 0x2ed   : > { %3053 = vmatprep.subr.bf16.mxu0 %v3052_v30  ;;  %3199 = vmatprep.subr.bf16.mxu1 %v3052_v30 }
 0x2f0   : > { %3055 = vmatpush1.bf16.msra.mxu0 %v3054_v33  ;;  %3215 = vmatpush1.bf16.msra.mxu1 %v3054_v33 }
 0x2f3   : > { %1427 = vmatmul.mubr.f32.vlgmr.msra.gmra.mrb[0].mxu0 %v1266_v34  ;;  %1475 = vmatmul.mubr.f32.vlgmr.msra.gmra.mrb[0].mxu1 %v1282_v35 }
 0x2f4   : > { %1432 = vmatprep.mubr.f32.mxu0 %v1269_v36  ;;  %1480 = vmatprep.mubr.f32.mxu1 %v1285_v37 }
 0x2f7   : > { %1433 = vmatmul.mubr.f32.gmra.mrb[2].mxu0 %v1268_v38  ;;  %1481 = vmatmul.mubr.f32.gmra.mrb[2].mxu1 %v1284_v39 }
 0x2f8   : > { %1438 = vmatprep.mubr.f32.mxu0 %v1271_v40  ;;  %1486 = vmatprep.mubr.f32.mxu1 %v1287_v41 }
 0x2fb   : > { %1439 = vmatmul.mubr.f32.gmra.mrb[4].mxu0 %v1270_v42  ;;  %1487 = vmatmul.mubr.f32.gmra.mrb[4].mxu1 %v1286_v43 }
 0x2fc   : > { %1444 = vmatprep.mubr.f32.mxu0 %v1273_v44  ;;  %1492 = vmatprep.mubr.f32.mxu1 %v1289_v45 }
 0x2ff   : > { %1445 = vmatmul.mubr.f32.gmra.mrb[6].mxu0 %v1272_v46  ;;  %1493 = vmatmul.mubr.f32.gmra.mrb[6].mxu1 %v1288_v47 }
 0x300   : > { %1450 = vmatprep.mubr.f32.mxu0 %v1275_v48  ;;  %1498 = vmatprep.mubr.f32.mxu1 %v1291_v49 }
 0x303   : > { %1451 = vmatmul.mubr.f32.gmra.mrb[8].mxu0 %v1274_v50  ;;  %1499 = vmatmul.mubr.f32.gmra.mrb[8].mxu1 %v1290_v51 }
 0x304   : > { %1456 = vmatprep.mubr.f32.mxu0 %v1277_v52  ;;  %1504 = vmatprep.mubr.f32.mxu1 %v1293_v53 }
 0x307   : > { %1457 = vmatmul.mubr.f32.gmra.mrb[10].mxu0 %v1276_v54  ;;  %1505 = vmatmul.mubr.f32.gmra.mrb[10].mxu1 %v1292_v55 }
 0x308   : > { %1462 = vmatprep.mubr.f32.mxu0 %v1279_v56  ;;  %1510 = vmatprep.mubr.f32.mxu1 %v1295_v57 }
 0x30b   : > { %1463 = vmatmul.mubr.f32.gmra.mrb[12].mxu0 %v1278_v58  ;;  %1511 = vmatmul.mubr.f32.gmra.mrb[12].mxu1 %v1294_v59 }
 0x30c   : > { %1468 = vmatprep.mubr.f32.mxu0 %v1281_v60  ;;  %1516 = vmatprep.mubr.f32.mxu1 %v1297_v61 }
 0x30f   : > { %1469 = vmatmul.mubr.f32.gmra.mrb[14].mxu0 %v1280_v62  ;;  %1517 = vmatmul.mubr.f32.gmra.mrb[14].mxu1 %v1296_v63 }
 0x3c6   : > { %v1428_v0 = vpop.f32.mrb[0].mxu0  ;;  %v1476_v1 = vpop.f32.mrb[0].mxu1 }
 0x3c7   : > { %1523 = vst [vmem:[#allocation2] sm:$0xff] %v1428_v0  ;;  %1539 = vst [vmem:[#allocation2 + $0x80] sm:$0xff] %v1476_v1  ;;  %v1430_v2 = vpop.f32.mrb[1].mxu0  ;;  %v1478_v3 = vpop.f32.mrb[1].mxu1 }
 0x3c8   : > { %1524 = vst [vmem:[#allocation2 + $0x8] sm:$0xff] %v1430_v2  ;;  %1540 = vst [vmem:[#allocation2 + $0x88] sm:$0xff] %v1478_v3 }
 0x3ca   : > { %v1434_v4 = vpop.f32.mrb[2].mxu0  ;;  %v1482_v5 = vpop.f32.mrb[2].mxu1 }
 0x3cb   : > { %1525 = vst [vmem:[#allocation2 + $0x10] sm:$0xff] %v1434_v4  ;;  %1541 = vst [vmem:[#allocation2 + $0x90] sm:$0xff] %v1482_v5  ;;  %v1436_v6 = vpop.f32.mrb[3].mxu0  ;;  %v1484_v7 = vpop.f32.mrb[3].mxu1 }
 0x3cc   : > { %1526 = vst [vmem:[#allocation2 + $0x18] sm:$0xff] %v1436_v6  ;;  %1542 = vst [vmem:[#allocation2 + $0x98] sm:$0xff] %v1484_v7 }
 0x3ce   : > { %v1440_v8 = vpop.f32.mrb[4].mxu0  ;;  %v1488_v9 = vpop.f32.mrb[4].mxu1 }
 0x3cf   : > { %1527 = vst [vmem:[#allocation2 + $0x20] sm:$0xff] %v1440_v8  ;;  %1543 = vst [vmem:[#allocation2 + $0xa0] sm:$0xff] %v1488_v9  ;;  %v1442_v10 = vpop.f32.mrb[5].mxu0  ;;  %v1490_v11 = vpop.f32.mrb[5].mxu1 }
 0x3d0   : > { %1528 = vst [vmem:[#allocation2 + $0x28] sm:$0xff] %v1442_v10  ;;  %1544 = vst [vmem:[#allocation2 + $0xa8] sm:$0xff] %v1490_v11 }
 0x3d2   : > { %v1446_v12 = vpop.f32.mrb[6].mxu0  ;;  %v1494_v13 = vpop.f32.mrb[6].mxu1 }
 0x3d3   : > { %1529 = vst [vmem:[#allocation2 + $0x30] sm:$0xff] %v1446_v12  ;;  %1545 = vst [vmem:[#allocation2 + $0xb0] sm:$0xff] %v1494_v13  ;;  %v1448_v14 = vpop.f32.mrb[7].mxu0  ;;  %v1496_v15 = vpop.f32.mrb[7].mxu1 }
 0x3d4   : > { %1530 = vst [vmem:[#allocation2 + $0x38] sm:$0xff] %v1448_v14  ;;  %1546 = vst [vmem:[#allocation2 + $0xb8] sm:$0xff] %v1496_v15 }
 0x3d6   : > { %v1452_v16 = vpop.f32.mrb[8].mxu0  ;;  %v1500_v17 = vpop.f32.mrb[8].mxu1 }
 0x3d7   : > { %1531 = vst [vmem:[#allocation2 + $0x40] sm:$0xff] %v1452_v16  ;;  %1547 = vst [vmem:[#allocation2 + $0xc0] sm:$0xff] %v1500_v17  ;;  %v1454_v18 = vpop.f32.mrb[9].mxu0  ;;  %v1502_v19 = vpop.f32.mrb[9].mxu1 }
 0x3d8   : > { %1532 = vst [vmem:[#allocation2 + $0x48] sm:$0xff] %v1454_v18  ;;  %1548 = vst [vmem:[#allocation2 + $0xc8] sm:$0xff] %v1502_v19 }
 0x3da   : > { %v1458_v20 = vpop.f32.mrb[10].mxu0  ;;  %v1506_v21 = vpop.f32.mrb[10].mxu1 }
 0x3db   : > { %1533 = vst [vmem:[#allocation2 + $0x50] sm:$0xff] %v1458_v20  ;;  %1549 = vst [vmem:[#allocation2 + $0xd0] sm:$0xff] %v1506_v21  ;;  %v1460_v22 = vpop.f32.mrb[11].mxu0  ;;  %v1508_v23 = vpop.f32.mrb[11].mxu1 }
 0x3dc   : > { %1534 = vst [vmem:[#allocation2 + $0x58] sm:$0xff] %v1460_v22  ;;  %1550 = vst [vmem:[#allocation2 + $0xd8] sm:$0xff] %v1508_v23 }
 0x3de   : > { %v1464_v24 = vpop.f32.mrb[12].mxu0  ;;  %v1512_v25 = vpop.f32.mrb[12].mxu1 }
 0x3df   : > { %1535 = vst [vmem:[#allocation2 + $0x60] sm:$0xff] %v1464_v24  ;;  %1551 = vst [vmem:[#allocation2 + $0xe0] sm:$0xff] %v1512_v25  ;;  %v1466_v26 = vpop.f32.mrb[13].mxu0  ;;  %v1514_v27 = vpop.f32.mrb[13].mxu1 }
 0x3e0   : > { %1536 = vst [vmem:[#allocation2 + $0x68] sm:$0xff] %v1466_v26  ;;  %1552 = vst [vmem:[#allocation2 + $0xe8] sm:$0xff] %v1514_v27 }
 0x3e2   : > { %v1470_v28 = vpop.f32.mrb[14].mxu0  ;;  %v1518_v29 = vpop.f32.mrb[14].mxu1 }
 0x3e3   : > { %1537 = vst [vmem:[#allocation2 + $0x70] sm:$0xff] %v1470_v28  ;;  %1553 = vst [vmem:[#allocation2 + $0xf0] sm:$0xff] %v1518_v29  ;;  %v1472_v30 = vpop.f32.mrb[15].mxu0  ;;  %v1520_v31 = vpop.f32.mrb[15].mxu1 }
 0x3e4   : > { %1538 = vst [vmem:[#allocation2 + $0x78] sm:$0xff] %v1472_v30  ;;  %1554 = vst [vmem:[#allocation2 + $0xf8] sm:$0xff] %v1520_v31 }
 0x3e5 PF: > { %s4842_s9 = sld [smem:[#allocation24_spill]] }
 0x3eb   : > { %s2704_s5 = sshll.u32 %s4842_s9, 7  ;;  %p2709_p3 = scmp.ne.s32.totalorder %s4842_s9, 1 }
 0x3ec   : > { %s1556_s1 = sshra.s32 %s2704_s5, 7  ;;  %s4843_s30 = sld [smem:[#allocation38_spill]] (!%p2709_p3) }
 0x3ed   : > { %s4370_s22 = sshll.u32 %s1556_s1, 3 }
 0x3ee   : > { %s4373_s21 = scalar_lea.vmem [#allocation3], %s4370_s22  ;;  %s4386_s19 = scalar_lea.vmem [#allocation2], %s4370_s22 }
 0x3ef   : > { %v1594_v32 = vld [vmem:[%s4373_s21 + $0x100] sm:$0xff]  ;;  %v1595_v33 = vld [vmem:[%s4373_s21 + $0x110] sm:$0xff]  ;;  %s4427_s17 = scalar_lea.vmem [#allocation4], %s4370_s22  ;;  %s4590_s4 = scalar_lea.vmem [#allocation5], %s4370_s22 }
 0x3f0   : > { %v1578_v34 = vld [vmem:[%s4373_s21] sm:$0xff]  ;;  %v3056_v35 = vpack.c.bf16 %v1595_v33, %v1594_v32  ;;  %v1579_v36 = vld [vmem:[%s4373_s21 + $0x10] sm:$0xff] }
 0x3f1   : > { %v1596_v37 = vld [vmem:[%s4373_s21 + $0x120] sm:$0xff]  ;;  %v1597_v38 = vld [vmem:[%s4373_s21 + $0x130] sm:$0xff]  ;;  %v3058_v39 = vpack.c.bf16 %v1579_v36, %v1578_v34 }
 0x3f2   : > { %v3060_v40 = vpack.c.bf16 %v1597_v38, %v1596_v37  ;;  %3057 = vmatprep.subr.bf16.mxu0 %v3056_v35  ;;  %v1580_v41 = vld [vmem:[%s4373_s21 + $0x20] sm:$0xff]  ;;  %v1581_v42 = vld [vmem:[%s4373_s21 + $0x30] sm:$0xff] }
 0x3f3   : > { %3059 = vmatpush3.bf16.xpose.msra.mxu0 %v3058_v39  ;;  %v1598_v43 = vld [vmem:[%s4373_s21 + $0x140] sm:$0xff]  ;;  %v1599_v44 = vld [vmem:[%s4373_s21 + $0x150] sm:$0xff]  ;;  %v3062_v45 = vpack.c.bf16 %v1581_v42, %v1580_v41 }
 0x3f4   : > { %3061 = vmatprep.subr.bf16.mxu0 %v3060_v40  ;;  %v3064_v46 = vpack.c.bf16 %v1599_v44, %v1598_v43  ;;  %v1560_v47 = vld [vmem:[%s4386_s19] sm:$0xff]  ;;  %v1583_v49 = vld [vmem:[%s4373_s21 + $0x50] sm:$0xff] }
 0x3f5   : > { %2752 = vmatprep.mubr.f32.mxu0 %v1560_v47  ;;  %v1582_v48 = vld [vmem:[%s4373_s21 + $0x40] sm:$0xff]  ;;  %v1601_v51 = vld [vmem:[%s4373_s21 + $0x170] sm:$0xff] }
 0x3f6   : > { %v1600_v50 = vld [vmem:[%s4373_s21 + $0x160] sm:$0xff]  ;;  %v3066_v52 = vpack.c.bf16 %v1583_v49, %v1582_v48  ;;  %v1585_v55 = vld [vmem:[%s4373_s21 + $0x70] sm:$0xff] }
 0x3f7   : > { %v3068_v53 = vpack.c.bf16 %v1601_v51, %v1600_v50  ;;  %v1584_v54 = vld [vmem:[%s4373_s21 + $0x60] sm:$0xff]  ;;  %v1603_v57 = vld [vmem:[%s4373_s21 + $0x190] sm:$0xff] }
 0x3f8   : > { %v1602_v56 = vld [vmem:[%s4373_s21 + $0x180] sm:$0xff]  ;;  %v3070_v58 = vpack.c.bf16 %v1585_v55, %v1584_v54  ;;  %v1587_v61 = vld [vmem:[%s4373_s21 + $0x90] sm:$0xff] }
 0x3f9   : > { %v3072_v59 = vpack.c.bf16 %v1603_v57, %v1602_v56  ;;  %v1586_v60 = vld [vmem:[%s4373_s21 + $0x80] sm:$0xff]  ;;  %v1605_v63 = vld [vmem:[%s4373_s21 + $0x1b0] sm:$0xff] }
 0x3fa   : > { %v1604_v62 = vld [vmem:[%s4373_s21 + $0x1a0] sm:$0xff]  ;;  %v3074_v0 = vpack.c.bf16 %v1587_v61, %v1586_v60  ;;  %v1589_v3 = vld [vmem:[%s4373_s21 + $0xb0] sm:$0xff] }
 0x3fb   : > { %3063 = vmatpush3.bf16.xpose.msra.mxu0 %v3062_v45  ;;  %v3076_v1 = vpack.c.bf16 %v1605_v63, %v1604_v62  ;;  %v1588_v2 = vld [vmem:[%s4373_s21 + $0xa0] sm:$0xff]  ;;  %v1607_v5 = vld [vmem:[%s4373_s21 + $0x1d0] sm:$0xff] }
 0x3fc   : > { %3065 = vmatprep.subr.bf16.mxu0 %v3064_v46  ;;  %v1606_v4 = vld [vmem:[%s4373_s21 + $0x1c0] sm:$0xff]  ;;  %v3078_v6 = vpack.c.bf16 %v1589_v3, %v1588_v2  ;;  %v1591_v9 = vld [vmem:[%s4373_s21 + $0xd0] sm:$0xff] }
 0x3fd   : > { %v3080_v7 = vpack.c.bf16 %v1607_v5, %v1606_v4  ;;  %v1590_v8 = vld [vmem:[%s4373_s21 + $0xc0] sm:$0xff]  ;;  %v1609_v11 = vld [vmem:[%s4373_s21 + $0x1f0] sm:$0xff] }
 0x3fe   : > { %v1608_v10 = vld [vmem:[%s4373_s21 + $0x1e0] sm:$0xff]  ;;  %v3082_v12 = vpack.c.bf16 %v1591_v9, %v1590_v8  ;;  %v1593_v15 = vld [vmem:[%s4373_s21 + $0xf0] sm:$0xff] }
 0x3ff   : > { %v3084_v13 = vpack.c.bf16 %v1609_v11, %v1608_v10  ;;  %v1592_v14 = vld [vmem:[%s4373_s21 + $0xe0] sm:$0xff]  ;;  %v1561_v17 = vld [vmem:[%s4386_s19 + $0x10] sm:$0xff] }
 0x400   : > { %v3086_v16 = vpack.c.bf16 %v1593_v15, %v1592_v14  ;;  %v1562_v18 = vld [vmem:[%s4386_s19 + $0x20] sm:$0xff]  ;;  %v1563_v19 = vld [vmem:[%s4386_s19 + $0x30] sm:$0xff] }
 0x401   : > { %v1564_v20 = vld [vmem:[%s4386_s19 + $0x40] sm:$0xff]  ;;  %v1565_v21 = vld [vmem:[%s4386_s19 + $0x50] sm:$0xff] }
 0x402   : > { %v1566_v22 = vld [vmem:[%s4386_s19 + $0x60] sm:$0xff]  ;;  %v1567_v23 = vld [vmem:[%s4386_s19 + $0x70] sm:$0xff] }
 0x403   : > { %3067 = vmatpush3.bf16.xpose.msra.mxu0 %v3066_v52  ;;  %v1568_v24 = vld [vmem:[%s4386_s19 + $0x80] sm:$0xff]  ;;  %v1569_v25 = vld [vmem:[%s4386_s19 + $0x90] sm:$0xff] }
 0x404   : > { %3069 = vmatprep.subr.bf16.mxu0 %v3068_v53  ;;  %v1570_v26 = vld [vmem:[%s4386_s19 + $0xa0] sm:$0xff]  ;;  %v1571_v27 = vld [vmem:[%s4386_s19 + $0xb0] sm:$0xff] }
 0x405   : > { %v1572_v28 = vld [vmem:[%s4386_s19 + $0xc0] sm:$0xff]  ;;  %v1573_v29 = vld [vmem:[%s4386_s19 + $0xd0] sm:$0xff] }
 0x406   : > { %v1574_v30 = vld [vmem:[%s4386_s19 + $0xe0] sm:$0xff]  ;;  %v1575_v31 = vld [vmem:[%s4386_s19 + $0xf0] sm:$0xff] }
 0x407   : > { %v1628_v32 = vld [vmem:[%s4427_s17 + $0x100] sm:$0xff]  ;;  %v1629_v33 = vld [vmem:[%s4427_s17 + $0x110] sm:$0xff] }
 0x408   : > { %v1612_v34 = vld [vmem:[%s4427_s17] sm:$0xff]  ;;  %v3088_v35 = vpack.c.bf16 %v1629_v33, %v1628_v32  ;;  %v1613_v36 = vld [vmem:[%s4427_s17 + $0x10] sm:$0xff] }
 0x409   : > { %v1630_v37 = vld [vmem:[%s4427_s17 + $0x120] sm:$0xff]  ;;  %v1631_v38 = vld [vmem:[%s4427_s17 + $0x130] sm:$0xff]  ;;  %v3090_v39 = vpack.c.bf16 %v1613_v36, %v1612_v34 }
 0x40a   : > { %v3092_v40 = vpack.c.bf16 %v1631_v38, %v1630_v37  ;;  %v1614_v41 = vld [vmem:[%s4427_s17 + $0x20] sm:$0xff]  ;;  %v1615_v42 = vld [vmem:[%s4427_s17 + $0x30] sm:$0xff]  ;;  %3089 = vmatprep.subr.bf16.mxu1 %v3088_v35 }
 0x40b   : > { %3071 = vmatpush3.bf16.xpose.msra.mxu0 %v3070_v58  ;;  %v1632_v43 = vld [vmem:[%s4427_s17 + $0x140] sm:$0xff]  ;;  %v1633_v44 = vld [vmem:[%s4427_s17 + $0x150] sm:$0xff]  ;;  %3091 = vmatpush3.bf16.msra.mxu1 %v3090_v39  ;;  %v3094_v45 = vpack.c.bf16 %v1615_v42, %v1614_v41 }
 0x40c   : > { %3073 = vmatprep.subr.bf16.mxu0 %v3072_v59  ;;  %3093 = vmatprep.subr.bf16.mxu1 %v3092_v40  ;;  %v3096_v46 = vpack.c.bf16 %v1633_v44, %v1632_v43  ;;  %v1617_v48 = vld [vmem:[%s4427_s17 + $0x50] sm:$0xff]  ;;  %v1634_v49 = vld [vmem:[%s4427_s17 + $0x160] sm:$0xff] }
 0x40d   : > { %v1635_v50 = vld [vmem:[%s4427_s17 + $0x170] sm:$0xff]  ;;  %v1618_v53 = vld [vmem:[%s4427_s17 + $0x60] sm:$0xff] }
 0x40e   : > { %v3100_v52 = vpack.c.bf16 %v1635_v50, %v1634_v49  ;;  %v1619_v54 = vld [vmem:[%s4427_s17 + $0x70] sm:$0xff]  ;;  %v1636_v5 = vld [vmem:[%s4427_s17 + $0x180] sm:$0xff] }
 0x40f   : > { %3095 = vmatpush3.bf16.msra.mxu1 %v3094_v45  ;;  %v3102_v55 = vpack.c.bf16 %v1619_v54, %v1618_v53  ;;  %v1620_v9 = vld [vmem:[%s4427_s17 + $0x80] sm:$0xff]  ;;  %v1621_v10 = vld [vmem:[%s4427_s17 + $0x90] sm:$0xff] }
 0x410   : > { %3097 = vmatprep.subr.bf16.mxu1 %v3096_v46  ;;  %v1638_v14 = vld [vmem:[%s4427_s17 + $0x1a0] sm:$0xff]  ;;  %v1639_v15 = vld [vmem:[%s4427_s17 + $0x1b0] sm:$0xff] }
 0x411   : > { %v1642_v32 = vld [vmem:[%s4427_s17 + $0x1e0] sm:$0xff]  ;;  %v1643_v33 = vld [vmem:[%s4427_s17 + $0x1f0] sm:$0xff] }
 0x412   : > { %v3116_v35 = vpack.c.bf16 %v1643_v33, %v1642_v32  ;;  %v1626_v36 = vld [vmem:[%s4427_s17 + $0xe0] sm:$0xff]  ;;  %v1627_v37 = vld [vmem:[%s4427_s17 + $0xf0] sm:$0xff] }
 0x413   : > { %3075 = vmatpush3.bf16.xpose.msra.mxu0 %v3074_v0  ;;  %v3118_v39 = vpack.c.bf16 %v1627_v37, %v1626_v36 }
 0x414   : > { %3077 = vmatprep.subr.bf16.mxu0 %v3076_v1 }
 0x41b   : > { %3079 = vmatpush3.bf16.xpose.msra.mxu0 %v3078_v6  ;;  %v1637_v6 = vld [vmem:[%s4427_s17 + $0x190] sm:$0xff] }
 0x41c   : > { %3081 = vmatprep.subr.bf16.mxu0 %v3080_v7  ;;  %v3104_v8 = vpack.c.bf16 %v1637_v6, %v1636_v5 }
 0x423   : > { %3083 = vmatpush3.bf16.xpose.msra.mxu0 %v3082_v12  ;;  %v3106_v12 = vpack.c.bf16 %v1621_v10, %v1620_v9 }
 0x424   : > { %3085 = vmatprep.subr.bf16.mxu0 %v3084_v13 }
 0x42b   : > { %3087 = vmatpush3.bf16.xpose.msra.mxu0 %v3086_v16 }
 0x432   : > { %2753 = vmatmul.mubr.f32.vlgmr.msra.gmra.mrb[0].mxu0 %v1560_v47  ;;  %v1616_v47 = vld [vmem:[%s4427_s17 + $0x40] sm:$0xff] }
 0x433   : > { %2754 = vmatprep.mubr.f32.mxu0 %v1561_v17  ;;  %v3098_v51 = vpack.c.bf16 %v1617_v48, %v1616_v47 }
 0x435   : > { %3099 = vmatpush3.bf16.msra.mxu1 %v3098_v51 }
 0x436   : > { %2755 = vmatmul.mubr.f32.gmra.mrb[2].mxu0 %v1561_v17  ;;  %3101 = vmatprep.subr.bf16.mxu1 %v3100_v52  ;;  %v3108_v17 = vpack.c.bf16 %v1639_v15, %v1638_v14 }
 0x437   : > { %2756 = vmatprep.mubr.f32.mxu0 %v1562_v18 }
 0x439   : > { %3103 = vmatpush3.bf16.msra.mxu1 %v3102_v55 }
 0x43a   : > { %2757 = vmatmul.mubr.f32.gmra.mrb[4].mxu0 %v1562_v18  ;;  %3105 = vmatprep.subr.bf16.mxu1 %v3104_v8  ;;  %v1622_v18 = vld [vmem:[%s4427_s17 + $0xa0] sm:$0xff] }
 0x43b   : > { %2758 = vmatprep.mubr.f32.mxu0 %v1563_v19 }
 0x43d   : > { %3107 = vmatpush3.bf16.msra.mxu1 %v3106_v12 }
 0x43e   : > { %2759 = vmatmul.mubr.f32.gmra.mrb[6].mxu0 %v1563_v19  ;;  %v1623_v19 = vld [vmem:[%s4427_s17 + $0xb0] sm:$0xff]  ;;  %3109 = vmatprep.subr.bf16.mxu1 %v3108_v17 }
 0x43f   : > { %2760 = vmatprep.mubr.f32.mxu0 %v1564_v20 }
 0x442   : > { %2761 = vmatmul.mubr.f32.gmra.mrb[8].mxu0 %v1564_v20 }
 0x443   : > { %2762 = vmatprep.mubr.f32.mxu0 %v1565_v21 }
 0x446   : > { %2763 = vmatmul.mubr.f32.gmra.mrb[10].mxu0 %v1565_v21  ;;  %v3110_v21 = vpack.c.bf16 %v1623_v19, %v1622_v18 }
 0x447   : > { %2764 = vmatprep.mubr.f32.mxu0 %v1566_v22 }
 0x448   : > { %3111 = vmatpush3.bf16.msra.mxu1 %v3110_v21 }
 0x44a   : > { %2765 = vmatmul.mubr.f32.gmra.mrb[12].mxu0 %v1566_v22 }
 0x44b   : > { %2766 = vmatprep.mubr.f32.mxu0 %v1567_v23 }
 0x44e   : > { %2767 = vmatmul.mubr.f32.gmra.mrb[14].mxu0 %v1567_v23  ;;  %v1640_v23 = vld [vmem:[%s4427_s17 + $0x1c0] sm:$0xff] }
 0x44f   : > { %2768 = vmatprep.mubr.f32.mxu0 %v1568_v24 }
 0x452   : > { %2769 = vmatmul.mubr.f32.gmra.mrb[16].mxu0 %v1568_v24  ;;  %v1641_v24 = vld [vmem:[%s4427_s17 + $0x1d0] sm:$0xff] }
 0x453   : > { %2770 = vmatprep.mubr.f32.mxu0 %v1569_v25 }
 0x456   : > { %2771 = vmatmul.mubr.f32.gmra.mrb[18].mxu0 %v1569_v25 }
 0x457   : > { %2772 = vmatprep.mubr.f32.mxu0 %v1570_v26 }
 0x45a   : > { %2773 = vmatmul.mubr.f32.gmra.mrb[20].mxu0 %v1570_v26  ;;  %v3112_v26 = vpack.c.bf16 %v1641_v24, %v1640_v23 }
 0x45b   : > { %2774 = vmatprep.mubr.f32.mxu0 %v1571_v27 }
 0x45c   : > { %3113 = vmatprep.subr.bf16.mxu1 %v3112_v26 }
 0x45e   : > { %2775 = vmatmul.mubr.f32.gmra.mrb[22].mxu0 %v1571_v27  ;;  %v1624_v27 = vld [vmem:[%s4427_s17 + $0xc0] sm:$0xff] }
 0x45f   : > { %2776 = vmatprep.mubr.f32.mxu0 %v1572_v28 }
 0x462   : > { %2777 = vmatmul.mubr.f32.gmra.mrb[24].mxu0 %v1572_v28  ;;  %v1625_v28 = vld [vmem:[%s4427_s17 + $0xd0] sm:$0xff] }
 0x463   : > { %2778 = vmatprep.mubr.f32.mxu0 %v1573_v29 }
 0x466   : > { %2779 = vmatmul.mubr.f32.gmra.mrb[26].mxu0 %v1573_v29 }
 0x467   : > { %2780 = vmatprep.mubr.f32.mxu0 %v1574_v30 }
 0x46a   : > { %2781 = vmatmul.mubr.f32.gmra.mrb[28].mxu0 %v1574_v30  ;;  %v3114_v30 = vpack.c.bf16 %v1625_v28, %v1624_v27 }
 0x46b   : > { %2782 = vmatprep.mubr.f32.mxu0 %v1575_v31 }
 0x46c   : > { %3115 = vmatpush3.bf16.msra.mxu1 %v3114_v30 }
 0x46d   : > { %3117 = vmatprep.subr.bf16.mxu1 %v3116_v35 }
 0x46e   : > { %2783 = vmatmul.mubr.f32.gmra.mrb[30].mxu0 %v1575_v31 }
 0x470   : > { %3119 = vmatpush3.bf16.msra.mxu1 %v3118_v39 }
 0x505   : > { %v4445_v56 = vpop.f32.mrb[0].mxu0 }
 0x506   : > { %v4447_v57 = vpop.f32.mrb[1].mxu0 }
 0x507   : > { %v1805_v58 = vmax.f32 %v4445_v56, %v4447_v57 }
 0x509   : > { %1806 = vmax.xlane.f32.xlu0 %v1805_v58  ;;  %v4451_v59 = vpop.f32.mrb[2].mxu0 }
 0x50a   : > { %v4453_v60 = vpop.f32.mrb[3].mxu0 }
 0x50b   : > { %v1808_v61 = vmax.f32 %v4451_v59, %v4453_v60 }
 0x50d   : > { %1809 = vmax.xlane.f32.xlu0 %v1808_v61  ;;  %v4457_v62 = vpop.f32.mrb[4].mxu0 }
 0x50e   : > { %v4459_v63 = vpop.f32.mrb[5].mxu0 }
 0x50f   : > { %v1811_v0 = vmax.f32 %v4457_v62, %v4459_v63 }
 0x511   : > { %1812 = vmax.xlane.f32.xlu1 %v1811_v0  ;;  %v4463_v1 = vpop.f32.mrb[6].mxu0 }
 0x512   : > { %v4465_v2 = vpop.f32.mrb[7].mxu0 }
 0x513   : > { %v1814_v3 = vmax.f32 %v4463_v1, %v4465_v2 }
 0x515   : > { %1815 = vmax.xlane.f32.xlu1 %v1814_v3  ;;  %v4469_v4 = vpop.f32.mrb[8].mxu0 }
 0x516   : > { %v4473_v7 = vpop.f32.mrb[9].mxu0 }
 0x517   : > { %v1817_v11 = vmax.f32 %v4469_v4, %v4473_v7 }
 0x519   : > { %1818 = vmax.xlane.f32.xlu0 %v1817_v11  ;;  %v4479_v13 = vpop.f32.mrb[10].mxu0 }
 0x51a   : > { %v4483_v16 = vpop.f32.mrb[11].mxu0 }
 0x51b   : > { %v1820_v20 = vmax.f32 %v4479_v13, %v4483_v16 }
 0x51d   : > { %1821 = vmax.xlane.f32.xlu1 %v1820_v20  ;;  %v4489_v22 = vpop.f32.mrb[12].mxu0 }
 0x51e   : > { %v4493_v25 = vpop.f32.mrb[13].mxu0 }
 0x51f   : > { %v1823_v29 = vmax.f32 %v4489_v22, %v4493_v25 }
 0x521   : > { %1824 = vmax.xlane.f32.xlu0 %v1823_v29  ;;  %v4499_v31 = vpop.f32.mrb[14].mxu0 }
 0x522   : > { %v4503_v34 = vpop.f32.mrb[15].mxu0 }
 0x523   : > { %v1826_v38 = vmax.f32 %v4499_v31, %v4503_v34 }
 0x525   : > { %1827 = vmax.xlane.f32.xlu1 %v1826_v38  ;;  %v4509_v40 = vpop.f32.mrb[16].mxu0 }
 0x526   : > { %v4511_v41 = vpop.f32.mrb[17].mxu0 }
 0x527   : > { %v1829_v42 = vmax.f32 %v4509_v40, %v4511_v41 }
 0x529   : > { %1830 = vmax.xlane.f32.xlu0 %v1829_v42  ;;  %v4515_v43 = vpop.f32.mrb[18].mxu0 }
 0x52a   : > { %v4517_v44 = vpop.f32.mrb[19].mxu0 }
 0x52b   : > { %v1832_v45 = vmax.f32 %v4515_v43, %v4517_v44 }
 0x52d   : > { %1833 = vmax.xlane.f32.xlu1 %v1832_v45  ;;  %v4521_v46 = vpop.f32.mrb[20].mxu0 }
 0x52e   : > { %v4523_v47 = vpop.f32.mrb[21].mxu0 }
 0x52f   : > { %v1835_v48 = vmax.f32 %v4521_v46, %v4523_v47 }
 0x531   : > { %1836 = vmax.xlane.f32.xlu0 %v1835_v48  ;;  %v4527_v49 = vpop.f32.mrb[22].mxu0 }
 0x532   : > { %v4529_v50 = vpop.f32.mrb[23].mxu0 }
 0x533   : > { %v1838_v51 = vmax.f32 %v4527_v49, %v4529_v50 }
 0x535   : > { %1839 = vmax.xlane.f32.xlu1 %v1838_v51  ;;  %v4533_v52 = vpop.f32.mrb[24].mxu0 }
 0x536   : > { %v4535_v53 = vpop.f32.mrb[25].mxu0 }
 0x537   : > { %v1841_v54 = vmax.f32 %v4533_v52, %v4535_v53 }
 0x539   : > { %1842 = vmax.xlane.f32.xlu0 %v1841_v54  ;;  %v4539_v55 = vpop.f32.mrb[26].mxu0 }
 0x53a   : > { %v4541_v58 = vpop.f32.mrb[27].mxu0 }
 0x53b   : > { %v1844_v61 = vmax.f32 %v4539_v55, %v4541_v58 }
 0x53d   : > { %1845 = vmax.xlane.f32.xlu1 %v1844_v61  ;;  %v4545_v0 = vpop.f32.mrb[28].mxu0 }
 0x53e   : > { %v4547_v3 = vpop.f32.mrb[29].mxu0 }
 0x53f   : > { %v1847_v5 = vmax.f32 %v4545_v0, %v4547_v3 }
 0x541   : > { %1848 = vmax.xlane.f32.xlu0 %v1847_v5  ;;  %v4551_v6 = vpop.f32.mrb[30].mxu0 }
 0x542   : > { %v4553_v8 = vpop.f32.mrb[31].mxu0 }
 0x543   : > { %v1850_v9 = vmax.f32 %v4551_v6, %v4553_v8 }
 0x545   : > { %1851 = vmax.xlane.f32.xlu1 %v1850_v9 }
 0x596   : > { %v1807_v10 = vpop.xlane.xlu0 %1806 }
 0x597   : > { %v1853_v11 = vsub.f32 %v4445_v56, %v1807_v10  ;;  %v1854_v12 = vsub.f32 %v4447_v57, %v1807_v10 }
 0x599   : > { %v1885_v14 = vmul.f32 1.442695, %v1853_v11  ;;  %v1887_v15 = vmul.f32 1.442695, %v1854_v12 }
 0x59a   : > { %v1810_v17 = vpop.xlane.xlu0 %1809 }
 0x59b   : > { %3416 = vpow2.f32 %v1885_v14  ;;  %v1855_v18 = vsub.f32 %v4451_v59, %v1810_v17  ;;  %v1856_v19 = vsub.f32 %v4453_v60, %v1810_v17 }
 0x59c   : > { %3418 = vpow2.f32 %v1887_v15 }
 0x59d   : > { %v1889_v20 = vmul.f32 1.442695, %v1855_v18  ;;  %v1891_v21 = vmul.f32 1.442695, %v1856_v19 }
 0x59e   : > { %v1813_v23 = vpop.xlane.xlu1 %1812 }
 0x59f   : > { %3420 = vpow2.f32 %v1889_v20  ;;  %v1857_v24 = vsub.f32 %v4457_v62, %v1813_v23  ;;  %v1858_v26 = vsub.f32 %v4459_v63, %v1813_v23 }
 0x5a0   : > { %3422 = vpow2.f32 %v1891_v21 }
 0x5a1   : > { %v1893_v56 = vmul.f32 1.442695, %v1857_v24  ;;  %v1895_v57 = vmul.f32 1.442695, %v1858_v26 }
 0x5a2   : > { %v1816_v27 = vpop.xlane.xlu1 %1815 }
 0x5a3   : > { %3424 = vpow2.f32 %v1893_v56  ;;  %v1859_v28 = vsub.f32 %v4463_v1, %v1816_v27  ;;  %v1860_v59 = vsub.f32 %v4465_v2, %v1816_v27 }
 0x5a4   : > { %3426 = vpow2.f32 %v1895_v57 }
 0x5a5   : > { %v3417_v60 = vpop.eup %3416  ;;  %v1897_v29 = vmul.f32 1.442695, %v1859_v28  ;;  %v1899_v30 = vmul.f32 1.442695, %v1860_v59 }
 0x5a6   : > { %v3419_v32 = vpop.eup %3418  ;;  %v1819_v33 = vpop.xlane.xlu0 %1818 }
 0x5a7   : > { %3428 = vpow2.f32 %v1897_v29  ;;  %2061 = vmatprep.mubr.f32.mxu1 %v3419_v32  ;;  %v1861_v62 = vsub.f32 %v4469_v4, %v1819_v33  ;;  %v1862_v63 = vsub.f32 %v4473_v7, %v1819_v33  ;;  %v1949_v35 = vadd.f32 %v3419_v32, %v3417_v60 }
 0x5a8   : > { %3430 = vpow2.f32 %v1899_v30  ;;  %2062 = vmatmul.mubr.f32.vlgmr.msra.gmra.mrb[0].mxu1 %v3417_v60 }
 0x5a9   : > { %v3421_v36 = vpop.eup %3420  ;;  %v1901_v37 = vmul.f32 1.442695, %v1861_v62  ;;  %v1903_v1 = vmul.f32 1.442695, %v1862_v63  ;;  %1950 = vadd.xlane.f32.xlu0 %v1949_v35 }
 0x5aa   : > { %v3423_v2 = vpop.eup %3422  ;;  %v1822_v38 = vpop.xlane.xlu1 %1821 }
 0x5ab   : > { %3432 = vpow2.f32 %v1901_v37  ;;  %2066 = vmatprep.mubr.f32.mxu1 %v3423_v2  ;;  %v1863_v39 = vsub.f32 %v4479_v13, %v1822_v38  ;;  %v1864_v42 = vsub.f32 %v4483_v16, %v1822_v38  ;;  %v1952_v45 = vadd.f32 %v3423_v2, %v3421_v36 }
 0x5ac   : > { %3434 = vpow2.f32 %v1903_v1  ;;  %2067 = vmatmul.mubr.f32.gmra.mrb[2].mxu1 %v3421_v36 }
 0x5ad   : > { %v3425_v4 = vpop.eup %3424  ;;  %v1905_v7 = vmul.f32 1.442695, %v1863_v39  ;;  %v1907_v48 = vmul.f32 1.442695, %v1864_v42  ;;  %1953 = vadd.xlane.f32.xlu1 %v1952_v45 }
 0x5ae   : > { %v3427_v51 = vpop.eup %3426  ;;  %v1825_v54 = vpop.xlane.xlu0 %1824 }
 0x5af   : > { %3436 = vpow2.f32 %v1905_v7  ;;  %2071 = vmatprep.mubr.f32.mxu1 %v3427_v51  ;;  %v1865_v61 = vsub.f32 %v4489_v22, %v1825_v54  ;;  %v1866_v5 = vsub.f32 %v4493_v25, %v1825_v54  ;;  %v1955_v9 = vadd.f32 %v3427_v51, %v3425_v4 }
 0x5b0   : > { %3438 = vpow2.f32 %v1907_v48  ;;  %2072 = vmatmul.mubr.f32.gmra.mrb[4].mxu1 %v3425_v4 }
 0x5b1   : > { %v3429_v13 = vpop.eup %3428  ;;  %v1909_v16 = vmul.f32 1.442695, %v1865_v61  ;;  %v1911_v10 = vmul.f32 1.442695, %v1866_v5  ;;  %1956 = vadd.xlane.f32.xlu0 %v1955_v9 }
 0x5b2   : > { %v3431_v11 = vpop.eup %3430  ;;  %v1828_v12 = vpop.xlane.xlu1 %1827 }
 0x5b3   : > { %3440 = vpow2.f32 %v1909_v16  ;;  %2076 = vmatprep.mubr.f32.mxu1 %v3431_v11  ;;  %v1867_v14 = vsub.f32 %v4499_v31, %v1828_v12  ;;  %v1868_v15 = vsub.f32 %v4503_v34, %v1828_v12  ;;  %v1958_v17 = vadd.f32 %v3431_v11, %v3429_v13 }
 0x5b4   : > { %3442 = vpow2.f32 %v1911_v10  ;;  %2077 = vmatmul.mubr.f32.gmra.mrb[6].mxu1 %v3429_v13 }
 0x5b5   : > { %v3433_v22 = vpop.eup %3432  ;;  %v1913_v25 = vmul.f32 1.442695, %v1867_v14  ;;  %v1915_v18 = vmul.f32 1.442695, %v1868_v15  ;;  %1959 = vadd.xlane.f32.xlu1 %v1958_v17 }
 0x5b6   : > { %v3435_v19 = vpop.eup %3434  ;;  %v1831_v20 = vpop.xlane.xlu0 %1830 }
 0x5b7   : > { %3444 = vpow2.f32 %v1913_v25  ;;  %2081 = vmatprep.mubr.f32.mxu1 %v3435_v19  ;;  %v1869_v21 = vsub.f32 %v4509_v40, %v1831_v20  ;;  %v1870_v23 = vsub.f32 %v4511_v41, %v1831_v20  ;;  %v1961_v24 = vadd.f32 %v3435_v19, %v3433_v22 }
 0x5b8   : > { %3446 = vpow2.f32 %v1915_v18  ;;  %2082 = vmatmul.mubr.f32.gmra.mrb[8].mxu1 %v3433_v22 }
 0x5b9   : > { %v3437_v31 = vpop.eup %3436  ;;  %v1917_v34 = vmul.f32 1.442695, %v1869_v21  ;;  %v1919_v26 = vmul.f32 1.442695, %v1870_v23  ;;  %1962 = vadd.xlane.f32.xlu0 %v1961_v24 }
 0x5ba   : > { %v3439_v56 = vpop.eup %3438  ;;  %v1834_v57 = vpop.xlane.xlu1 %1833 }
 0x5bb   : > { %3448 = vpow2.f32 %v1917_v34  ;;  %2086 = vmatprep.mubr.f32.mxu1 %v3439_v56  ;;  %v1871_v27 = vsub.f32 %v4515_v43, %v1834_v57  ;;  %v1872_v28 = vsub.f32 %v4517_v44, %v1834_v57  ;;  %v1964_v59 = vadd.f32 %v3439_v56, %v3437_v31 }
 0x5bc   : > { %3450 = vpow2.f32 %v1919_v26  ;;  %2087 = vmatmul.mubr.f32.gmra.mrb[10].mxu1 %v3437_v31 }
 0x5bd   : > { %v3441_v40 = vpop.eup %3440  ;;  %v1921_v41 = vmul.f32 1.442695, %v1871_v27  ;;  %v1923_v60 = vmul.f32 1.442695, %v1872_v28  ;;  %1965 = vadd.xlane.f32.xlu1 %v1964_v59 }
 0x5be   : > { %v3443_v29 = vpop.eup %3442  ;;  %v1837_v30 = vpop.xlane.xlu0 %1836 }
 0x5bf   : > { %3452 = vpow2.f32 %v1921_v41  ;;  %2091 = vmatprep.mubr.f32.mxu1 %v3443_v29  ;;  %v1873_v32 = vsub.f32 %v4521_v46, %v1837_v30  ;;  %v1874_v33 = vsub.f32 %v4523_v47, %v1837_v30  ;;  %v1967_v62 = vadd.f32 %v3443_v29, %v3441_v40 }
 0x5c0   : > { %3454 = vpow2.f32 %v1923_v60  ;;  %2092 = vmatmul.mubr.f32.gmra.mrb[12].mxu1 %v3441_v40 }
 0x5c1   : > { %v3445_v43 = vpop.eup %3444  ;;  %v1925_v44 = vmul.f32 1.442695, %v1873_v32  ;;  %v1927_v63 = vmul.f32 1.442695, %v1874_v33  ;;  %1968 = vadd.xlane.f32.xlu0 %v1967_v62 }
 0x5c2   : > { %v3447_v35 = vpop.eup %3446  ;;  %v1840_v36 = vpop.xlane.xlu1 %1839 }
 0x5c3   : > { %3456 = vpow2.f32 %v1925_v44  ;;  %2096 = vmatprep.mubr.f32.mxu1 %v3447_v35  ;;  %v1875_v37 = vsub.f32 %v4527_v49, %v1840_v36  ;;  %v1876_v1 = vsub.f32 %v4529_v50, %v1840_v36  ;;  %v1970_v2 = vadd.f32 %v3447_v35, %v3445_v43 }
 0x5c4   : > { %3458 = vpow2.f32 %v1927_v63  ;;  %2097 = vmatmul.mubr.f32.gmra.mrb[14].mxu1 %v3445_v43 }
 0x5c5   : > { %v3449_v46 = vpop.eup %3448  ;;  %v1929_v47 = vmul.f32 1.442695, %v1875_v37  ;;  %v1931_v38 = vmul.f32 1.442695, %v1876_v1  ;;  %1971 = vadd.xlane.f32.xlu1 %v1970_v2 }
 0x5c6   : > { %v3451_v39 = vpop.eup %3450  ;;  %v1843_v42 = vpop.xlane.xlu0 %1842 }
 0x5c7   : > { %3460 = vpow2.f32 %v1929_v47  ;;  %2101 = vmatprep.mubr.f32.mxu1 %v3451_v39  ;;  %v1877_v45 = vsub.f32 %v4533_v52, %v1843_v42  ;;  %v1878_v4 = vsub.f32 %v4535_v53, %v1843_v42  ;;  %v1973_v7 = vadd.f32 %v3451_v39, %v3449_v46 }
 0x5c8   : > { %3462 = vpow2.f32 %v1931_v38  ;;  %2102 = vmatmul.mubr.f32.gmra.mrb[16].mxu1 %v3449_v46 }
 0x5c9   : > { %v3453_v49 = vpop.eup %3452  ;;  %v1933_v50 = vmul.f32 1.442695, %v1877_v45  ;;  %v1935_v48 = vmul.f32 1.442695, %v1878_v4  ;;  %1974 = vadd.xlane.f32.xlu0 %v1973_v7 }
 0x5ca   : > { %v3455_v51 = vpop.eup %3454  ;;  %v1846_v54 = vpop.xlane.xlu1 %1845 }
 0x5cb   : > { %3464 = vpow2.f32 %v1933_v50  ;;  %2106 = vmatprep.mubr.f32.mxu1 %v3455_v51  ;;  %v1879_v61 = vsub.f32 %v4539_v55, %v1846_v54  ;;  %v1880_v5 = vsub.f32 %v4541_v58, %v1846_v54  ;;  %v1976_v9 = vadd.f32 %v3455_v51, %v3453_v49 }
 0x5cc   : > { %3466 = vpow2.f32 %v1935_v48  ;;  %2107 = vmatmul.mubr.f32.gmra.mrb[18].mxu1 %v3453_v49 }
 0x5cd   : > { %v3457_v52 = vpop.eup %3456  ;;  %v1937_v53 = vmul.f32 1.442695, %v1879_v61  ;;  %v1939_v13 = vmul.f32 1.442695, %v1880_v5  ;;  %1977 = vadd.xlane.f32.xlu1 %v1976_v9 }
 0x5ce   : > { %v3459_v16 = vpop.eup %3458  ;;  %v1849_v10 = vpop.xlane.xlu0 %1848 }
 0x5cf   : > { %3468 = vpow2.f32 %v1937_v53  ;;  %2111 = vmatprep.mubr.f32.mxu1 %v3459_v16  ;;  %v1881_v11 = vsub.f32 %v4545_v0, %v1849_v10  ;;  %v1882_v12 = vsub.f32 %v4547_v3, %v1849_v10  ;;  %v1979_v14 = vadd.f32 %v3459_v16, %v3457_v52 }
 0x5d0   : > { %3470 = vpow2.f32 %v1939_v13  ;;  %2112 = vmatmul.mubr.f32.gmra.mrb[20].mxu1 %v3457_v52 }
 0x5d1   : > { %v3461_v55 = vpop.eup %3460  ;;  %v1941_v58 = vmul.f32 1.442695, %v1881_v11  ;;  %v1943_v15 = vmul.f32 1.442695, %v1882_v12  ;;  %1980 = vadd.xlane.f32.xlu0 %v1979_v14 }
 0x5d2   : > { %v3463_v17 = vpop.eup %3462  ;;  %v1852_v22 = vpop.xlane.xlu1 %1851 }
 0x5d3   : > { %3472 = vpow2.f32 %v1941_v58  ;;  %2116 = vmatprep.mubr.f32.mxu1 %v3463_v17  ;;  %v1883_v25 = vsub.f32 %v4551_v6, %v1852_v22  ;;  %v1884_v18 = vsub.f32 %v4553_v8, %v1852_v22  ;;  %v1982_v19 = vadd.f32 %v3463_v17, %v3461_v55 }
 0x5d4   : > { %3474 = vpow2.f32 %v1943_v15  ;;  %2117 = vmatmul.mubr.f32.gmra.mrb[22].mxu1 %v3461_v55 }
 0x5d5   : > { %v3465_v0 = vpop.eup %3464  ;;  %v1945_v3 = vmul.f32 1.442695, %v1883_v25  ;;  %v1947_v20 = vmul.f32 1.442695, %v1884_v18  ;;  %1983 = vadd.xlane.f32.xlu1 %v1982_v19 }
 0x5d6   : > { %v3467_v21 = vpop.eup %3466 }
 0x5d7   : > { %3476 = vpow2.f32 %v1945_v3  ;;  %2121 = vmatprep.mubr.f32.mxu1 %v3467_v21  ;;  %v1985_v23 = vadd.f32 %v3467_v21, %v3465_v0 }
 0x5d8   : > { %3478 = vpow2.f32 %v1947_v20  ;;  %2122 = vmatmul.mubr.f32.gmra.mrb[24].mxu1 %v3465_v0 }
 0x5d9   : > { %v3469_v24 = vpop.eup %3468  ;;  %1986 = vadd.xlane.f32.xlu0 %v1985_v23 }
 0x5da   : > { %v3471_v31 = vpop.eup %3470 }
 0x5db   : > { %2126 = vmatprep.mubr.f32.mxu1 %v3471_v31  ;;  %v1988_v6 = vadd.f32 %v3471_v31, %v3469_v24 }
 0x5dc   : > { %2127 = vmatmul.mubr.f32.gmra.mrb[26].mxu1 %v3469_v24 }
 0x5dd   : > { %v3473_v8 = vpop.eup %3472  ;;  %1989 = vadd.xlane.f32.xlu1 %v1988_v6 }
 0x5de   : > { %v3475_v34 = vpop.eup %3474 }
 0x5df   : > { %2131 = vmatprep.mubr.f32.mxu1 %v3475_v34  ;;  %v1991_v26 = vadd.f32 %v3475_v34, %v3473_v8 }
 0x5e0   : > { %2132 = vmatmul.mubr.f32.gmra.mrb[28].mxu1 %v3473_v8 }
 0x5e1   : > { %v3477_v56 = vpop.eup %3476  ;;  %1992 = vadd.xlane.f32.xlu0 %v1991_v26 }
 0x5e2   : > { %v3479_v57 = vpop.eup %3478 }
 0x5e3   : > { %2136 = vmatprep.mubr.f32.mxu1 %v3479_v57  ;;  %v1994_v27 = vadd.f32 %v3479_v57, %v3477_v56 }
 0x5e4   : > { %2137 = vmatmul.mubr.f32.gmra.mrb[30].mxu1 %v3477_v56 }
 0x5e5   : > { %1995 = vadd.xlane.f32.xlu1 %v1994_v27 }
 0x636   : > { %v1951_v28 = vpop.xlane.xlu0 %1950 }
 0x637   : > { %3480 = vrcp.f32 %v1951_v28 }
 0x63a   : > { %v1954_v59 = vpop.xlane.xlu1 %1953 }
 0x63b   : > { %3482 = vrcp.f32 %v1954_v59 }
 0x63e   : > { %v1957_v40 = vpop.xlane.xlu0 %1956 }
 0x63f   : > { %3484 = vrcp.f32 %v1957_v40 }
 0x641   : > { %v3481_v32 = vpop.eup %3480 }
 0x642   : > { %v1960_v29 = vpop.xlane.xlu1 %1959 }
 0x643   : > { %3486 = vrcp.f32 %v1960_v29 }
 0x645   : > { %v3483_v35 = vpop.eup %3482 }
 0x646   : > { %v1963_v44 = vpop.xlane.xlu0 %1962 }
 0x647   : > { %3488 = vrcp.f32 %v1963_v44 }
 0x649   : > { %v3485_v47 = vpop.eup %3484 }
 0x64a   : > { %v1966_v2 = vpop.xlane.xlu1 %1965 }
 0x64b   : > { %3490 = vrcp.f32 %v1966_v2 }
 0x64d   : > { %v3487_v7 = vpop.eup %3486 }
 0x64e   : > { %v1969_v45 = vpop.xlane.xlu0 %1968 }
 0x64f   : > { %3492 = vrcp.f32 %v1969_v45 }
 0x651   : > { %v3489_v61 = vpop.eup %3488 }
 0x652   : > { %v1972_v51 = vpop.xlane.xlu1 %1971 }
 0x653   : > { %3494 = vrcp.f32 %v1972_v51 }
 0x655   : > { %v3491_v16 = vpop.eup %3490 }
 0x656   : > { %v1975_v53 = vpop.xlane.xlu0 %1974 }
 0x657   : > { %3496 = vrcp.f32 %v1975_v53 }
 0x659   : > { %v3493_v58 = vpop.eup %3492 }
 0x65a   : > { %v1978_v14 = vpop.xlane.xlu1 %1977 }
 0x65b   : > { %3498 = vrcp.f32 %v1978_v14  ;;  %v2232_v14 = vld [vmem:[#allocation15 + $0x20] sm:$0xff] (!%p2709_p3) }
 0x65d   : > { %v3495_v19 = vpop.eup %3494 }
 0x65e   : > { %v1981_v25 = vpop.xlane.xlu0 %1980 }
 0x65f   : > { %3500 = vrcp.f32 %v1981_v25  ;;  %v2236_v25 = vld [vmem:[#allocation15 + $0x40] sm:$0xff] (!%p2709_p3) }
 0x661   : > { %v3497_v24 = vpop.eup %3496 }
 0x662   : > { %v1984_v21 = vpop.xlane.xlu1 %1983 }
 0x663   : > { %3502 = vrcp.f32 %v1984_v21  ;;  %v2240_v21 = vld [vmem:[#allocation15 + $0x60] sm:$0xff] (!%p2709_p3) }
 0x665   : > { %v3499_v56 = vpop.eup %3498 }
 0x666   : > { %v1987_v34 = vpop.xlane.xlu0 %1986 }
 0x667   : > { %3504 = vrcp.f32 %v1987_v34  ;;  %v2244_v34 = vld [vmem:[#allocation15 + $0x80] sm:$0xff] (!%p2709_p3) }
 0x66a   : > { %v1990_v59 = vpop.xlane.xlu1 %1989 }
 0x66b   : > { %3506 = vrcp.f32 %v1990_v59  ;;  %v2248_v59 = vld [vmem:[#allocation15 + $0xa0] sm:$0xff] (!%p2709_p3) }
 0x67b   : > { %v2816_v41 = vpop.f32.mrb[0].mxu1 }
 0x67c   : > { %v2817_v60 = vpop.f32.mrb[1].mxu1 }
 0x67d   : > { %v2818_v30 = vadd.f32 %v2817_v60, %v2816_v41  ;;  %v3501_v41 = vpop.eup %3500 }
 0x67f   : > { %v2158_v33 = vmul.f32 %v3481_v32, %v2818_v30  ;;  %v2819_v62 = vpop.f32.mrb[2].mxu1  ;;  %v1993_v32 = vpop.xlane.xlu0 %1992 }
 0x680   : > { %v2820_v43 = vpop.f32.mrb[3].mxu1  ;;  %3508 = vrcp.f32 %v1993_v32 }
 0x681   : > { %2176 = vst [vmem:[%s4590_s4] sm:$0xff] %v2158_v33  ;;  %v2821_v63 = vadd.f32 %v2820_v43, %v2819_v62  ;;  %v3503_v62 = vpop.eup %3502 }
 0x683   : > { %v2159_v36 = vmul.f32 %v3483_v35, %v2821_v63  ;;  %v2822_v37 = vpop.f32.mrb[4].mxu1  ;;  %v1996_v35 = vpop.xlane.xlu1 %1995 }
 0x684   : > { %v2823_v1 = vpop.f32.mrb[5].mxu1  ;;  %3510 = vrcp.f32 %v1996_v35 }
 0x685   : > { %2177 = vst [vmem:[%s4590_s4 + $0x10] sm:$0xff] %v2159_v36  ;;  %v2824_v46 = vadd.f32 %v2823_v1, %v2822_v37  ;;  %v3505_v37 = vpop.eup %3504 }
 0x687   : > { %v2160_v38 = vmul.f32 %v3485_v47, %v2824_v46  ;;  %v2825_v39 = vpop.f32.mrb[6].mxu1 }
 0x688   : > { %v2826_v42 = vpop.f32.mrb[7].mxu1 }
 0x689   : > { %2178 = vst [vmem:[%s4590_s4 + $0x20] sm:$0xff] %v2160_v38  ;;  %v2827_v4 = vadd.f32 %v2826_v42, %v2825_v39  ;;  %v3507_v38 = vpop.eup %3506 }
 0x68b   : > { %v2161_v49 = vmul.f32 %v3487_v7, %v2827_v4  ;;  %v2828_v50 = vpop.f32.mrb[8].mxu1  ;;  %v3509_v7 = vpop.eup %3508 }
 0x68c   : > { %v2829_v48 = vpop.f32.mrb[9].mxu1 }
 0x68d   : > { %2179 = vst [vmem:[%s4590_s4 + $0x30] sm:$0xff] %v2161_v49  ;;  %v2830_v54 = vadd.f32 %v2829_v48, %v2828_v50 }
 0x68f   : > { %v2162_v5 = vmul.f32 %v3489_v61, %v2830_v54  ;;  %v2831_v9 = vpop.f32.mrb[10].mxu1  ;;  %v3511_v54 = vpop.eup %3510 }
 0x690   : > { %v2832_v52 = vpop.f32.mrb[11].mxu1 }
 0x691   : > { %2180 = vst [vmem:[%s4590_s4 + $0x40] sm:$0xff] %v2162_v5  ;;  %v2833_v13 = vadd.f32 %v2832_v52, %v2831_v9  ;;  %v2229_v5 = vld [vmem:[#allocation15 + $0x8] sm:$0xff] (!%p2709_p3)  ;;  %v2231_v9 = vld [vmem:[#allocation15 + $0x18] sm:$0xff] (!%p2709_p3)  ;;  %v2228_v52 = vld [vmem:[#allocation15] sm:$0xff] (!%p2709_p3) }
 0x692   : > { %v3120_v53 = vpack.c.bf16 (!%p2709_p3), %v2231_v9, %v2229_v5  ;;  %v2268_v9 = vld [vmem:[#allocation15 + $0x140] sm:$0xff] (!%p2709_p3) }
 0x693   : > { %v2163_v10 = vmul.f32 %v3491_v16, %v2833_v13  ;;  %v2834_v11 = vpop.f32.mrb[12].mxu1  ;;  %v2230_v13 = vld [vmem:[#allocation15 + $0x10] sm:$0xff] (!%p2709_p3)  ;;  %v2233_v16 = vld [vmem:[#allocation15 + $0x28] sm:$0xff] (!%p2709_p3) }
 0x694   : > { %v2835_v12 = vpop.f32.mrb[13].mxu1  ;;  %3121 = vmatprep.subr.bf16.mxu0 (!%p2709_p3), %v3120_v53  ;;  %3216 = vmatprep.subr.bf16.mxu1 (!%p2709_p3), %v3120_v53  ;;  %v2273_v53 = vld [vmem:[#allocation15 + $0x168] sm:$0xff] (!%p2709_p3) }
 0x695   : > { %2181 = vst [vmem:[%s4590_s4 + $0x50] sm:$0xff] %v2163_v10  ;;  %v2836_v55 = vadd.f32 %v2835_v12, %v2834_v11  ;;  %v2235_v10 = vld [vmem:[#allocation15 + $0x38] sm:$0xff] (!%p2709_p3)  ;;  %v3122_v11 = vpack.c.bf16 (!%p2709_p3), %v2230_v13, %v2228_v52  ;;  %v2270_v52 = vld [vmem:[#allocation15 + $0x150] sm:$0xff] (!%p2709_p3) }
 0x696   : > { %v3124_v12 = vpack.c.bf16 (!%p2709_p3), %v2235_v10, %v2233_v16  ;;  %v2275_v13 = vld [vmem:[#allocation15 + $0x178] sm:$0xff] (!%p2709_p3)  ;;  %v3162_v16 = vpack.c.bf16 (!%p2709_p3), %v2270_v52, %v2268_v9 }
 0x697   : > { %v2164_v15 = vmul.f32 %v3493_v58, %v2836_v55  ;;  %v2837_v17 = vpop.f32.mrb[14].mxu1  ;;  %v2234_v55 = vld [vmem:[#allocation15 + $0x30] sm:$0xff] (!%p2709_p3)  ;;  %v2237_v58 = vld [vmem:[#allocation15 + $0x48] sm:$0xff] (!%p2709_p3)  ;;  %3123 = vmatpush1.bf16.msra.mxu0 (!%p2709_p3), %v3122_v11  ;;  %3232 = vmatpush1.bf16.msra.mxu1 (!%p2709_p3), %v3122_v11  ;;  %v3164_v10 = vpack.c.bf16 (!%p2709_p3), %v2275_v13, %v2273_v53  ;;  %v2272_v11 = vld [vmem:[#allocation15 + $0x160] sm:$0xff] (!%p2709_p3) }
 0x698   : > { %v2838_v22 = vpop.f32.mrb[15].mxu1  ;;  %3125 = vmatprep.subr.bf16.mxu0 (!%p2709_p3), %v3124_v12  ;;  %3217 = vmatprep.subr.bf16.mxu1 (!%p2709_p3), %v3124_v12  ;;  %v2274_v12 = vld [vmem:[#allocation15 + $0x170] sm:$0xff] (!%p2709_p3)  ;;  %v2292_v53 = vld [vmem:[%s4843_s30] sm:$0x3] (!%p2709_p3) }
 0x699   : > { %2182 = vst [vmem:[%s4590_s4 + $0x60] sm:$0xff] %v2164_v15  ;;  %v2839_v18 = vadd.f32 %v2838_v22, %v2837_v17  ;;  %v2239_v15 = vld [vmem:[#allocation15 + $0x58] sm:$0xff] (!%p2709_p3)  ;;  %v3126_v17 = vpack.c.bf16 (!%p2709_p3), %v2234_v55, %v2232_v14  ;;  %v2277_v14 = vld [vmem:[#allocation15 + $0x188] sm:$0xff] (!%p2709_p3) }
 0x69a   : > { %v3128_v22 = vpack.c.bf16 (!%p2709_p3), %v2239_v15, %v2237_v58  ;;  %v2279_v55 = vld [vmem:[#allocation15 + $0x198] sm:$0xff] (!%p2709_p3)  ;;  %v3166_v58 = vpack.c.bf16 (!%p2709_p3), %v2274_v12, %v2272_v11 }
 0x69b   : > { %v2165_v0 = vmul.f32 %v3495_v19, %v2839_v18  ;;  %v2840_v3 = vpop.f32.mrb[16].mxu1  ;;  %v2238_v18 = vld [vmem:[#allocation15 + $0x50] sm:$0xff] (!%p2709_p3)  ;;  %v2241_v19 = vld [vmem:[#allocation15 + $0x68] sm:$0xff] (!%p2709_p3)  ;;  %3127 = vmatpush1.bf16.msra.mxu0 (!%p2709_p3), %v3126_v17  ;;  %3233 = vmatpush1.bf16.msra.mxu1 (!%p2709_p3), %v3126_v17  ;;  %v3168_v15 = vpack.c.bf16 (!%p2709_p3), %v2279_v55, %v2277_v14  ;;  %v2276_v17 = vld [vmem:[#allocation15 + $0x180] sm:$0xff] (!%p2709_p3) }
 0x69c   : > { %v2841_v20 = vpop.f32.mrb[17].mxu1  ;;  %3129 = vmatprep.subr.bf16.mxu0 (!%p2709_p3), %v3128_v22  ;;  %3218 = vmatprep.subr.bf16.mxu1 (!%p2709_p3), %v3128_v22  ;;  %v2278_v22 = vld [vmem:[#allocation15 + $0x190] sm:$0xff] (!%p2709_p3) }
 0x69d   : > { %2183 = vst [vmem:[%s4590_s4 + $0x70] sm:$0xff] %v2165_v0  ;;  %v2842_v23 = vadd.f32 %v2841_v20, %v2840_v3  ;;  %v2243_v0 = vld [vmem:[#allocation15 + $0x78] sm:$0xff] (!%p2709_p3)  ;;  %v3130_v3 = vpack.c.bf16 (!%p2709_p3), %v2238_v18, %v2236_v25  ;;  %v2281_v25 = vld [vmem:[#allocation15 + $0x1a8] sm:$0xff] (!%p2709_p3) }
 0x69e   : > { %v3132_v20 = vpack.c.bf16 (!%p2709_p3), %v2243_v0, %v2241_v19  ;;  %v2283_v18 = vld [vmem:[#allocation15 + $0x1b8] sm:$0xff] (!%p2709_p3)  ;;  %v3170_v19 = vpack.c.bf16 (!%p2709_p3), %v2278_v22, %v2276_v17 }
 0x69f   : > { %v2166_v31 = vmul.f32 %v3497_v24, %v2842_v23  ;;  %v2843_v6 = vpop.f32.mrb[18].mxu1  ;;  %v2242_v23 = vld [vmem:[#allocation15 + $0x70] sm:$0xff] (!%p2709_p3)  ;;  %v2245_v24 = vld [vmem:[#allocation15 + $0x88] sm:$0xff] (!%p2709_p3)  ;;  %3131 = vmatpush1.bf16.msra.mxu0 (!%p2709_p3), %v3130_v3  ;;  %3234 = vmatpush1.bf16.msra.mxu1 (!%p2709_p3), %v3130_v3  ;;  %v3172_v0 = vpack.c.bf16 (!%p2709_p3), %v2283_v18, %v2281_v25  ;;  %v2280_v3 = vld [vmem:[#allocation15 + $0x1a0] sm:$0xff] (!%p2709_p3) }
 0x6a0   : > { %v2844_v8 = vpop.f32.mrb[19].mxu1  ;;  %3133 = vmatprep.subr.bf16.mxu0 (!%p2709_p3), %v3132_v20  ;;  %3219 = vmatprep.subr.bf16.mxu1 (!%p2709_p3), %v3132_v20  ;;  %v2282_v20 = vld [vmem:[#allocation15 + $0x1b0] sm:$0xff] (!%p2709_p3) }
 0x6a1   : > { %2184 = vst [vmem:[%s4590_s4 + $0x80] sm:$0xff] %v2166_v31  ;;  %v2845_v26 = vadd.f32 %v2844_v8, %v2843_v6  ;;  %v2247_v31 = vld [vmem:[#allocation15 + $0x98] sm:$0xff] (!%p2709_p3)  ;;  %v3134_v6 = vpack.c.bf16 (!%p2709_p3), %v2242_v23, %v2240_v21  ;;  %v2285_v21 = vld [vmem:[#allocation15 + $0x1c8] sm:$0xff] (!%p2709_p3) }
 0x6a2   : > { %v3136_v8 = vpack.c.bf16 (!%p2709_p3), %v2247_v31, %v2245_v24  ;;  %v2287_v23 = vld [vmem:[#allocation15 + $0x1d8] sm:$0xff] (!%p2709_p3)  ;;  %v3174_v24 = vpack.c.bf16 (!%p2709_p3), %v2282_v20, %v2280_v3 }
 0x6a3   : > { %v2167_v57 = vmul.f32 %v3499_v56, %v2845_v26  ;;  %v2846_v27 = vpop.f32.mrb[20].mxu1  ;;  %v2246_v26 = vld [vmem:[#allocation15 + $0x90] sm:$0xff] (!%p2709_p3)  ;;  %v2249_v56 = vld [vmem:[#allocation15 + $0xa8] sm:$0xff] (!%p2709_p3)  ;;  %3135 = vmatpush1.bf16.msra.mxu0 (!%p2709_p3), %v3134_v6  ;;  %3235 = vmatpush1.bf16.msra.mxu1 (!%p2709_p3), %v3134_v6  ;;  %v3176_v31 = vpack.c.bf16 (!%p2709_p3), %v2287_v23, %v2285_v21  ;;  %v2284_v6 = vld [vmem:[#allocation15 + $0x1c0] sm:$0xff] (!%p2709_p3) }
 0x6a4   : > { %v2847_v28 = vpop.f32.mrb[21].mxu1  ;;  %3137 = vmatprep.subr.bf16.mxu0 (!%p2709_p3), %v3136_v8  ;;  %3220 = vmatprep.subr.bf16.mxu1 (!%p2709_p3), %v3136_v8  ;;  %v2286_v8 = vld [vmem:[#allocation15 + $0x1d0] sm:$0xff] (!%p2709_p3) }
 0x6a5   : > { %2185 = vst [vmem:[%s4590_s4 + $0x90] sm:$0xff] %v2167_v57  ;;  %v2848_v40 = vadd.f32 %v2847_v28, %v2846_v27  ;;  %v2251_v57 = vld [vmem:[#allocation15 + $0xb8] sm:$0xff] (!%p2709_p3)  ;;  %v3138_v27 = vpack.c.bf16 (!%p2709_p3), %v2246_v26, %v2244_v34  ;;  %v2289_v34 = vld [vmem:[#allocation15 + $0x1e8] sm:$0xff] (!%p2709_p3) }
 0x6a6   : > { %v3140_v28 = vpack.c.bf16 (!%p2709_p3), %v2251_v57, %v2249_v56  ;;  %v2291_v26 = vld [vmem:[#allocation15 + $0x1f8] sm:$0xff] (!%p2709_p3)  ;;  %v3178_v56 = vpack.c.bf16 (!%p2709_p3), %v2286_v8, %v2284_v6 }
 0x6a7   : > { %v2168_v60 = vmul.f32 %v3501_v41, %v2848_v40  ;;  %v2849_v29 = vpop.f32.mrb[22].mxu1  ;;  %v2250_v40 = vld [vmem:[#allocation15 + $0xb0] sm:$0xff] (!%p2709_p3)  ;;  %v2253_v41 = vld [vmem:[#allocation15 + $0xc8] sm:$0xff] (!%p2709_p3)  ;;  %3139 = vmatpush1.bf16.msra.mxu0 (!%p2709_p3), %v3138_v27  ;;  %3236 = vmatpush1.bf16.msra.mxu1 (!%p2709_p3), %v3138_v27  ;;  %v3180_v57 = vpack.c.bf16 (!%p2709_p3), %v2291_v26, %v2289_v34  ;;  %v2288_v27 = vld [vmem:[#allocation15 + $0x1e0] sm:$0xff] (!%p2709_p3) }
 0x6a8   : > { %v2850_v30 = vpop.f32.mrb[23].mxu1  ;;  %3141 = vmatprep.subr.bf16.mxu0 (!%p2709_p3), %v3140_v28  ;;  %3221 = vmatprep.subr.bf16.mxu1 (!%p2709_p3), %v3140_v28  ;;  %v2290_v28 = vld [vmem:[#allocation15 + $0x1f0] sm:$0xff] (!%p2709_p3) }
 0x6a9   : > { %2186 = vst [vmem:[%s4590_s4 + $0xa0] sm:$0xff] %v2168_v60  ;;  %v2851_v33 = vadd.f32 %v2850_v30, %v2849_v29  ;;  %v2255_v60 = vld [vmem:[#allocation15 + $0xd8] sm:$0xff] (!%p2709_p3)  ;;  %v3142_v29 = vpack.c.bf16 (!%p2709_p3), %v2250_v40, %v2248_v59  ;;  %v2252_v30 = vld [vmem:[#allocation15 + $0xc0] sm:$0xff] (!%p2709_p3)  ;;  %v3182_v59 = vpack.c.bf16 (!%p2709_p3), %v2290_v28, %v2288_v27 }
 0x6aa   : > { %v3144_v32 = vpack.c.bf16 (!%p2709_p3), %v2255_v60, %v2253_v41 }
 0x6ab   : > { %v2169_v43 = vmul.f32 %v3503_v62, %v2851_v33  ;;  %v2852_v44 = vpop.f32.mrb[24].mxu1  ;;  %v2254_v33 = vld [vmem:[#allocation15 + $0xd0] sm:$0xff] (!%p2709_p3)  ;;  %3143 = vmatpush1.bf16.msra.mxu0 (!%p2709_p3), %v3142_v29  ;;  %3237 = vmatpush1.bf16.msra.mxu1 (!%p2709_p3), %v3142_v29 }
 0x6ac   : > { %v2853_v63 = vpop.f32.mrb[25].mxu1  ;;  %v3146_v35 = vpack.c.bf16 (!%p2709_p3), %v2254_v33, %v2252_v30  ;;  %3145 = vmatprep.subr.bf16.mxu0 (!%p2709_p3), %v3144_v32  ;;  %3222 = vmatprep.subr.bf16.mxu1 (!%p2709_p3), %v3144_v32 }
 0x6ad   : > { %2187 = vst [vmem:[%s4590_s4 + $0xb0] sm:$0xff] %v2169_v43  ;;  %v2854_v36 = vadd.f32 %v2853_v63, %v2852_v44  ;;  %v2257_v44 = vld [vmem:[#allocation15 + $0xe8] sm:$0xff] (!%p2709_p3)  ;;  %v2259_v63 = vld [vmem:[#allocation15 + $0xf8] sm:$0xff] (!%p2709_p3) }
 0x6af   : > { %v2170_v1 = vmul.f32 %v3505_v37, %v2854_v36  ;;  %v2855_v2 = vpop.f32.mrb[26].mxu1  ;;  %v3148_v36 = vpack.c.bf16 (!%p2709_p3), %v2259_v63, %v2257_v44  ;;  %v2256_v37 = vld [vmem:[#allocation15 + $0xe0] sm:$0xff] (!%p2709_p3)  ;;  %3147 = vmatpush1.bf16.msra.mxu0 (!%p2709_p3), %v3146_v35  ;;  %3238 = vmatpush1.bf16.msra.mxu1 (!%p2709_p3), %v3146_v35 }
 0x6b0   : > { %v2856_v46 = vpop.f32.mrb[27].mxu1 }
 0x6b1   : > { %2188 = vst [vmem:[%s4590_s4 + $0xc0] sm:$0xff] %v2170_v1  ;;  %v2857_v47 = vadd.f32 %v2856_v46, %v2855_v2  ;;  %v2258_v1 = vld [vmem:[#allocation15 + $0xf0] sm:$0xff] (!%p2709_p3)  ;;  %v2261_v2 = vld [vmem:[#allocation15 + $0x108] sm:$0xff] (!%p2709_p3)  ;;  %v2263_v46 = vld [vmem:[#allocation15 + $0x118] sm:$0xff] (!%p2709_p3)  ;;  %3149 = vmatprep.subr.bf16.mxu0 (!%p2709_p3), %v3148_v36  ;;  %3223 = vmatprep.subr.bf16.mxu1 (!%p2709_p3), %v3148_v36 }
 0x6b3   : > { %v2171_v39 = vmul.f32 %v3507_v38, %v2857_v47  ;;  %v2858_v42 = vpop.f32.mrb[28].mxu1  ;;  %v3150_v47 = vpack.c.bf16 (!%p2709_p3), %v2258_v1, %v2256_v37  ;;  %v3152_v38 = vpack.c.bf16 (!%p2709_p3), %v2263_v46, %v2261_v2 }
 0x6b4   : > { %v2859_v45 = vpop.f32.mrb[29].mxu1 }
 0x6b5   : > { %2189 = vst [vmem:[%s4590_s4 + $0xd0] sm:$0xff] %v2171_v39  ;;  %v2860_v4 = vadd.f32 %v2859_v45, %v2858_v42  ;;  %v2260_v39 = vld [vmem:[#allocation15 + $0x100] sm:$0xff] (!%p2709_p3)  ;;  %v2262_v42 = vld [vmem:[#allocation15 + $0x110] sm:$0xff] (!%p2709_p3)  ;;  %v2265_v45 = vld [vmem:[#allocation15 + $0x128] sm:$0xff] (!%p2709_p3)  ;;  %3151 = vmatpush1.bf16.msra.mxu0 (!%p2709_p3), %v3150_v47  ;;  %3239 = vmatpush1.bf16.msra.mxu1 (!%p2709_p3), %v3150_v47 }
 0x6b6   : > { %3153 = vmatprep.subr.bf16.mxu0 (!%p2709_p3), %v3152_v38  ;;  %3224 = vmatprep.subr.bf16.mxu1 (!%p2709_p3), %v3152_v38 }
 0x6b7   : > { %v2172_v49 = vmul.f32 %v3509_v7, %v2860_v4  ;;  %v2861_v50 = vpop.f32.mrb[30].mxu1  ;;  %2195 = sbr.rel (%p2709_p3) target bundleno = 1998 (0x7ce), region = 84  ;;  %v2267_v4 = vld [vmem:[#allocation15 + $0x138] sm:$0xff] (!%p2709_p3)  ;;  %v3154_v7 = vpack.c.bf16 (!%p2709_p3), %v2262_v42, %v2260_v39 }
 0x6b8   : > { %v2862_v48 = vpop.f32.mrb[31].mxu1 }
 0x6b9   : > { %2190 = vst [vmem:[%s4590_s4 + $0xe0] sm:$0xff] %v2172_v49  ;;  %v2863_v51 = vadd.f32 %v2862_v48, %v2861_v50  ;;  %v3156_v49 = vpack.c.bf16 (!%p2709_p3), %v2267_v4, %v2265_v45  ;;  %v2264_v50 = vld [vmem:[#allocation15 + $0x120] sm:$0xff] (!%p2709_p3)  ;;  %v2266_v48 = vld [vmem:[#allocation15 + $0x130] sm:$0xff] (!%p2709_p3)  ;;  %3155 = vmatpush1.bf16.msra.mxu0 (!%p2709_p3), %v3154_v7  ;;  %3240 = vmatpush1.bf16.msra.mxu1 (!%p2709_p3), %v3154_v7 }
 0x6bb   : > { %v2173_v61 = vmul.f32 %v3511_v54, %v2863_v51  ;;  %v2269_v51 = vld [vmem:[#allocation15 + $0x148] sm:$0xff] (!%p2709_p3)  ;;  %v2271_v54 = vld [vmem:[#allocation15 + $0x158] sm:$0xff] (!%p2709_p3)  ;;  %3157 = vmatprep.subr.bf16.mxu0 (!%p2709_p3), %v3156_v49  ;;  %3225 = vmatprep.subr.bf16.mxu1 (!%p2709_p3), %v3156_v49 }
 0x6bc   : > { %v3160_v5 = vpack.c.bf16 (!%p2709_p3), %v2271_v54, %v2269_v51 }
 0x6bd   : > { %2191 = vst [vmem:[%s4590_s4 + $0xf0] sm:$0xff] %v2173_v61  ;;  %v3158_v61 = vpack.c.bf16 (!%p2709_p3), %v2266_v48, %v2264_v50 }
 0x6bf   : > { %3159 = vmatpush1.bf16.msra.mxu0 %v3158_v61  ;;  %3241 = vmatpush1.bf16.msra.mxu1 %v3158_v61 }
 0x6c0   : > { %3161 = vmatprep.subr.bf16.mxu0 %v3160_v5  ;;  %3226 = vmatprep.subr.bf16.mxu1 %v3160_v5  ;;  %v2294_v5 = vlaneseq }
 0x6c2   : > { %v2295_v9 = vshrl.u32 %v2294_v5, 7 }
 0x6c3   : > { %3163 = vmatpush1.bf16.msra.mxu0 %v3162_v16  ;;  %3242 = vmatpush1.bf16.msra.mxu1 %v3162_v16 }
 0x6c4   : > { %v2197_v62 = vld [vmem:[#allocation5 + $0x8] sm:$0xff]  ;;  %3165 = vmatprep.subr.bf16.mxu0 %v3164_v10  ;;  %3227 = vmatprep.subr.bf16.mxu1 %v3164_v10  ;;  %v2196_v40 = vld [vmem:[#allocation5] sm:$0xff]  ;;  %v2199_v60 = vld [vmem:[#allocation5 + $0x18] sm:$0xff]  ;;  %v2296_v52 = vsub.s32 0, %v2295_v9  ;;  %v2300_v13 = vsub.s32 1, %v2295_v9 }
 0x6c5   : > { %v2213_v43 = vld [vmem:[#allocation5 + $0x88] sm:$0xff]  ;;  %2368 = vmatprep.mubr.f32.mxu0 %v2197_v62  ;;  %v2212_v41 = vld [vmem:[#allocation5 + $0x80] sm:$0xff]  ;;  %v2215_v29 = vld [vmem:[#allocation5 + $0x98] sm:$0xff] }
 0x6c6   : > { %2416 = vmatprep.mubr.f32.mxu1 %v2213_v43  ;;  %v2198_v30 = vld [vmem:[#allocation5 + $0x10] sm:$0xff]  ;;  %v2201_v33 = vld [vmem:[#allocation5 + $0x28] sm:$0xff]  ;;  %v2200_v43 = vld [vmem:[#allocation5 + $0x20] sm:$0xff]  ;;  %v4612_v16 = vrot.slane %v2292_v53, %v2296_v52  ;;  %v4614_v10 = vrot.slane %v2292_v53, %v2300_v13 }
 0x6c7   : > { %3167 = vmatpush1.bf16.msra.mxu0 %v3166_v58  ;;  %3243 = vmatpush1.bf16.msra.mxu1 %v3166_v58  ;;  %v2214_v32 = vld [vmem:[#allocation5 + $0x90] sm:$0xff]  ;;  %v2217_v62 = vld [vmem:[#allocation5 + $0xa8] sm:$0xff]  ;;  %v2216_v44 = vld [vmem:[#allocation5 + $0xa0] sm:$0xff] }
 0x6c8   : > { %3169 = vmatprep.subr.bf16.mxu0 %v3168_v15  ;;  %3228 = vmatprep.subr.bf16.mxu1 %v3168_v15  ;;  %v2203_v63 = vld [vmem:[#allocation5 + $0x38] sm:$0xff]  ;;  %v2202_v36 = vld [vmem:[#allocation5 + $0x30] sm:$0xff]  ;;  %v2205_v1 = vld [vmem:[#allocation5 + $0x48] sm:$0xff] }
 0x6c9   : > { %v2219_v35 = vld [vmem:[#allocation5 + $0xb8] sm:$0xff]  ;;  %v2218_v37 = vld [vmem:[#allocation5 + $0xb0] sm:$0xff]  ;;  %v2221_v2 = vld [vmem:[#allocation5 + $0xc8] sm:$0xff] }
 0x6ca   : > { %v2204_v46 = vld [vmem:[#allocation5 + $0x40] sm:$0xff]  ;;  %v2207_v38 = vld [vmem:[#allocation5 + $0x58] sm:$0xff]  ;;  %v2206_v42 = vld [vmem:[#allocation5 + $0x50] sm:$0xff] }
 0x6cb   : > { %3171 = vmatpush1.bf16.msra.mxu0 %v3170_v19  ;;  %3244 = vmatpush1.bf16.msra.mxu1 %v3170_v19  ;;  %v2220_v47 = vld [vmem:[#allocation5 + $0xc0] sm:$0xff]  ;;  %v2223_v39 = vld [vmem:[#allocation5 + $0xd8] sm:$0xff]  ;;  %v2222_v45 = vld [vmem:[#allocation5 + $0xd0] sm:$0xff] }
 0x6cc   : > { %3173 = vmatprep.subr.bf16.mxu0 %v3172_v0  ;;  %3229 = vmatprep.subr.bf16.mxu1 %v3172_v0  ;;  %v2209_v4 = vld [vmem:[#allocation5 + $0x68] sm:$0xff]  ;;  %v2208_v49 = vld [vmem:[#allocation5 + $0x60] sm:$0xff]  ;;  %v2211_v48 = vld [vmem:[#allocation5 + $0x78] sm:$0xff] }
 0x6cd   : > { %v2225_v7 = vld [vmem:[#allocation5 + $0xe8] sm:$0xff]  ;;  %v2224_v50 = vld [vmem:[#allocation5 + $0xe0] sm:$0xff]  ;;  %v2227_v51 = vld [vmem:[#allocation5 + $0xf8] sm:$0xff] }
 0x6ce   : > { %v2210_v54 = vld [vmem:[#allocation5 + $0x70] sm:$0xff] }
 0x6cf   : > { %3175 = vmatpush1.bf16.msra.mxu0 %v3174_v24  ;;  %3245 = vmatpush1.bf16.msra.mxu1 %v3174_v24  ;;  %v2226_v61 = vld [vmem:[#allocation5 + $0xf0] sm:$0xff] }
 0x6d0   : > { %3177 = vmatprep.subr.bf16.mxu0 %v3176_v31  ;;  %3230 = vmatprep.subr.bf16.mxu1 %v3176_v31 }
 0x6d3   : > { %3179 = vmatpush1.bf16.msra.mxu0 %v3178_v56  ;;  %3246 = vmatpush1.bf16.msra.mxu1 %v3178_v56 }
 0x6d4   : > { %3181 = vmatprep.subr.bf16.mxu0 %v3180_v57  ;;  %3231 = vmatprep.subr.bf16.mxu1 %v3180_v57 }
 0x6d7   : > { %3183 = vmatpush1.bf16.msra.mxu0 %v3182_v59  ;;  %3247 = vmatpush1.bf16.msra.mxu1 %v3182_v59 }
 0x6da   : > { %2369 = vmatmul.mubr.f32.vlgmr.msra.gmra.mrb[0].mxu0 %v2196_v40  ;;  %2417 = vmatmul.mubr.f32.vlgmr.msra.gmra.mrb[0].mxu1 %v2212_v41 }
 0x6db   : > { %2374 = vmatprep.mubr.f32.mxu0 %v2199_v60  ;;  %2422 = vmatprep.mubr.f32.mxu1 %v2215_v29 }
 0x6de   : > { %2375 = vmatmul.mubr.f32.gmra.mrb[2].mxu0 %v2198_v30  ;;  %2423 = vmatmul.mubr.f32.gmra.mrb[2].mxu1 %v2214_v32 }
 0x6df   : > { %2380 = vmatprep.mubr.f32.mxu0 %v2201_v33  ;;  %2428 = vmatprep.mubr.f32.mxu1 %v2217_v62 }
 0x6e2   : > { %2381 = vmatmul.mubr.f32.gmra.mrb[4].mxu0 %v2200_v43  ;;  %2429 = vmatmul.mubr.f32.gmra.mrb[4].mxu1 %v2216_v44 }
 0x6e3   : > { %2386 = vmatprep.mubr.f32.mxu0 %v2203_v63  ;;  %2434 = vmatprep.mubr.f32.mxu1 %v2219_v35 }
 0x6e6   : > { %2387 = vmatmul.mubr.f32.gmra.mrb[6].mxu0 %v2202_v36  ;;  %2435 = vmatmul.mubr.f32.gmra.mrb[6].mxu1 %v2218_v37 }
 0x6e7   : > { %2392 = vmatprep.mubr.f32.mxu0 %v2205_v1  ;;  %2440 = vmatprep.mubr.f32.mxu1 %v2221_v2 }
 0x6ea   : > { %2393 = vmatmul.mubr.f32.gmra.mrb[8].mxu0 %v2204_v46  ;;  %2441 = vmatmul.mubr.f32.gmra.mrb[8].mxu1 %v2220_v47 }
 0x6eb   : > { %2398 = vmatprep.mubr.f32.mxu0 %v2207_v38  ;;  %2446 = vmatprep.mubr.f32.mxu1 %v2223_v39 }
 0x6ee   : > { %2399 = vmatmul.mubr.f32.gmra.mrb[10].mxu0 %v2206_v42  ;;  %2447 = vmatmul.mubr.f32.gmra.mrb[10].mxu1 %v2222_v45 }
 0x6ef   : > { %2404 = vmatprep.mubr.f32.mxu0 %v2209_v4  ;;  %2452 = vmatprep.mubr.f32.mxu1 %v2225_v7 }
 0x6f2   : > { %2405 = vmatmul.mubr.f32.gmra.mrb[12].mxu0 %v2208_v49  ;;  %2453 = vmatmul.mubr.f32.gmra.mrb[12].mxu1 %v2224_v50 }
 0x6f3   : > { %2410 = vmatprep.mubr.f32.mxu0 %v2211_v48  ;;  %2458 = vmatprep.mubr.f32.mxu1 %v2227_v51 }
 0x6f6   : > { %2411 = vmatmul.mubr.f32.gmra.mrb[14].mxu0 %v2210_v54  ;;  %2459 = vmatmul.mubr.f32.gmra.mrb[14].mxu1 %v2226_v61 }
 0x7ad   : > { %v2370_v11 = vpop.f32.mrb[0].mxu0  ;;  %v2418_v12 = vpop.f32.mrb[0].mxu1 }
 0x7ae   : > { %v2371_v14 = vadd.f32 %v2370_v11, %v4612_v16  ;;  %v2419_v55 = vadd.f32 %v2418_v12, %v4612_v16  ;;  %v2372_v58 = vpop.f32.mrb[1].mxu0  ;;  %v2420_v15 = vpop.f32.mrb[1].mxu1 }
 0x7af   : > { %v2373_v17 = vadd.f32 %v2372_v58, %v4614_v10  ;;  %v2421_v22 = vadd.f32 %v2420_v15, %v4614_v10 }
 0x7b0   : > { %2465 = vst [vmem:[%s4270_s24] sm:$0xff] %v2371_v14  ;;  %2481 = vst [vmem:[%s4270_s24 + $0x80] sm:$0xff] %v2419_v55 }
 0x7b1   : > { %2466 = vst [vmem:[%s4270_s24 + $0x8] sm:$0xff] %v2373_v17  ;;  %2482 = vst [vmem:[%s4270_s24 + $0x88] sm:$0xff] %v2421_v22  ;;  %v2376_v25 = vpop.f32.mrb[2].mxu0  ;;  %v2424_v18 = vpop.f32.mrb[2].mxu1 }
 0x7b2   : > { %v2377_v19 = vadd.f32 %v2376_v25, %v4612_v16  ;;  %v2425_v0 = vadd.f32 %v2424_v18, %v4612_v16  ;;  %v2378_v3 = vpop.f32.mrb[3].mxu0  ;;  %v2426_v20 = vpop.f32.mrb[3].mxu1 }
 0x7b3   : > { %v2379_v21 = vadd.f32 %v2378_v3, %v4614_v10  ;;  %v2427_v23 = vadd.f32 %v2426_v20, %v4614_v10 }
 0x7b4   : > { %2467 = vst [vmem:[%s4270_s24 + $0x10] sm:$0xff] %v2377_v19  ;;  %2483 = vst [vmem:[%s4270_s24 + $0x90] sm:$0xff] %v2425_v0 }
 0x7b5   : > { %2468 = vst [vmem:[%s4270_s24 + $0x18] sm:$0xff] %v2379_v21  ;;  %2484 = vst [vmem:[%s4270_s24 + $0x98] sm:$0xff] %v2427_v23  ;;  %v2382_v24 = vpop.f32.mrb[4].mxu0  ;;  %v2430_v31 = vpop.f32.mrb[4].mxu1 }
 0x7b6   : > { %v2383_v6 = vadd.f32 %v2382_v24, %v4612_v16  ;;  %v2431_v8 = vadd.f32 %v2430_v31, %v4612_v16  ;;  %v2384_v34 = vpop.f32.mrb[5].mxu0  ;;  %v2432_v26 = vpop.f32.mrb[5].mxu1 }
 0x7b7   : > { %v2385_v56 = vadd.f32 %v2384_v34, %v4614_v10  ;;  %v2433_v57 = vadd.f32 %v2432_v26, %v4614_v10 }
 0x7b8   : > { %2469 = vst [vmem:[%s4270_s24 + $0x20] sm:$0xff] %v2383_v6  ;;  %2485 = vst [vmem:[%s4270_s24 + $0xa0] sm:$0xff] %v2431_v8 }
 0x7b9   : > { %2470 = vst [vmem:[%s4270_s24 + $0x28] sm:$0xff] %v2385_v56  ;;  %2486 = vst [vmem:[%s4270_s24 + $0xa8] sm:$0xff] %v2433_v57  ;;  %v2388_v27 = vpop.f32.mrb[6].mxu0  ;;  %v2436_v28 = vpop.f32.mrb[6].mxu1 }
 0x7ba   : > { %v2389_v59 = vadd.f32 %v2388_v27, %v4612_v16  ;;  %v2437_v40 = vadd.f32 %v2436_v28, %v4612_v16  ;;  %v2390_v41 = vpop.f32.mrb[7].mxu0  ;;  %v2438_v60 = vpop.f32.mrb[7].mxu1 }
 0x7bb   : > { %v2391_v29 = vadd.f32 %v2390_v41, %v4614_v10  ;;  %v2439_v30 = vadd.f32 %v2438_v60, %v4614_v10 }
 0x7bc   : > { %2471 = vst [vmem:[%s4270_s24 + $0x30] sm:$0xff] %v2389_v59  ;;  %2487 = vst [vmem:[%s4270_s24 + $0xb0] sm:$0xff] %v2437_v40 }
 0x7bd   : > { %2472 = vst [vmem:[%s4270_s24 + $0x38] sm:$0xff] %v2391_v29  ;;  %2488 = vst [vmem:[%s4270_s24 + $0xb8] sm:$0xff] %v2439_v30  ;;  %v2394_v32 = vpop.f32.mrb[8].mxu0  ;;  %v2442_v33 = vpop.f32.mrb[8].mxu1 }
 0x7be   : > { %v2395_v62 = vadd.f32 %v2394_v32, %v4612_v16  ;;  %v2443_v43 = vadd.f32 %v2442_v33, %v4612_v16  ;;  %v2396_v44 = vpop.f32.mrb[9].mxu0  ;;  %v2444_v63 = vpop.f32.mrb[9].mxu1 }
 0x7bf   : > { %v2397_v35 = vadd.f32 %v2396_v44, %v4614_v10  ;;  %v2445_v36 = vadd.f32 %v2444_v63, %v4614_v10 }
 0x7c0   : > { %2473 = vst [vmem:[%s4270_s24 + $0x40] sm:$0xff] %v2395_v62  ;;  %2489 = vst [vmem:[%s4270_s24 + $0xc0] sm:$0xff] %v2443_v43 }
 0x7c1   : > { %2474 = vst [vmem:[%s4270_s24 + $0x48] sm:$0xff] %v2397_v35  ;;  %2490 = vst [vmem:[%s4270_s24 + $0xc8] sm:$0xff] %v2445_v36  ;;  %v2400_v37 = vpop.f32.mrb[10].mxu0  ;;  %v2448_v1 = vpop.f32.mrb[10].mxu1 }
 0x7c2   : > { %v2401_v2 = vadd.f32 %v2400_v37, %v4612_v16  ;;  %v2449_v46 = vadd.f32 %v2448_v1, %v4612_v16  ;;  %v2402_v47 = vpop.f32.mrb[11].mxu0  ;;  %v2450_v38 = vpop.f32.mrb[11].mxu1 }
 0x7c3   : > { %v2403_v39 = vadd.f32 %v2402_v47, %v4614_v10  ;;  %v2451_v42 = vadd.f32 %v2450_v38, %v4614_v10 }
 0x7c4   : > { %2475 = vst [vmem:[%s4270_s24 + $0x50] sm:$0xff] %v2401_v2  ;;  %2491 = vst [vmem:[%s4270_s24 + $0xd0] sm:$0xff] %v2449_v46 }
 0x7c5   : > { %2476 = vst [vmem:[%s4270_s24 + $0x58] sm:$0xff] %v2403_v39  ;;  %2492 = vst [vmem:[%s4270_s24 + $0xd8] sm:$0xff] %v2451_v42  ;;  %v2406_v45 = vpop.f32.mrb[12].mxu0  ;;  %v2454_v4 = vpop.f32.mrb[12].mxu1 }
 0x7c6   : > { %v2407_v7 = vadd.f32 %v2406_v45, %v4612_v16  ;;  %v2455_v49 = vadd.f32 %v2454_v4, %v4612_v16  ;;  %v2408_v50 = vpop.f32.mrb[13].mxu0  ;;  %v2456_v48 = vpop.f32.mrb[13].mxu1 }
 0x7c7   : > { %v2409_v51 = vadd.f32 %v2408_v50, %v4614_v10  ;;  %v2457_v54 = vadd.f32 %v2456_v48, %v4614_v10 }
 0x7c8   : > { %2477 = vst [vmem:[%s4270_s24 + $0x60] sm:$0xff] %v2407_v7  ;;  %2493 = vst [vmem:[%s4270_s24 + $0xe0] sm:$0xff] %v2455_v49 }
 0x7c9   : > { %2478 = vst [vmem:[%s4270_s24 + $0x68] sm:$0xff] %v2409_v51  ;;  %2494 = vst [vmem:[%s4270_s24 + $0xe8] sm:$0xff] %v2457_v54  ;;  %v2412_v61 = vpop.f32.mrb[14].mxu0  ;;  %v2460_v5 = vpop.f32.mrb[14].mxu1 }
 0x7ca   : > { %v2413_v9 = vadd.f32 %v2412_v61, %v4612_v16  ;;  %v2461_v52 = vadd.f32 %v2460_v5, %v4612_v16  ;;  %v2414_v53 = vpop.f32.mrb[15].mxu0  ;;  %v2462_v13 = vpop.f32.mrb[15].mxu1 }
 0x7cb   : > { %v2415_v11 = vadd.f32 %v2414_v53, %v4614_v10  ;;  %v2463_v12 = vadd.f32 %v2462_v13, %v4614_v10 }
 0x7cc   : > { %2479 = vst [vmem:[%s4270_s24 + $0x70] sm:$0xff] %v2413_v9  ;;  %2495 = vst [vmem:[%s4270_s24 + $0xf0] sm:$0xff] %v2461_v52 }
 0x7cd   : > { %2480 = vst [vmem:[%s4270_s24 + $0x78] sm:$0xff] %v2415_v11  ;;  %2496 = vst [vmem:[%s4270_s24 + $0xf8] sm:$0xff] %v2463_v12 }
 0x7ce PF: > { %s4844_s7 = sld [smem:[#allocation25_spill]]  ;;  %s4845_s6 = sld [smem:[#allocation26_spill]] }
 0x7cf   : > { %s2514_s9 = sshll.u32 %s4270_s24, 4  ;;  %s4846_s19 = sld [smem:[#allocation39_spill]]  ;;  %s4683_s9 = int_to_ptr.vmem [resolvable:$true] %s2514_s9 }
 0x7d0   : > { %s2498_s4 = scalar_lea.sflag [#allocation8], %s4238_s18  ;;  %s3684_s8 = scalar_lea.vmem %s4683_s9, 4096 }
 0x7d1   : > { %p3685_p4 = scmp.ne.s32.totalorder %s4683_s9, %s3684_s8  ;;  %p4847_p1 = scmp.ne.s32.totalorder %s4812_s23, 0 }
 0x7d2   : > { %s3848_s16 = smov [#allocation17]  }
 0x7d3   : > { %p3686_p9 = pnand %p3685_p4, %p4847_p1  ;;  %s3688_s24 = sshll.u32 %s3848_s16, 4  ;;  %s3689_s24 = int_to_ptr.vmem [resolvable:$false] %s3688_s24 }
 0x7d4   : > { %s2719_s15 = sshll.u32 %s4844_s7, 5  ;;  %s2713_s14 = sshll.u32 %s4845_s6, 6 }
 0x7d5   : > { %s2511_s5 = sadd.s32 %s2719_s15, %s2713_s14  ;;  %p3687_p11 = pneg %p3686_p9 }
 0x7d6   : > { %s2714_s1 = sshll.u32 %s2511_s5, 7  ;;  %s3690_s30 = scalar_lea.vmem %s3689_s24, 8192 }
 0x7d7   : > { %s4688_s17 = scalar_lea.hbm %s4846_s19, %s2714_s1  ;;  %p3691_p2 = scmp.lt.s32.totalorder %s4683_s9, %s3689_s24 }
 0x7d8   : > { %p3692_p13 = scmp.lt.s32.totalorder %s3690_s30, %s3684_s8 }
 0x7da   : > { %p3693_p8 = por %p3692_p13, %p3691_p2 }
 0x7dc   : > { %p3694_p7 = pnand %p3693_p8, %p3687_p11 }
 0x7de   : > { %3697 = shalt.err (!%p3694_p7)
}
 0x7df   : > { %s3698_s7 = scalar_lea.hbm %s4688_s17, 4096  ;;  %s3702_s14 = scalar_lea.hbm %s4846_s19, 16384 }
 0x7e0   : > { %p3699_p10 = scmp.ne.s32.totalorder %s4688_s17, %s3698_s7  ;;  %p3703_p6 = scmp.lt.u32.totalorder %s4688_s17, %s4846_s19 }
 0x7e1   : > { %p3704_p0 = scmp.lt.u32.totalorder %s3702_s14, %s3698_s7  ;;  %p3706_p4 = scmp.lt.u32.totalorder %s3698_s7, %s4688_s17 }
 0x7e2   : > { %p3700_p5 = pnand %p3699_p10, %p4847_p1 }
 0x7e3   : > { %p3705_p3 = por %p3704_p0, %p3703_p6 }
 0x7e4   : > { %p3701_p12 = pneg %p3700_p5 }
 0x7e5   : > { %p3707_p9 = por %p3706_p4, %p3705_p3 }
 0x7e7   : > { %p3708_p11 = pnand %p3707_p9, %p3701_p12 }
 0x7e9   : > { %3711 = shalt.err (!%p3708_p11)
}
 0x7ea   : > { %s3849_s22 = smov 256   ;;  %s3850_s21 = smov 16  }
 0x7eb   : > { %3268 = dma.vmem_to_hbm [thread:$0]  (%p4847_p1), %s4683_s9, 4096, %s4688_s17, %s2498_s4, %s3849_s22, %s3849_s22, %s3850_s21  }
 0x7ec PF: > { %p3303_p2 = scmp.ge.s32.totalorder %s3838_s13, 2  ;;  %s2529_s8 = sand.u32 1, %s3802_s27  }
 0x7ed   : > { %p4848_p13 = scmp.ne.s32.totalorder %s4817_s20, 0  ;;  %s2530_s16 = scalar_lea.sflag [#allocation8], %s2529_s8 }
 0x7ef   : > { %p3291_p8 = pnand %p3303_p2, %p4848_p13 }
 0x7f1   : > { %3785 = dma.done.wait (!%p3291_p8), %s2530_s16, 4096  }
 0x7f2   : > { %3787 = vsyncadd (!%p3291_p8), %s2530_s16, 4294963200  ;;  %s28_s13 = sadd.s32 1, %s3838_s13   ;;  %s4850_s23 = sld [smem:[#allocation29_spill]] }
 0x7f3   : > { %p4719_p7 = scmp.ge.s32.totalorder %s28_s13, 10   ;;  %s4851_s20 = sld [smem:[#allocation30_spill]] }
 0x7f4   : > { %s4852_s18 = sld [smem:[#allocation31_spill]]  ;;  %s4854_s24 = smov %s3794_s25 }
 0x7f5   : > { %s4855_s25 = smov %s3798_s26  ;;  %s4856_s26 = smov %s4184_s2 }
 0x7f6   : > { %s4857_s27 = smov %s3806_s28  ;;  %s4858_s28 = smov %s3810_s29 }
 0x7f7   : > { %s4859_s29 = smov %s4130_s3  ;;  %s4860_s30 = smov %s3826_s10 }
 0x7f8   : > { %s4861_s8 = smov %s3830_s11  ;;  %s4862_s9 = smov %s3834_s12 }
 0x7f9   : > { %s4863_s10 = smov %s4850_s23  ;;  %s4864_s11 = smov %s4851_s20 }
 0x7fa   : > { %s4865_s12 = smov %s4852_s18  ;;  %27 = sbr.rel (!%p4719_p7) target bundleno = 23 (0x17), region = 138 }
 0x801   :  { %2535 = vsyncpa [#allocation7], 1 }
 0x802   :  { %2537 = vsyncpa [#allocation7 + $0x1], 1 }
 0x803   :  { %2538 = vsyncpa [#allocation10], 1 }
 0x804   :  { %2540 = vsyncpa [#allocation10 + $0x1], 1 }
 0x805   :  { %2541 = vsyncpa [#allocation13], 1 }
 0x806   :  { %2542 = vsyncpa [#allocation16], 1 }
 0x807   :  { %2543 = vsyncpa [#allocation8], 1 }
 0x808   :  { %2545 = vsyncpa [#allocation8 + $0x1], 1 }

</bundles_post_ra>
